<compile_context>
chip_gen: v7x
topology: tpu7x:2x2x1
jax: 0.10.0
libtpu: 0.0.40
codegen_flags: <defaults>
</compile_context>

<pallas_src>
import functools
import math

import jax
import jax.numpy as jnp
from jax import lax
from jax.experimental import pallas as pl
from jax.experimental.pallas import tpu as pltpu

# ---------------- model dimensions ----------------
B, Z, C, H, W = 2, 8, 4, 16, 16      # batch, slices, input channels, spatial
HW = H * W                           # 256 -> lane-dense
D = 32                               # dim_feats (backbone feature channels / d_model)
NHEAD = 4
HD = D // NHEAD                      # head dim
DFF = D * 4                          # transformer dim_feedforward
NLAYERS = 2                          # transformer_num_layers
NCLS = 5                             # num_classes
NCLS_PAD = 128                       # lane-dense padded logits width (sliced to NCLS)

GEM_P = 3.0
GEM_EPS = 1e-6
NORM_MEAN, NORM_SD = 0.5, 0.25       # 'mean_sd' normalization params
LN_EPS = 1e-5                        # nn.LayerNorm default
ATT_SCALE = 1.0 / math.sqrt(HD)
INV_SQRT2 = 1.0 / math.sqrt(2.0)


# ---------------- in-kernel helpers ----------------
def _erf(x):
    # Abramowitz & Stegun 7.1.26 rational approximation (max abs err ~1.5e-7),
    # used as the exact-GELU erf inside the kernel.
    a1, a2, a3, a4, a5 = 0.254829592, -0.284496736, 1.421413741, -1.453152027, 1.061405429
    p = 0.3275911
    sgn = jnp.where(x >= 0.0, 1.0, -1.0)
    ax = jnp.abs(x)
    t = 1.0 / (1.0 + p * ax)
    poly = ((((a5 * t + a4) * t + a3) * t + a2) * t + a1) * t
    return sgn * (1.0 - poly * jnp.exp(-ax * ax))


def _gelu(x):
    # exact (erf) GELU, matching F.gelu(approximate='none')
    return 0.5 * x * (1.0 + _erf(x * INV_SQRT2))


def _add_layernorm(x, r, g, b):
    y = x + r
    mu = jnp.mean(y, axis=-1, keepdims=True)
    yc = y - mu
    var = jnp.mean(yc * yc, axis=-1, keepdims=True)
    return yc * lax.rsqrt(var + LN_EPS) * g + b


# ---------------- fully-fused forward kernel (one batch element per grid step) ----------------
def _net_kernel(x_ref, sw_ref, sb_ref, *rest):
    # x_ref: (1, C, Z, HW) VMEM block for this batch element
    # sw_ref: (C, D) stem weights in SMEM, sb_ref: (D,) stem bias in SMEM
    # rest: 12 VMEM weight refs per transformer layer, then head_w, head_b, then out_ref
    out_ref = rest[-1]
    w = rest[:-1]

    # ---- normalize ('mean_sd') + synthetic 1x1-conv stem (C->D, ReLU) + GeM pool ----
    x3 = x_ref[0]                                                # (C, Z, HW)
    inv_sd = 1.0 / NORM_SD
    xch = [(x3[c] - NORM_MEAN) * inv_sd for c in range(C)]       # C x (Z, HW), lane-dense

    col_ids = lax.broadcasted_iota(jnp.int32, (Z, D), 1)
    seq = jnp.zeros((Z, D), jnp.float32)
    for d in range(D):                                           # VPU: 4 FMAs per out channel
        acc = xch[0] * sw_ref[0, d]
        for c in range(1, C):
            acc = acc + xch[c] * sw_ref[c, d]
        acc = acc + sb_ref[d]
        f = jnp.maximum(acc, GEM_EPS)                            # ReLU then clamp(min=eps)
        f3 = f * f * f                                           # GeM p=3 (no exp/log per pixel)
        pooled = jnp.mean(f3, axis=-1, keepdims=True)            # (Z, 1) full-spatial avg pool
        seq = jnp.where(col_ids == d, pooled, seq)
    seq = jnp.exp(jnp.log(seq) * (1.0 / GEM_P))                  # 1/p root on pooled means only

    # ---- transformer encoder (post-LN, dropout = identity in eval, mask = None) ----
    for l in range(NLAYERS):
        (wqkv_r, bqkv_r, wo_r, bo_r, w1_r, b1_r, w2_r, b2_r,
         g1_r, be1_r, g2_r, be2_r) = w[12 * l: 12 * l + 12]

        qkv = jnp.dot(seq, wqkv_r[...], preferred_element_type=jnp.float32) + bqkv_r[...]
        wo_v = wo_r[...]                                         # (D, D)

        sa = jnp.zeros((Z, D), jnp.float32)
        for h in range(NHEAD):                                   # heads unrolled, no grid
            qh = qkv[:, h * HD:(h + 1) * HD]                     # (Z, HD)
            kh = qkv[:, D + h * HD: D + (h + 1) * HD]
            vh = qkv[:, 2 * D + h * HD: 2 * D + (h + 1) * HD]
            s = lax.dot_general(qh, kh, (((1,), (1,)), ((), ())),
                                preferred_element_type=jnp.float32) * ATT_SCALE
            m = jnp.max(s, axis=-1, keepdims=True)
            e = jnp.exp(s - m)
            p = e * pl.reciprocal(jnp.sum(e, axis=-1, keepdims=True), approx=True)
            oh = jnp.dot(p, vh, preferred_element_type=jnp.float32)          # (Z, HD)
            # out-projection accumulated per head: concat(o_h) @ Wo == sum_h o_h @ Wo[h*HD:(h+1)*HD]
            sa = sa + jnp.dot(oh, wo_v[h * HD:(h + 1) * HD, :],
                              preferred_element_type=jnp.float32)
        sa = sa + bo_r[...]
        seq = _add_layernorm(seq, sa, g1_r[...], be1_r[...])     # norm1(x + attn)

        hdn = _gelu(jnp.dot(seq, w1_r[...], preferred_element_type=jnp.float32) + b1_r[...])
        ff = jnp.dot(hdn, w2_r[...], preferred_element_type=jnp.float32) + b2_r[...]
        seq = _add_layernorm(seq, ff, g2_r[...], be2_r[...])     # norm2(x + ff)

    # ---- classification head (lane-padded to 128 for a dense final store) ----
    hw_ref, hb_ref = w[12 * NLAYERS], w[12 * NLAYERS + 1]
    out_ref[0] = jnp.dot(seq, hw_ref[...], preferred_element_type=jnp.float32) + hb_ref[...]


# ---------------- deterministic parameter init ----------------
def init_params(key):
    keys = jax.random.split(key, 64)
    counter = iter(range(64))

    def nrm(shape, scale=0.05):
        return (scale * jax.random.normal(keys[next(counter)], shape)).astype(jnp.float32)

    params = {
        "backbone_w": nrm((C, D)),          # synthetic 1x1-conv stem, stored (in, out)
        "backbone_b": nrm((D,)),
        "layers": [],
        "head_w": nrm((D, NCLS)),           # self.linear
        "head_b": nrm((NCLS,)),
    }
    for _ in range(NLAYERS):                # nn.TransformerEncoderLayer params
        params["layers"].append({
            "wqkv": nrm((D, 3 * D)), "bqkv": nrm((3 * D,)),     # in_proj
            "wo": nrm((D, D)), "bo": nrm((D,)),                 # out_proj
            "w1": nrm((D, DFF)), "b1": nrm((DFF,)),             # linear1
            "w2": nrm((DFF, D)), "b2": nrm((D,)),               # linear2
            "g1": jnp.ones((D,), jnp.float32), "be1": jnp.zeros((D,), jnp.float32),
            "g2": jnp.ones((D,), jnp.float32), "be2": jnp.zeros((D,), jnp.float32),
        })
    return params


# ---------------- full forward (eval mode): single fused pallas_call ----------------
def net_forward(params, x):
    Bb, Zz, Cc, Hh, Ww = x.shape
    HWs = Hh * Ww

    # channels-first per batch element so the kernel picks whole (Z, HW) channel planes
    x_cf = jnp.transpose(x.reshape(Bb, Zz, Cc, HWs), (0, 2, 1, 3))        # (B, C, Z, HW)

    # lane-pad the head so the only HBM write is a dense (Z, 128) slab
    head_w_pad = jnp.zeros((D, NCLS_PAD), jnp.float32).at[:, :NCLS].set(params["head_w"])
    head_b_pad = jnp.zeros((1, NCLS_PAD), jnp.float32).at[:, :NCLS].set(
        params["head_b"].reshape(1, NCLS))

    inputs = [x_cf, params["backbone_w"], params["backbone_b"]]
    for lp in params["layers"]:
        inputs += [
            lp["wqkv"], lp["bqkv"].reshape(1, -1),
            lp["wo"], lp["bo"].reshape(1, -1),
            lp["w1"], lp["b1"].reshape(1, -1),
            lp["w2"], lp["b2"].reshape(1, -1),
            lp["g1"].reshape(1, -1), lp["be1"].reshape(1, -1),
            lp["g2"].reshape(1, -1), lp["be2"].reshape(1, -1),
        ]
    inputs += [head_w_pad, head_b_pad]

    in_specs = [
        pl.BlockSpec((1, Cc, Zz, HWs), lambda b: (b, 0, 0, 0)),            # x (per batch element)
        pl.BlockSpec(memory_space=pltpu.MemorySpace.SMEM),                 # stem weights (C, D)
        pl.BlockSpec(memory_space=pltpu.MemorySpace.SMEM),                 # stem bias (D,)
    ]
    for a in inputs[3:]:                                                   # all 2-D, VMEM-resident
        in_specs.append(pl.BlockSpec(a.shape, lambda b: (0, 0)))

    logits_pad = pl.pallas_call(
        _net_kernel,
        out_shape=jax.ShapeDtypeStruct((Bb, Zz, NCLS_PAD), jnp.float32),
        grid=(Bb,),
        in_specs=in_specs,
        out_specs=pl.BlockSpec((1, Zz, NCLS_PAD), lambda b: (b, 0, 0)),
        compiler_params=pltpu.CompilerParams(dimension_semantics=("parallel",)),
    )(*inputs)

    return logits_pad[..., :NCLS]                                          # (B, Z, num_classes)


if __name__ == "__main__":
    x = jax.random.normal(jax.random.PRNGKey(0), (B, Z, C, H, W), dtype=jnp.float32)
    params = init_params(jax.random.PRNGKey(42))

    fwd = jax.jit(functools.partial(net_forward, params))
    logits = fwd(x)
    jax.block_until_ready(logits)

    assert logits.shape == (B, Z, NCLS), logits.shape
    assert jnp.all(jnp.isfinite(logits))
    print("KERNEL_OK")
</pallas_src>

<mosaic_0001>
module attributes {stable_mosaic.version = 11 : i64} {
  func.func @_net_kernel(%arg0: i32, %arg1: memref<1x4x8x256xf32, #tpu.memory_space<vmem>>, %arg2: memref<4x32xf32, #tpu.memory_space<smem>>, %arg3: memref<32xf32, #tpu.memory_space<smem>>, %arg4: memref<32x96xf32, #tpu.memory_space<vmem>>, %arg5: memref<1x96xf32, #tpu.memory_space<vmem>>, %arg6: memref<32x32xf32, #tpu.memory_space<vmem>>, %arg7: memref<1x32xf32, #tpu.memory_space<vmem>>, %arg8: memref<32x128xf32, #tpu.memory_space<vmem>>, %arg9: memref<1x128xf32, #tpu.memory_space<vmem>>, %arg10: memref<128x32xf32, #tpu.memory_space<vmem>>, %arg11: memref<1x32xf32, #tpu.memory_space<vmem>>, %arg12: memref<1x32xf32, #tpu.memory_space<vmem>>, %arg13: memref<1x32xf32, #tpu.memory_space<vmem>>, %arg14: memref<1x32xf32, #tpu.memory_space<vmem>>, %arg15: memref<1x32xf32, #tpu.memory_space<vmem>>, %arg16: memref<32x96xf32, #tpu.memory_space<vmem>>, %arg17: memref<1x96xf32, #tpu.memory_space<vmem>>, %arg18: memref<32x32xf32, #tpu.memory_space<vmem>>, %arg19: memref<1x32xf32, #tpu.memory_space<vmem>>, %arg20: memref<32x128xf32, #tpu.memory_space<vmem>>, %arg21: memref<1x128xf32, #tpu.memory_space<vmem>>, %arg22: memref<128x32xf32, #tpu.memory_space<vmem>>, %arg23: memref<1x32xf32, #tpu.memory_space<vmem>>, %arg24: memref<1x32xf32, #tpu.memory_space<vmem>>, %arg25: memref<1x32xf32, #tpu.memory_space<vmem>>, %arg26: memref<1x32xf32, #tpu.memory_space<vmem>>, %arg27: memref<1x32xf32, #tpu.memory_space<vmem>>, %arg28: memref<32x128xf32, #tpu.memory_space<vmem>>, %arg29: memref<1x128xf32, #tpu.memory_space<vmem>>, %arg30: memref<1x8x128xf32, #tpu.memory_space<vmem>>) attributes {dimension_semantics = [#tpu.dimension_semantics<parallel>], iteration_bounds = array<i64: 2>, scalar_prefetch = 0 : i64, scratch_operands = 0 : i64, tpu.core_type = #tpu.core_type<tc>, window_params = [{transform_indices = @transform_0, window_bounds = array<i64: 1, 4, 8, 256>}, {transform_indices = @transform_1, window_bounds = array<i64: 4, 32>}, {transform_indices = @transform_2, window_bounds = array<i64: 32>}, {pipeline_mode = #tpu.pipeline_mode<synchronous>, transform_indices = @transform_3, window_bounds = array<i64: 32, 96>}, {pipeline_mode = #tpu.pipeline_mode<synchronous>, transform_indices = @transform_4, window_bounds = array<i64: 1, 96>}, {pipeline_mode = #tpu.pipeline_mode<synchronous>, transform_indices = @transform_5, window_bounds = array<i64: 32, 32>}, {pipeline_mode = #tpu.pipeline_mode<synchronous>, transform_indices = @transform_6, window_bounds = array<i64: 1, 32>}, {pipeline_mode = #tpu.pipeline_mode<synchronous>, transform_indices = @transform_7, window_bounds = array<i64: 32, 128>}, {pipeline_mode = #tpu.pipeline_mode<synchronous>, transform_indices = @transform_8, window_bounds = array<i64: 1, 128>}, {pipeline_mode = #tpu.pipeline_mode<synchronous>, transform_indices = @transform_9, window_bounds = array<i64: 128, 32>}, {pipeline_mode = #tpu.pipeline_mode<synchronous>, transform_indices = @transform_10, window_bounds = array<i64: 1, 32>}, {pipeline_mode = #tpu.pipeline_mode<synchronous>, transform_indices = @transform_11, window_bounds = array<i64: 1, 32>}, {pipeline_mode = #tpu.pipeline_mode<synchronous>, transform_indices = @transform_12, window_bounds = array<i64: 1, 32>}, {pipeline_mode = #tpu.pipeline_mode<synchronous>, transform_indices = @transform_13, window_bounds = array<i64: 1, 32>}, {pipeline_mode = #tpu.pipeline_mode<synchronous>, transform_indices = @transform_14, window_bounds = array<i64: 1, 32>}, {pipeline_mode = #tpu.pipeline_mode<synchronous>, transform_indices = @transform_15, window_bounds = array<i64: 32, 96>}, {pipeline_mode = #tpu.pipeline_mode<synchronous>, transform_indices = @transform_16, window_bounds = array<i64: 1, 96>}, {pipeline_mode = #tpu.pipeline_mode<synchronous>, transform_indices = @transform_17, window_bounds = array<i64: 32, 32>}, {pipeline_mode = #tpu.pipeline_mode<synchronous>, transform_indices = @transform_18, window_bounds = array<i64: 1, 32>}, {pipeline_mode = #tpu.pipeline_mode<synchronous>, transform_indices = @transform_19, window_bounds = array<i64: 32, 128>}, {pipeline_mode = #tpu.pipeline_mode<synchronous>, transform_indices = @transform_20, window_bounds = array<i64: 1, 128>}, {pipeline_mode = #tpu.pipeline_mode<synchronous>, transform_indices = @transform_21, window_bounds = array<i64: 128, 32>}, {pipeline_mode = #tpu.pipeline_mode<synchronous>, transform_indices = @transform_22, window_bounds = array<i64: 1, 32>}, {pipeline_mode = #tpu.pipeline_mode<synchronous>, transform_indices = @transform_23, window_bounds = array<i64: 1, 32>}, {pipeline_mode = #tpu.pipeline_mode<synchronous>, transform_indices = @transform_24, window_bounds = array<i64: 1, 32>}, {pipeline_mode = #tpu.pipeline_mode<synchronous>, transform_indices = @transform_25, window_bounds = array<i64: 1, 32>}, {pipeline_mode = #tpu.pipeline_mode<synchronous>, transform_indices = @transform_26, window_bounds = array<i64: 1, 32>}, {pipeline_mode = #tpu.pipeline_mode<synchronous>, transform_indices = @transform_27, window_bounds = array<i64: 32, 128>}, {pipeline_mode = #tpu.pipeline_mode<synchronous>, transform_indices = @transform_28, window_bounds = array<i64: 1, 128>}, {transform_indices = @transform_29, window_bounds = array<i64: 1, 8, 128>}]} {
    %c0 = arith.constant 0 : index
    %c0_0 = arith.constant 0 : index
    %c0_1 = arith.constant 0 : index
    %c0_2 = arith.constant 0 : index
    %0 = vector.load %arg1[%c0, %c0_0, %c0_1, %c0_2] : memref<1x4x8x256xf32, #tpu.memory_space<vmem>>, vector<1x4x8x256xf32>
    %1 = vector.shape_cast %0 : vector<1x4x8x256xf32> to vector<4x8x256xf32>
    %2 = vector.extract_strided_slice %1 {offsets = [0, 0, 0], sizes = [1, 8, 256], strides = [1, 1, 1]} : vector<4x8x256xf32> to vector<1x8x256xf32>
    %3 = vector.shape_cast %2 : vector<1x8x256xf32> to vector<8x256xf32>
    %cst = arith.constant 5.000000e-01 : f32
    %4 = vector.broadcast %cst : f32 to vector<8x256xf32>
    %5 = arith.subf %3, %4 : vector<8x256xf32>
    %cst_3 = arith.constant 4.000000e+00 : f32
    %6 = vector.broadcast %cst_3 : f32 to vector<8x256xf32>
    %7 = arith.mulf %5, %6 : vector<8x256xf32>
    %8 = vector.extract_strided_slice %1 {offsets = [1, 0, 0], sizes = [1, 8, 256], strides = [1, 1, 1]} : vector<4x8x256xf32> to vector<1x8x256xf32>
    %9 = vector.shape_cast %8 : vector<1x8x256xf32> to vector<8x256xf32>
    %cst_4 = arith.constant 5.000000e-01 : f32
    %10 = vector.broadcast %cst_4 : f32 to vector<8x256xf32>
    %11 = arith.subf %9, %10 : vector<8x256xf32>
    %cst_5 = arith.constant 4.000000e+00 : f32
    %12 = vector.broadcast %cst_5 : f32 to vector<8x256xf32>
    %13 = arith.mulf %11, %12 : vector<8x256xf32>
    %14 = vector.extract_strided_slice %1 {offsets = [2, 0, 0], sizes = [1, 8, 256], strides = [1, 1, 1]} : vector<4x8x256xf32> to vector<1x8x256xf32>
    %15 = vector.shape_cast %14 : vector<1x8x256xf32> to vector<8x256xf32>
    %cst_6 = arith.constant 5.000000e-01 : f32
    %16 = vector.broadcast %cst_6 : f32 to vector<8x256xf32>
    %17 = arith.subf %15, %16 : vector<8x256xf32>
    %cst_7 = arith.constant 4.000000e+00 : f32
    %18 = vector.broadcast %cst_7 : f32 to vector<8x256xf32>
    %19 = arith.mulf %17, %18 : vector<8x256xf32>
    %20 = vector.extract_strided_slice %1 {offsets = [3, 0, 0], sizes = [1, 8, 256], strides = [1, 1, 1]} : vector<4x8x256xf32> to vector<1x8x256xf32>
    %21 = vector.shape_cast %20 : vector<1x8x256xf32> to vector<8x256xf32>
    %cst_8 = arith.constant 5.000000e-01 : f32
    %22 = vector.broadcast %cst_8 : f32 to vector<8x256xf32>
    %23 = arith.subf %21, %22 : vector<8x256xf32>
    %cst_9 = arith.constant 4.000000e+00 : f32
    %24 = vector.broadcast %cst_9 : f32 to vector<8x256xf32>
    %25 = arith.mulf %23, %24 : vector<8x256xf32>
    %26 = tpu.iota {dimensions = array<i32: 1>} : vector<8x32xi32>
    %cst_10 = arith.constant 0.000000e+00 : f32
    %27 = vector.broadcast %cst_10 : f32 to vector<8x32xf32>
    %c0_11 = arith.constant 0 : index
    %c0_12 = arith.constant 0 : index
    %28 = memref.load %arg2[%c0_11, %c0_12] : memref<4x32xf32, #tpu.memory_space<smem>>
    %29 = vector.broadcast %28 : f32 to vector<8x256xf32>
    %30 = arith.mulf %7, %29 : vector<8x256xf32>
    %c1 = arith.constant 1 : index
    %c0_13 = arith.constant 0 : index
    %31 = memref.load %arg2[%c1, %c0_13] : memref<4x32xf32, #tpu.memory_space<smem>>
    %32 = vector.broadcast %31 : f32 to vector<8x256xf32>
    %33 = arith.mulf %13, %32 : vector<8x256xf32>
    %34 = arith.addf %30, %33 : vector<8x256xf32>
    %c2 = arith.constant 2 : index
    %c0_14 = arith.constant 0 : index
    %35 = memref.load %arg2[%c2, %c0_14] : memref<4x32xf32, #tpu.memory_space<smem>>
    %36 = vector.broadcast %35 : f32 to vector<8x256xf32>
    %37 = arith.mulf %19, %36 : vector<8x256xf32>
    %38 = arith.addf %34, %37 : vector<8x256xf32>
    %c3 = arith.constant 3 : index
    %c0_15 = arith.constant 0 : index
    %39 = memref.load %arg2[%c3, %c0_15] : memref<4x32xf32, #tpu.memory_space<smem>>
    %40 = vector.broadcast %39 : f32 to vector<8x256xf32>
    %41 = arith.mulf %25, %40 : vector<8x256xf32>
    %42 = arith.addf %38, %41 : vector<8x256xf32>
    %c0_16 = arith.constant 0 : index
    %43 = memref.load %arg3[%c0_16] : memref<32xf32, #tpu.memory_space<smem>>
    %44 = vector.broadcast %43 : f32 to vector<8x256xf32>
    %45 = arith.addf %42, %44 : vector<8x256xf32>
    %cst_17 = arith.constant 9.99999997E-7 : f32
    %46 = vector.broadcast %cst_17 : f32 to vector<8x256xf32>
    %47 = arith.maximumf %45, %46 : vector<8x256xf32>
    %48 = arith.mulf %47, %47 : vector<8x256xf32>
    %49 = arith.mulf %48, %47 : vector<8x256xf32>
    %cst_18 = arith.constant dense<0.000000e+00> : vector<8xf32>
    %50 = vector.multi_reduction <add>, %49, %cst_18 [1] : vector<8x256xf32> to vector<8xf32>
    %51 = vector.shape_cast %50 : vector<8xf32> to vector<8x1xf32>
    %cst_19 = arith.constant 2.560000e+02 : f32
    %52 = vector.broadcast %cst_19 : f32 to vector<8x1xf32>
    %53 = arith.divf %51, %52 : vector<8x1xf32>
    %c0_i32 = arith.constant 0 : i32
    %54 = vector.broadcast %c0_i32 : i32 to vector<8x32xi32>
    %55 = arith.cmpi eq, %26, %54 : vector<8x32xi32>
    %56 = vector.shape_cast %53 : vector<8x1xf32> to vector<8x1xf32>
    %57 = vector.broadcast %56 : vector<8x1xf32> to vector<8x32xf32>
    %58 = arith.select %55, %57, %27 : vector<8x32xi1>, vector<8x32xf32>
    %c0_20 = arith.constant 0 : index
    %c1_21 = arith.constant 1 : index
    %59 = memref.load %arg2[%c0_20, %c1_21] : memref<4x32xf32, #tpu.memory_space<smem>>
    %60 = vector.broadcast %59 : f32 to vector<8x256xf32>
    %61 = arith.mulf %7, %60 : vector<8x256xf32>
    %c1_22 = arith.constant 1 : index
    %c1_23 = arith.constant 1 : index
    %62 = memref.load %arg2[%c1_22, %c1_23] : memref<4x32xf32, #tpu.memory_space<smem>>
    %63 = vector.broadcast %62 : f32 to vector<8x256xf32>
    %64 = arith.mulf %13, %63 : vector<8x256xf32>
    %65 = arith.addf %61, %64 : vector<8x256xf32>
    %c2_24 = arith.constant 2 : index
    %c1_25 = arith.constant 1 : index
    %66 = memref.load %arg2[%c2_24, %c1_25] : memref<4x32xf32, #tpu.memory_space<smem>>
    %67 = vector.broadcast %66 : f32 to vector<8x256xf32>
    %68 = arith.mulf %19, %67 : vector<8x256xf32>
    %69 = arith.addf %65, %68 : vector<8x256xf32>
    %c3_26 = arith.constant 3 : index
    %c1_27 = arith.constant 1 : index
    %70 = memref.load %arg2[%c3_26, %c1_27] : memref<4x32xf32, #tpu.memory_space<smem>>
    %71 = vector.broadcast %70 : f32 to vector<8x256xf32>
    %72 = arith.mulf %25, %71 : vector<8x256xf32>
    %73 = arith.addf %69, %72 : vector<8x256xf32>
    %c1_28 = arith.constant 1 : index
    %74 = memref.load %arg3[%c1_28] : memref<32xf32, #tpu.memory_space<smem>>
    %75 = vector.broadcast %74 : f32 to vector<8x256xf32>
    %76 = arith.addf %73, %75 : vector<8x256xf32>
    %cst_29 = arith.constant 9.99999997E-7 : f32
    %77 = vector.broadcast %cst_29 : f32 to vector<8x256xf32>
    %78 = arith.maximumf %76, %77 : vector<8x256xf32>
    %79 = arith.mulf %78, %78 : vector<8x256xf32>
    %80 = arith.mulf %79, %78 : vector<8x256xf32>
    %cst_30 = arith.constant dense<0.000000e+00> : vector<8xf32>
    %81 = vector.multi_reduction <add>, %80, %cst_30 [1] : vector<8x256xf32> to vector<8xf32>
    %82 = vector.shape_cast %81 : vector<8xf32> to vector<8x1xf32>
    %cst_31 = arith.constant 2.560000e+02 : f32
    %83 = vector.broadcast %cst_31 : f32 to vector<8x1xf32>
    %84 = arith.divf %82, %83 : vector<8x1xf32>
    %c1_i32 = arith.constant 1 : i32
    %85 = vector.broadcast %c1_i32 : i32 to vector<8x32xi32>
    %86 = arith.cmpi eq, %26, %85 : vector<8x32xi32>
    %87 = vector.shape_cast %84 : vector<8x1xf32> to vector<8x1xf32>
    %88 = vector.broadcast %87 : vector<8x1xf32> to vector<8x32xf32>
    %89 = arith.select %86, %88, %58 : vector<8x32xi1>, vector<8x32xf32>
    %c0_32 = arith.constant 0 : index
    %c2_33 = arith.constant 2 : index
    %90 = memref.load %arg2[%c0_32, %c2_33] : memref<4x32xf32, #tpu.memory_space<smem>>
    %91 = vector.broadcast %90 : f32 to vector<8x256xf32>
    %92 = arith.mulf %7, %91 : vector<8x256xf32>
    %c1_34 = arith.constant 1 : index
    %c2_35 = arith.constant 2 : index
    %93 = memref.load %arg2[%c1_34, %c2_35] : memref<4x32xf32, #tpu.memory_space<smem>>
    %94 = vector.broadcast %93 : f32 to vector<8x256xf32>
    %95 = arith.mulf %13, %94 : vector<8x256xf32>
    %96 = arith.addf %92, %95 : vector<8x256xf32>
    %c2_36 = arith.constant 2 : index
    %c2_37 = arith.constant 2 : index
    %97 = memref.load %arg2[%c2_36, %c2_37] : memref<4x32xf32, #tpu.memory_space<smem>>
    %98 = vector.broadcast %97 : f32 to vector<8x256xf32>
    %99 = arith.mulf %19, %98 : vector<8x256xf32>
    %100 = arith.addf %96, %99 : vector<8x256xf32>
    %c3_38 = arith.constant 3 : index
    %c2_39 = arith.constant 2 : index
    %101 = memref.load %arg2[%c3_38, %c2_39] : memref<4x32xf32, #tpu.memory_space<smem>>
    %102 = vector.broadcast %101 : f32 to vector<8x256xf32>
    %103 = arith.mulf %25, %102 : vector<8x256xf32>
    %104 = arith.addf %100, %103 : vector<8x256xf32>
    %c2_40 = arith.constant 2 : index
    %105 = memref.load %arg3[%c2_40] : memref<32xf32, #tpu.memory_space<smem>>
    %106 = vector.broadcast %105 : f32 to vector<8x256xf32>
    %107 = arith.addf %104, %106 : vector<8x256xf32>
    %cst_41 = arith.constant 9.99999997E-7 : f32
    %108 = vector.broadcast %cst_41 : f32 to vector<8x256xf32>
    %109 = arith.maximumf %107, %108 : vector<8x256xf32>
    %110 = arith.mulf %109, %109 : vector<8x256xf32>
    %111 = arith.mulf %110, %109 : vector<8x256xf32>
    %cst_42 = arith.constant dense<0.000000e+00> : vector<8xf32>
    %112 = vector.multi_reduction <add>, %111, %cst_42 [1] : vector<8x256xf32> to vector<8xf32>
    %113 = vector.shape_cast %112 : vector<8xf32> to vector<8x1xf32>
    %cst_43 = arith.constant 2.560000e+02 : f32
    %114 = vector.broadcast %cst_43 : f32 to vector<8x1xf32>
    %115 = arith.divf %113, %114 : vector<8x1xf32>
    %c2_i32 = arith.constant 2 : i32
    %116 = vector.broadcast %c2_i32 : i32 to vector<8x32xi32>
    %117 = arith.cmpi eq, %26, %116 : vector<8x32xi32>
    %118 = vector.shape_cast %115 : vector<8x1xf32> to vector<8x1xf32>
    %119 = vector.broadcast %118 : vector<8x1xf32> to vector<8x32xf32>
    %120 = arith.select %117, %119, %89 : vector<8x32xi1>, vector<8x32xf32>
    %c0_44 = arith.constant 0 : index
    %c3_45 = arith.constant 3 : index
    %121 = memref.load %arg2[%c0_44, %c3_45] : memref<4x32xf32, #tpu.memory_space<smem>>
    %122 = vector.broadcast %121 : f32 to vector<8x256xf32>
    %123 = arith.mulf %7, %122 : vector<8x256xf32>
    %c1_46 = arith.constant 1 : index
    %c3_47 = arith.constant 3 : index
    %124 = memref.load %arg2[%c1_46, %c3_47] : memref<4x32xf32, #tpu.memory_space<smem>>
    %125 = vector.broadcast %124 : f32 to vector<8x256xf32>
    %126 = arith.mulf %13, %125 : vector<8x256xf32>
    %127 = arith.addf %123, %126 : vector<8x256xf32>
    %c2_48 = arith.constant 2 : index
    %c3_49 = arith.constant 3 : index
    %128 = memref.load %arg2[%c2_48, %c3_49] : memref<4x32xf32, #tpu.memory_space<smem>>
    %129 = vector.broadcast %128 : f32 to vector<8x256xf32>
    %130 = arith.mulf %19, %129 : vector<8x256xf32>
    %131 = arith.addf %127, %130 : vector<8x256xf32>
    %c3_50 = arith.constant 3 : index
    %c3_51 = arith.constant 3 : index
    %132 = memref.load %arg2[%c3_50, %c3_51] : memref<4x32xf32, #tpu.memory_space<smem>>
    %133 = vector.broadcast %132 : f32 to vector<8x256xf32>
    %134 = arith.mulf %25, %133 : vector<8x256xf32>
    %135 = arith.addf %131, %134 : vector<8x256xf32>
    %c3_52 = arith.constant 3 : index
    %136 = memref.load %arg3[%c3_52] : memref<32xf32, #tpu.memory_space<smem>>
    %137 = vector.broadcast %136 : f32 to vector<8x256xf32>
    %138 = arith.addf %135, %137 : vector<8x256xf32>
    %cst_53 = arith.constant 9.99999997E-7 : f32
    %139 = vector.broadcast %cst_53 : f32 to vector<8x256xf32>
    %140 = arith.maximumf %138, %139 : vector<8x256xf32>
    %141 = arith.mulf %140, %140 : vector<8x256xf32>
    %142 = arith.mulf %141, %140 : vector<8x256xf32>
    %cst_54 = arith.constant dense<0.000000e+00> : vector<8xf32>
    %143 = vector.multi_reduction <add>, %142, %cst_54 [1] : vector<8x256xf32> to vector<8xf32>
    %144 = vector.shape_cast %143 : vector<8xf32> to vector<8x1xf32>
    %cst_55 = arith.constant 2.560000e+02 : f32
    %145 = vector.broadcast %cst_55 : f32 to vector<8x1xf32>
    %146 = arith.divf %144, %145 : vector<8x1xf32>
    %c3_i32 = arith.constant 3 : i32
    %147 = vector.broadcast %c3_i32 : i32 to vector<8x32xi32>
    %148 = arith.cmpi eq, %26, %147 : vector<8x32xi32>
    %149 = vector.shape_cast %146 : vector<8x1xf32> to vector<8x1xf32>
    %150 = vector.broadcast %149 : vector<8x1xf32> to vector<8x32xf32>
    %151 = arith.select %148, %150, %120 : vector<8x32xi1>, vector<8x32xf32>
    %c0_56 = arith.constant 0 : index
    %c4 = arith.constant 4 : index
    %152 = memref.load %arg2[%c0_56, %c4] : memref<4x32xf32, #tpu.memory_space<smem>>
    %153 = vector.broadcast %152 : f32 to vector<8x256xf32>
    %154 = arith.mulf %7, %153 : vector<8x256xf32>
    %c1_57 = arith.constant 1 : index
    %c4_58 = arith.constant 4 : index
    %155 = memref.load %arg2[%c1_57, %c4_58] : memref<4x32xf32, #tpu.memory_space<smem>>
    %156 = vector.broadcast %155 : f32 to vector<8x256xf32>
    %157 = arith.mulf %13, %156 : vector<8x256xf32>
    %158 = arith.addf %154, %157 : vector<8x256xf32>
    %c2_59 = arith.constant 2 : index
    %c4_60 = arith.constant 4 : index
    %159 = memref.load %arg2[%c2_59, %c4_60] : memref<4x32xf32, #tpu.memory_space<smem>>
    %160 = vector.broadcast %159 : f32 to vector<8x256xf32>
    %161 = arith.mulf %19, %160 : vector<8x256xf32>
    %162 = arith.addf %158, %161 : vector<8x256xf32>
    %c3_61 = arith.constant 3 : index
    %c4_62 = arith.constant 4 : index
    %163 = memref.load %arg2[%c3_61, %c4_62] : memref<4x32xf32, #tpu.memory_space<smem>>
    %164 = vector.broadcast %163 : f32 to vector<8x256xf32>
    %165 = arith.mulf %25, %164 : vector<8x256xf32>
    %166 = arith.addf %162, %165 : vector<8x256xf32>
    %c4_63 = arith.constant 4 : index
    %167 = memref.load %arg3[%c4_63] : memref<32xf32, #tpu.memory_space<smem>>
    %168 = vector.broadcast %167 : f32 to vector<8x256xf32>
    %169 = arith.addf %166, %168 : vector<8x256xf32>
    %cst_64 = arith.constant 9.99999997E-7 : f32
    %170 = vector.broadcast %cst_64 : f32 to vector<8x256xf32>
    %171 = arith.maximumf %169, %170 : vector<8x256xf32>
    %172 = arith.mulf %171, %171 : vector<8x256xf32>
    %173 = arith.mulf %172, %171 : vector<8x256xf32>
    %cst_65 = arith.constant dense<0.000000e+00> : vector<8xf32>
    %174 = vector.multi_reduction <add>, %173, %cst_65 [1] : vector<8x256xf32> to vector<8xf32>
    %175 = vector.shape_cast %174 : vector<8xf32> to vector<8x1xf32>
    %cst_66 = arith.constant 2.560000e+02 : f32
    %176 = vector.broadcast %cst_66 : f32 to vector<8x1xf32>
    %177 = arith.divf %175, %176 : vector<8x1xf32>
    %c4_i32 = arith.constant 4 : i32
    %178 = vector.broadcast %c4_i32 : i32 to vector<8x32xi32>
    %179 = arith.cmpi eq, %26, %178 : vector<8x32xi32>
    %180 = vector.shape_cast %177 : vector<8x1xf32> to vector<8x1xf32>
    %181 = vector.broadcast %180 : vector<8x1xf32> to vector<8x32xf32>
    %182 = arith.select %179, %181, %151 : vector<8x32xi1>, vector<8x32xf32>
    %c0_67 = arith.constant 0 : index
    %c5 = arith.constant 5 : index
    %183 = memref.load %arg2[%c0_67, %c5] : memref<4x32xf32, #tpu.memory_space<smem>>
    %184 = vector.broadcast %183 : f32 to vector<8x256xf32>
    %185 = arith.mulf %7, %184 : vector<8x256xf32>
    %c1_68 = arith.constant 1 : index
    %c5_69 = arith.constant 5 : index
    %186 = memref.load %arg2[%c1_68, %c5_69] : memref<4x32xf32, #tpu.memory_space<smem>>
    %187 = vector.broadcast %186 : f32 to vector<8x256xf32>
    %188 = arith.mulf %13, %187 : vector<8x256xf32>
    %189 = arith.addf %185, %188 : vector<8x256xf32>
    %c2_70 = arith.constant 2 : index
    %c5_71 = arith.constant 5 : index
    %190 = memref.load %arg2[%c2_70, %c5_71] : memref<4x32xf32, #tpu.memory_space<smem>>
    %191 = vector.broadcast %190 : f32 to vector<8x256xf32>
    %192 = arith.mulf %19, %191 : vector<8x256xf32>
    %193 = arith.addf %189, %192 : vector<8x256xf32>
    %c3_72 = arith.constant 3 : index
    %c5_73 = arith.constant 5 : index
    %194 = memref.load %arg2[%c3_72, %c5_73] : memref<4x32xf32, #tpu.memory_space<smem>>
    %195 = vector.broadcast %194 : f32 to vector<8x256xf32>
    %196 = arith.mulf %25, %195 : vector<8x256xf32>
    %197 = arith.addf %193, %196 : vector<8x256xf32>
    %c5_74 = arith.constant 5 : index
    %198 = memref.load %arg3[%c5_74] : memref<32xf32, #tpu.memory_space<smem>>
    %199 = vector.broadcast %198 : f32 to vector<8x256xf32>
    %200 = arith.addf %197, %199 : vector<8x256xf32>
    %cst_75 = arith.constant 9.99999997E-7 : f32
    %201 = vector.broadcast %cst_75 : f32 to vector<8x256xf32>
    %202 = arith.maximumf %200, %201 : vector<8x256xf32>
    %203 = arith.mulf %202, %202 : vector<8x256xf32>
    %204 = arith.mulf %203, %202 : vector<8x256xf32>
    %cst_76 = arith.constant dense<0.000000e+00> : vector<8xf32>
    %205 = vector.multi_reduction <add>, %204, %cst_76 [1] : vector<8x256xf32> to vector<8xf32>
    %206 = vector.shape_cast %205 : vector<8xf32> to vector<8x1xf32>
    %cst_77 = arith.constant 2.560000e+02 : f32
    %207 = vector.broadcast %cst_77 : f32 to vector<8x1xf32>
    %208 = arith.divf %206, %207 : vector<8x1xf32>
    %c5_i32 = arith.constant 5 : i32
    %209 = vector.broadcast %c5_i32 : i32 to vector<8x32xi32>
    %210 = arith.cmpi eq, %26, %209 : vector<8x32xi32>
    %211 = vector.shape_cast %208 : vector<8x1xf32> to vector<8x1xf32>
    %212 = vector.broadcast %211 : vector<8x1xf32> to vector<8x32xf32>
    %213 = arith.select %210, %212, %182 : vector<8x32xi1>, vector<8x32xf32>
    %c0_78 = arith.constant 0 : index
    %c6 = arith.constant 6 : index
    %214 = memref.load %arg2[%c0_78, %c6] : memref<4x32xf32, #tpu.memory_space<smem>>
    %215 = vector.broadcast %214 : f32 to vector<8x256xf32>
    %216 = arith.mulf %7, %215 : vector<8x256xf32>
    %c1_79 = arith.constant 1 : index
    %c6_80 = arith.constant 6 : index
    %217 = memref.load %arg2[%c1_79, %c6_80] : memref<4x32xf32, #tpu.memory_space<smem>>
    %218 = vector.broadcast %217 : f32 to vector<8x256xf32>
    %219 = arith.mulf %13, %218 : vector<8x256xf32>
    %220 = arith.addf %216, %219 : vector<8x256xf32>
    %c2_81 = arith.constant 2 : index
    %c6_82 = arith.constant 6 : index
    %221 = memref.load %arg2[%c2_81, %c6_82] : memref<4x32xf32, #tpu.memory_space<smem>>
    %222 = vector.broadcast %221 : f32 to vector<8x256xf32>
    %223 = arith.mulf %19, %222 : vector<8x256xf32>
    %224 = arith.addf %220, %223 : vector<8x256xf32>
    %c3_83 = arith.constant 3 : index
    %c6_84 = arith.constant 6 : index
    %225 = memref.load %arg2[%c3_83, %c6_84] : memref<4x32xf32, #tpu.memory_space<smem>>
    %226 = vector.broadcast %225 : f32 to vector<8x256xf32>
    %227 = arith.mulf %25, %226 : vector<8x256xf32>
    %228 = arith.addf %224, %227 : vector<8x256xf32>
    %c6_85 = arith.constant 6 : index
    %229 = memref.load %arg3[%c6_85] : memref<32xf32, #tpu.memory_space<smem>>
    %230 = vector.broadcast %229 : f32 to vector<8x256xf32>
    %231 = arith.addf %228, %230 : vector<8x256xf32>
    %cst_86 = arith.constant 9.99999997E-7 : f32
    %232 = vector.broadcast %cst_86 : f32 to vector<8x256xf32>
    %233 = arith.maximumf %231, %232 : vector<8x256xf32>
    %234 = arith.mulf %233, %233 : vector<8x256xf32>
    %235 = arith.mulf %234, %233 : vector<8x256xf32>
    %cst_87 = arith.constant dense<0.000000e+00> : vector<8xf32>
    %236 = vector.multi_reduction <add>, %235, %cst_87 [1] : vector<8x256xf32> to vector<8xf32>
    %237 = vector.shape_cast %236 : vector<8xf32> to vector<8x1xf32>
    %cst_88 = arith.constant 2.560000e+02 : f32
    %238 = vector.broadcast %cst_88 : f32 to vector<8x1xf32>
    %239 = arith.divf %237, %238 : vector<8x1xf32>
    %c6_i32 = arith.constant 6 : i32
    %240 = vector.broadcast %c6_i32 : i32 to vector<8x32xi32>
    %241 = arith.cmpi eq, %26, %240 : vector<8x32xi32>
    %242 = vector.shape_cast %239 : vector<8x1xf32> to vector<8x1xf32>
    %243 = vector.broadcast %242 : vector<8x1xf32> to vector<8x32xf32>
    %244 = arith.select %241, %243, %213 : vector<8x32xi1>, vector<8x32xf32>
    %c0_89 = arith.constant 0 : index
    %c7 = arith.constant 7 : index
    %245 = memref.load %arg2[%c0_89, %c7] : memref<4x32xf32, #tpu.memory_space<smem>>
    %246 = vector.broadcast %245 : f32 to vector<8x256xf32>
    %247 = arith.mulf %7, %246 : vector<8x256xf32>
    %c1_90 = arith.constant 1 : index
    %c7_91 = arith.constant 7 : index
    %248 = memref.load %arg2[%c1_90, %c7_91] : memref<4x32xf32, #tpu.memory_space<smem>>
    %249 = vector.broadcast %248 : f32 to vector<8x256xf32>
    %250 = arith.mulf %13, %249 : vector<8x256xf32>
    %251 = arith.addf %247, %250 : vector<8x256xf32>
    %c2_92 = arith.constant 2 : index
    %c7_93 = arith.constant 7 : index
    %252 = memref.load %arg2[%c2_92, %c7_93] : memref<4x32xf32, #tpu.memory_space<smem>>
    %253 = vector.broadcast %252 : f32 to vector<8x256xf32>
    %254 = arith.mulf %19, %253 : vector<8x256xf32>
    %255 = arith.addf %251, %254 : vector<8x256xf32>
    %c3_94 = arith.constant 3 : index
    %c7_95 = arith.constant 7 : index
    %256 = memref.load %arg2[%c3_94, %c7_95] : memref<4x32xf32, #tpu.memory_space<smem>>
    %257 = vector.broadcast %256 : f32 to vector<8x256xf32>
    %258 = arith.mulf %25, %257 : vector<8x256xf32>
    %259 = arith.addf %255, %258 : vector<8x256xf32>
    %c7_96 = arith.constant 7 : index
    %260 = memref.load %arg3[%c7_96] : memref<32xf32, #tpu.memory_space<smem>>
    %261 = vector.broadcast %260 : f32 to vector<8x256xf32>
    %262 = arith.addf %259, %261 : vector<8x256xf32>
    %cst_97 = arith.constant 9.99999997E-7 : f32
    %263 = vector.broadcast %cst_97 : f32 to vector<8x256xf32>
    %264 = arith.maximumf %262, %263 : vector<8x256xf32>
    %265 = arith.mulf %264, %264 : vector<8x256xf32>
    %266 = arith.mulf %265, %264 : vector<8x256xf32>
    %cst_98 = arith.constant dense<0.000000e+00> : vector<8xf32>
    %267 = vector.multi_reduction <add>, %266, %cst_98 [1] : vector<8x256xf32> to vector<8xf32>
    %268 = vector.shape_cast %267 : vector<8xf32> to vector<8x1xf32>
    %cst_99 = arith.constant 2.560000e+02 : f32
    %269 = vector.broadcast %cst_99 : f32 to vector<8x1xf32>
    %270 = arith.divf %268, %269 : vector<8x1xf32>
    %c7_i32 = arith.constant 7 : i32
    %271 = vector.broadcast %c7_i32 : i32 to vector<8x32xi32>
    %272 = arith.cmpi eq, %26, %271 : vector<8x32xi32>
    %273 = vector.shape_cast %270 : vector<8x1xf32> to vector<8x1xf32>
    %274 = vector.broadcast %273 : vector<8x1xf32> to vector<8x32xf32>
    %275 = arith.select %272, %274, %244 : vector<8x32xi1>, vector<8x32xf32>
    %c0_100 = arith.constant 0 : index
    %c8 = arith.constant 8 : index
    %276 = memref.load %arg2[%c0_100, %c8] : memref<4x32xf32, #tpu.memory_space<smem>>
    %277 = vector.broadcast %276 : f32 to vector<8x256xf32>
    %278 = arith.mulf %7, %277 : vector<8x256xf32>
    %c1_101 = arith.constant 1 : index
    %c8_102 = arith.constant 8 : index
    %279 = memref.load %arg2[%c1_101, %c8_102] : memref<4x32xf32, #tpu.memory_space<smem>>
    %280 = vector.broadcast %279 : f32 to vector<8x256xf32>
    %281 = arith.mulf %13, %280 : vector<8x256xf32>
    %282 = arith.addf %278, %281 : vector<8x256xf32>
    %c2_103 = arith.constant 2 : index
    %c8_104 = arith.constant 8 : index
    %283 = memref.load %arg2[%c2_103, %c8_104] : memref<4x32xf32, #tpu.memory_space<smem>>
    %284 = vector.broadcast %283 : f32 to vector<8x256xf32>
    %285 = arith.mulf %19, %284 : vector<8x256xf32>
    %286 = arith.addf %282, %285 : vector<8x256xf32>
    %c3_105 = arith.constant 3 : index
    %c8_106 = arith.constant 8 : index
    %287 = memref.load %arg2[%c3_105, %c8_106] : memref<4x32xf32, #tpu.memory_space<smem>>
    %288 = vector.broadcast %287 : f32 to vector<8x256xf32>
    %289 = arith.mulf %25, %288 : vector<8x256xf32>
    %290 = arith.addf %286, %289 : vector<8x256xf32>
    %c8_107 = arith.constant 8 : index
    %291 = memref.load %arg3[%c8_107] : memref<32xf32, #tpu.memory_space<smem>>
    %292 = vector.broadcast %291 : f32 to vector<8x256xf32>
    %293 = arith.addf %290, %292 : vector<8x256xf32>
    %cst_108 = arith.constant 9.99999997E-7 : f32
    %294 = vector.broadcast %cst_108 : f32 to vector<8x256xf32>
    %295 = arith.maximumf %293, %294 : vector<8x256xf32>
    %296 = arith.mulf %295, %295 : vector<8x256xf32>
    %297 = arith.mulf %296, %295 : vector<8x256xf32>
    %cst_109 = arith.constant dense<0.000000e+00> : vector<8xf32>
    %298 = vector.multi_reduction <add>, %297, %cst_109 [1] : vector<8x256xf32> to vector<8xf32>
    %299 = vector.shape_cast %298 : vector<8xf32> to vector<8x1xf32>
    %cst_110 = arith.constant 2.560000e+02 : f32
    %300 = vector.broadcast %cst_110 : f32 to vector<8x1xf32>
    %301 = arith.divf %299, %300 : vector<8x1xf32>
    %c8_i32 = arith.constant 8 : i32
    %302 = vector.broadcast %c8_i32 : i32 to vector<8x32xi32>
    %303 = arith.cmpi eq, %26, %302 : vector<8x32xi32>
    %304 = vector.shape_cast %301 : vector<8x1xf32> to vector<8x1xf32>
    %305 = vector.broadcast %304 : vector<8x1xf32> to vector<8x32xf32>
    %306 = arith.select %303, %305, %275 : vector<8x32xi1>, vector<8x32xf32>
    %c0_111 = arith.constant 0 : index
    %c9 = arith.constant 9 : index
    %307 = memref.load %arg2[%c0_111, %c9] : memref<4x32xf32, #tpu.memory_space<smem>>
    %308 = vector.broadcast %307 : f32 to vector<8x256xf32>
    %309 = arith.mulf %7, %308 : vector<8x256xf32>
    %c1_112 = arith.constant 1 : index
    %c9_113 = arith.constant 9 : index
    %310 = memref.load %arg2[%c1_112, %c9_113] : memref<4x32xf32, #tpu.memory_space<smem>>
    %311 = vector.broadcast %310 : f32 to vector<8x256xf32>
    %312 = arith.mulf %13, %311 : vector<8x256xf32>
    %313 = arith.addf %309, %312 : vector<8x256xf32>
    %c2_114 = arith.constant 2 : index
    %c9_115 = arith.constant 9 : index
    %314 = memref.load %arg2[%c2_114, %c9_115] : memref<4x32xf32, #tpu.memory_space<smem>>
    %315 = vector.broadcast %314 : f32 to vector<8x256xf32>
    %316 = arith.mulf %19, %315 : vector<8x256xf32>
    %317 = arith.addf %313, %316 : vector<8x256xf32>
    %c3_116 = arith.constant 3 : index
    %c9_117 = arith.constant 9 : index
    %318 = memref.load %arg2[%c3_116, %c9_117] : memref<4x32xf32, #tpu.memory_space<smem>>
    %319 = vector.broadcast %318 : f32 to vector<8x256xf32>
    %320 = arith.mulf %25, %319 : vector<8x256xf32>
    %321 = arith.addf %317, %320 : vector<8x256xf32>
    %c9_118 = arith.constant 9 : index
    %322 = memref.load %arg3[%c9_118] : memref<32xf32, #tpu.memory_space<smem>>
    %323 = vector.broadcast %322 : f32 to vector<8x256xf32>
    %324 = arith.addf %321, %323 : vector<8x256xf32>
    %cst_119 = arith.constant 9.99999997E-7 : f32
    %325 = vector.broadcast %cst_119 : f32 to vector<8x256xf32>
    %326 = arith.maximumf %324, %325 : vector<8x256xf32>
    %327 = arith.mulf %326, %326 : vector<8x256xf32>
    %328 = arith.mulf %327, %326 : vector<8x256xf32>
    %cst_120 = arith.constant dense<0.000000e+00> : vector<8xf32>
    %329 = vector.multi_reduction <add>, %328, %cst_120 [1] : vector<8x256xf32> to vector<8xf32>
    %330 = vector.shape_cast %329 : vector<8xf32> to vector<8x1xf32>
    %cst_121 = arith.constant 2.560000e+02 : f32
    %331 = vector.broadcast %cst_121 : f32 to vector<8x1xf32>
    %332 = arith.divf %330, %331 : vector<8x1xf32>
    %c9_i32 = arith.constant 9 : i32
    %333 = vector.broadcast %c9_i32 : i32 to vector<8x32xi32>
    %334 = arith.cmpi eq, %26, %333 : vector<8x32xi32>
    %335 = vector.shape_cast %332 : vector<8x1xf32> to vector<8x1xf32>
    %336 = vector.broadcast %335 : vector<8x1xf32> to vector<8x32xf32>
    %337 = arith.select %334, %336, %306 : vector<8x32xi1>, vector<8x32xf32>
    %c0_122 = arith.constant 0 : index
    %c10 = arith.constant 10 : index
    %338 = memref.load %arg2[%c0_122, %c10] : memref<4x32xf32, #tpu.memory_space<smem>>
    %339 = vector.broadcast %338 : f32 to vector<8x256xf32>
    %340 = arith.mulf %7, %339 : vector<8x256xf32>
    %c1_123 = arith.constant 1 : index
    %c10_124 = arith.constant 10 : index
    %341 = memref.load %arg2[%c1_123, %c10_124] : memref<4x32xf32, #tpu.memory_space<smem>>
    %342 = vector.broadcast %341 : f32 to vector<8x256xf32>
    %343 = arith.mulf %13, %342 : vector<8x256xf32>
    %344 = arith.addf %340, %343 : vector<8x256xf32>
    %c2_125 = arith.constant 2 : index
    %c10_126 = arith.constant 10 : index
    %345 = memref.load %arg2[%c2_125, %c10_126] : memref<4x32xf32, #tpu.memory_space<smem>>
    %346 = vector.broadcast %345 : f32 to vector<8x256xf32>
    %347 = arith.mulf %19, %346 : vector<8x256xf32>
    %348 = arith.addf %344, %347 : vector<8x256xf32>
    %c3_127 = arith.constant 3 : index
    %c10_128 = arith.constant 10 : index
    %349 = memref.load %arg2[%c3_127, %c10_128] : memref<4x32xf32, #tpu.memory_space<smem>>
    %350 = vector.broadcast %349 : f32 to vector<8x256xf32>
    %351 = arith.mulf %25, %350 : vector<8x256xf32>
    %352 = arith.addf %348, %351 : vector<8x256xf32>
    %c10_129 = arith.constant 10 : index
    %353 = memref.load %arg3[%c10_129] : memref<32xf32, #tpu.memory_space<smem>>
    %354 = vector.broadcast %353 : f32 to vector<8x256xf32>
    %355 = arith.addf %352, %354 : vector<8x256xf32>
    %cst_130 = arith.constant 9.99999997E-7 : f32
    %356 = vector.broadcast %cst_130 : f32 to vector<8x256xf32>
    %357 = arith.maximumf %355, %356 : vector<8x256xf32>
    %358 = arith.mulf %357, %357 : vector<8x256xf32>
    %359 = arith.mulf %358, %357 : vector<8x256xf32>
    %cst_131 = arith.constant dense<0.000000e+00> : vector<8xf32>
    %360 = vector.multi_reduction <add>, %359, %cst_131 [1] : vector<8x256xf32> to vector<8xf32>
    %361 = vector.shape_cast %360 : vector<8xf32> to vector<8x1xf32>
    %cst_132 = arith.constant 2.560000e+02 : f32
    %362 = vector.broadcast %cst_132 : f32 to vector<8x1xf32>
    %363 = arith.divf %361, %362 : vector<8x1xf32>
    %c10_i32 = arith.constant 10 : i32
    %364 = vector.broadcast %c10_i32 : i32 to vector<8x32xi32>
    %365 = arith.cmpi eq, %26, %364 : vector<8x32xi32>
    %366 = vector.shape_cast %363 : vector<8x1xf32> to vector<8x1xf32>
    %367 = vector.broadcast %366 : vector<8x1xf32> to vector<8x32xf32>
    %368 = arith.select %365, %367, %337 : vector<8x32xi1>, vector<8x32xf32>
    %c0_133 = arith.constant 0 : index
    %c11 = arith.constant 11 : index
    %369 = memref.load %arg2[%c0_133, %c11] : memref<4x32xf32, #tpu.memory_space<smem>>
    %370 = vector.broadcast %369 : f32 to vector<8x256xf32>
    %371 = arith.mulf %7, %370 : vector<8x256xf32>
    %c1_134 = arith.constant 1 : index
    %c11_135 = arith.constant 11 : index
    %372 = memref.load %arg2[%c1_134, %c11_135] : memref<4x32xf32, #tpu.memory_space<smem>>
    %373 = vector.broadcast %372 : f32 to vector<8x256xf32>
    %374 = arith.mulf %13, %373 : vector<8x256xf32>
    %375 = arith.addf %371, %374 : vector<8x256xf32>
    %c2_136 = arith.constant 2 : index
    %c11_137 = arith.constant 11 : index
    %376 = memref.load %arg2[%c2_136, %c11_137] : memref<4x32xf32, #tpu.memory_space<smem>>
    %377 = vector.broadcast %376 : f32 to vector<8x256xf32>
    %378 = arith.mulf %19, %377 : vector<8x256xf32>
    %379 = arith.addf %375, %378 : vector<8x256xf32>
    %c3_138 = arith.constant 3 : index
    %c11_139 = arith.constant 11 : index
    %380 = memref.load %arg2[%c3_138, %c11_139] : memref<4x32xf32, #tpu.memory_space<smem>>
    %381 = vector.broadcast %380 : f32 to vector<8x256xf32>
    %382 = arith.mulf %25, %381 : vector<8x256xf32>
    %383 = arith.addf %379, %382 : vector<8x256xf32>
    %c11_140 = arith.constant 11 : index
    %384 = memref.load %arg3[%c11_140] : memref<32xf32, #tpu.memory_space<smem>>
    %385 = vector.broadcast %384 : f32 to vector<8x256xf32>
    %386 = arith.addf %383, %385 : vector<8x256xf32>
    %cst_141 = arith.constant 9.99999997E-7 : f32
    %387 = vector.broadcast %cst_141 : f32 to vector<8x256xf32>
    %388 = arith.maximumf %386, %387 : vector<8x256xf32>
    %389 = arith.mulf %388, %388 : vector<8x256xf32>
    %390 = arith.mulf %389, %388 : vector<8x256xf32>
    %cst_142 = arith.constant dense<0.000000e+00> : vector<8xf32>
    %391 = vector.multi_reduction <add>, %390, %cst_142 [1] : vector<8x256xf32> to vector<8xf32>
    %392 = vector.shape_cast %391 : vector<8xf32> to vector<8x1xf32>
    %cst_143 = arith.constant 2.560000e+02 : f32
    %393 = vector.broadcast %cst_143 : f32 to vector<8x1xf32>
    %394 = arith.divf %392, %393 : vector<8x1xf32>
    %c11_i32 = arith.constant 11 : i32
    %395 = vector.broadcast %c11_i32 : i32 to vector<8x32xi32>
    %396 = arith.cmpi eq, %26, %395 : vector<8x32xi32>
    %397 = vector.shape_cast %394 : vector<8x1xf32> to vector<8x1xf32>
    %398 = vector.broadcast %397 : vector<8x1xf32> to vector<8x32xf32>
    %399 = arith.select %396, %398, %368 : vector<8x32xi1>, vector<8x32xf32>
    %c0_144 = arith.constant 0 : index
    %c12 = arith.constant 12 : index
    %400 = memref.load %arg2[%c0_144, %c12] : memref<4x32xf32, #tpu.memory_space<smem>>
    %401 = vector.broadcast %400 : f32 to vector<8x256xf32>
    %402 = arith.mulf %7, %401 : vector<8x256xf32>
    %c1_145 = arith.constant 1 : index
    %c12_146 = arith.constant 12 : index
    %403 = memref.load %arg2[%c1_145, %c12_146] : memref<4x32xf32, #tpu.memory_space<smem>>
    %404 = vector.broadcast %403 : f32 to vector<8x256xf32>
    %405 = arith.mulf %13, %404 : vector<8x256xf32>
    %406 = arith.addf %402, %405 : vector<8x256xf32>
    %c2_147 = arith.constant 2 : index
    %c12_148 = arith.constant 12 : index
    %407 = memref.load %arg2[%c2_147, %c12_148] : memref<4x32xf32, #tpu.memory_space<smem>>
    %408 = vector.broadcast %407 : f32 to vector<8x256xf32>
    %409 = arith.mulf %19, %408 : vector<8x256xf32>
    %410 = arith.addf %406, %409 : vector<8x256xf32>
    %c3_149 = arith.constant 3 : index
    %c12_150 = arith.constant 12 : index
    %411 = memref.load %arg2[%c3_149, %c12_150] : memref<4x32xf32, #tpu.memory_space<smem>>
    %412 = vector.broadcast %411 : f32 to vector<8x256xf32>
    %413 = arith.mulf %25, %412 : vector<8x256xf32>
    %414 = arith.addf %410, %413 : vector<8x256xf32>
    %c12_151 = arith.constant 12 : index
    %415 = memref.load %arg3[%c12_151] : memref<32xf32, #tpu.memory_space<smem>>
    %416 = vector.broadcast %415 : f32 to vector<8x256xf32>
    %417 = arith.addf %414, %416 : vector<8x256xf32>
    %cst_152 = arith.constant 9.99999997E-7 : f32
    %418 = vector.broadcast %cst_152 : f32 to vector<8x256xf32>
    %419 = arith.maximumf %417, %418 : vector<8x256xf32>
    %420 = arith.mulf %419, %419 : vector<8x256xf32>
    %421 = arith.mulf %420, %419 : vector<8x256xf32>
    %cst_153 = arith.constant dense<0.000000e+00> : vector<8xf32>
    %422 = vector.multi_reduction <add>, %421, %cst_153 [1] : vector<8x256xf32> to vector<8xf32>
    %423 = vector.shape_cast %422 : vector<8xf32> to vector<8x1xf32>
    %cst_154 = arith.constant 2.560000e+02 : f32
    %424 = vector.broadcast %cst_154 : f32 to vector<8x1xf32>
    %425 = arith.divf %423, %424 : vector<8x1xf32>
    %c12_i32 = arith.constant 12 : i32
    %426 = vector.broadcast %c12_i32 : i32 to vector<8x32xi32>
    %427 = arith.cmpi eq, %26, %426 : vector<8x32xi32>
    %428 = vector.shape_cast %425 : vector<8x1xf32> to vector<8x1xf32>
    %429 = vector.broadcast %428 : vector<8x1xf32> to vector<8x32xf32>
    %430 = arith.select %427, %429, %399 : vector<8x32xi1>, vector<8x32xf32>
    %c0_155 = arith.constant 0 : index
    %c13 = arith.constant 13 : index
    %431 = memref.load %arg2[%c0_155, %c13] : memref<4x32xf32, #tpu.memory_space<smem>>
    %432 = vector.broadcast %431 : f32 to vector<8x256xf32>
    %433 = arith.mulf %7, %432 : vector<8x256xf32>
    %c1_156 = arith.constant 1 : index
    %c13_157 = arith.constant 13 : index
    %434 = memref.load %arg2[%c1_156, %c13_157] : memref<4x32xf32, #tpu.memory_space<smem>>
    %435 = vector.broadcast %434 : f32 to vector<8x256xf32>
    %436 = arith.mulf %13, %435 : vector<8x256xf32>
    %437 = arith.addf %433, %436 : vector<8x256xf32>
    %c2_158 = arith.constant 2 : index
    %c13_159 = arith.constant 13 : index
    %438 = memref.load %arg2[%c2_158, %c13_159] : memref<4x32xf32, #tpu.memory_space<smem>>
    %439 = vector.broadcast %438 : f32 to vector<8x256xf32>
    %440 = arith.mulf %19, %439 : vector<8x256xf32>
    %441 = arith.addf %437, %440 : vector<8x256xf32>
    %c3_160 = arith.constant 3 : index
    %c13_161 = arith.constant 13 : index
    %442 = memref.load %arg2[%c3_160, %c13_161] : memref<4x32xf32, #tpu.memory_space<smem>>
    %443 = vector.broadcast %442 : f32 to vector<8x256xf32>
    %444 = arith.mulf %25, %443 : vector<8x256xf32>
    %445 = arith.addf %441, %444 : vector<8x256xf32>
    %c13_162 = arith.constant 13 : index
    %446 = memref.load %arg3[%c13_162] : memref<32xf32, #tpu.memory_space<smem>>
    %447 = vector.broadcast %446 : f32 to vector<8x256xf32>
    %448 = arith.addf %445, %447 : vector<8x256xf32>
    %cst_163 = arith.constant 9.99999997E-7 : f32
    %449 = vector.broadcast %cst_163 : f32 to vector<8x256xf32>
    %450 = arith.maximumf %448, %449 : vector<8x256xf32>
    %451 = arith.mulf %450, %450 : vector<8x256xf32>
    %452 = arith.mulf %451, %450 : vector<8x256xf32>
    %cst_164 = arith.constant dense<0.000000e+00> : vector<8xf32>
    %453 = vector.multi_reduction <add>, %452, %cst_164 [1] : vector<8x256xf32> to vector<8xf32>
    %454 = vector.shape_cast %453 : vector<8xf32> to vector<8x1xf32>
    %cst_165 = arith.constant 2.560000e+02 : f32
    %455 = vector.broadcast %cst_165 : f32 to vector<8x1xf32>
    %456 = arith.divf %454, %455 : vector<8x1xf32>
    %c13_i32 = arith.constant 13 : i32
    %457 = vector.broadcast %c13_i32 : i32 to vector<8x32xi32>
    %458 = arith.cmpi eq, %26, %457 : vector<8x32xi32>
    %459 = vector.shape_cast %456 : vector<8x1xf32> to vector<8x1xf32>
    %460 = vector.broadcast %459 : vector<8x1xf32> to vector<8x32xf32>
    %461 = arith.select %458, %460, %430 : vector<8x32xi1>, vector<8x32xf32>
    %c0_166 = arith.constant 0 : index
    %c14 = arith.constant 14 : index
    %462 = memref.load %arg2[%c0_166, %c14] : memref<4x32xf32, #tpu.memory_space<smem>>
    %463 = vector.broadcast %462 : f32 to vector<8x256xf32>
    %464 = arith.mulf %7, %463 : vector<8x256xf32>
    %c1_167 = arith.constant 1 : index
    %c14_168 = arith.constant 14 : index
    %465 = memref.load %arg2[%c1_167, %c14_168] : memref<4x32xf32, #tpu.memory_space<smem>>
    %466 = vector.broadcast %465 : f32 to vector<8x256xf32>
    %467 = arith.mulf %13, %466 : vector<8x256xf32>
    %468 = arith.addf %464, %467 : vector<8x256xf32>
    %c2_169 = arith.constant 2 : index
    %c14_170 = arith.constant 14 : index
    %469 = memref.load %arg2[%c2_169, %c14_170] : memref<4x32xf32, #tpu.memory_space<smem>>
    %470 = vector.broadcast %469 : f32 to vector<8x256xf32>
    %471 = arith.mulf %19, %470 : vector<8x256xf32>
    %472 = arith.addf %468, %471 : vector<8x256xf32>
    %c3_171 = arith.constant 3 : index
    %c14_172 = arith.constant 14 : index
    %473 = memref.load %arg2[%c3_171, %c14_172] : memref<4x32xf32, #tpu.memory_space<smem>>
    %474 = vector.broadcast %473 : f32 to vector<8x256xf32>
    %475 = arith.mulf %25, %474 : vector<8x256xf32>
    %476 = arith.addf %472, %475 : vector<8x256xf32>
    %c14_173 = arith.constant 14 : index
    %477 = memref.load %arg3[%c14_173] : memref<32xf32, #tpu.memory_space<smem>>
    %478 = vector.broadcast %477 : f32 to vector<8x256xf32>
    %479 = arith.addf %476, %478 : vector<8x256xf32>
    %cst_174 = arith.constant 9.99999997E-7 : f32
    %480 = vector.broadcast %cst_174 : f32 to vector<8x256xf32>
    %481 = arith.maximumf %479, %480 : vector<8x256xf32>
    %482 = arith.mulf %481, %481 : vector<8x256xf32>
    %483 = arith.mulf %482, %481 : vector<8x256xf32>
    %cst_175 = arith.constant dense<0.000000e+00> : vector<8xf32>
    %484 = vector.multi_reduction <add>, %483, %cst_175 [1] : vector<8x256xf32> to vector<8xf32>
    %485 = vector.shape_cast %484 : vector<8xf32> to vector<8x1xf32>
    %cst_176 = arith.constant 2.560000e+02 : f32
    %486 = vector.broadcast %cst_176 : f32 to vector<8x1xf32>
    %487 = arith.divf %485, %486 : vector<8x1xf32>
    %c14_i32 = arith.constant 14 : i32
    %488 = vector.broadcast %c14_i32 : i32 to vector<8x32xi32>
    %489 = arith.cmpi eq, %26, %488 : vector<8x32xi32>
    %490 = vector.shape_cast %487 : vector<8x1xf32> to vector<8x1xf32>
    %491 = vector.broadcast %490 : vector<8x1xf32> to vector<8x32xf32>
    %492 = arith.select %489, %491, %461 : vector<8x32xi1>, vector<8x32xf32>
    %c0_177 = arith.constant 0 : index
    %c15 = arith.constant 15 : index
    %493 = memref.load %arg2[%c0_177, %c15] : memref<4x32xf32, #tpu.memory_space<smem>>
    %494 = vector.broadcast %493 : f32 to vector<8x256xf32>
    %495 = arith.mulf %7, %494 : vector<8x256xf32>
    %c1_178 = arith.constant 1 : index
    %c15_179 = arith.constant 15 : index
    %496 = memref.load %arg2[%c1_178, %c15_179] : memref<4x32xf32, #tpu.memory_space<smem>>
    %497 = vector.broadcast %496 : f32 to vector<8x256xf32>
    %498 = arith.mulf %13, %497 : vector<8x256xf32>
    %499 = arith.addf %495, %498 : vector<8x256xf32>
    %c2_180 = arith.constant 2 : index
    %c15_181 = arith.constant 15 : index
    %500 = memref.load %arg2[%c2_180, %c15_181] : memref<4x32xf32, #tpu.memory_space<smem>>
    %501 = vector.broadcast %500 : f32 to vector<8x256xf32>
    %502 = arith.mulf %19, %501 : vector<8x256xf32>
    %503 = arith.addf %499, %502 : vector<8x256xf32>
    %c3_182 = arith.constant 3 : index
    %c15_183 = arith.constant 15 : index
    %504 = memref.load %arg2[%c3_182, %c15_183] : memref<4x32xf32, #tpu.memory_space<smem>>
    %505 = vector.broadcast %504 : f32 to vector<8x256xf32>
    %506 = arith.mulf %25, %505 : vector<8x256xf32>
    %507 = arith.addf %503, %506 : vector<8x256xf32>
    %c15_184 = arith.constant 15 : index
    %508 = memref.load %arg3[%c15_184] : memref<32xf32, #tpu.memory_space<smem>>
    %509 = vector.broadcast %508 : f32 to vector<8x256xf32>
    %510 = arith.addf %507, %509 : vector<8x256xf32>
    %cst_185 = arith.constant 9.99999997E-7 : f32
    %511 = vector.broadcast %cst_185 : f32 to vector<8x256xf32>
    %512 = arith.maximumf %510, %511 : vector<8x256xf32>
    %513 = arith.mulf %512, %512 : vector<8x256xf32>
    %514 = arith.mulf %513, %512 : vector<8x256xf32>
    %cst_186 = arith.constant dense<0.000000e+00> : vector<8xf32>
    %515 = vector.multi_reduction <add>, %514, %cst_186 [1] : vector<8x256xf32> to vector<8xf32>
    %516 = vector.shape_cast %515 : vector<8xf32> to vector<8x1xf32>
    %cst_187 = arith.constant 2.560000e+02 : f32
    %517 = vector.broadcast %cst_187 : f32 to vector<8x1xf32>
    %518 = arith.divf %516, %517 : vector<8x1xf32>
    %c15_i32 = arith.constant 15 : i32
    %519 = vector.broadcast %c15_i32 : i32 to vector<8x32xi32>
    %520 = arith.cmpi eq, %26, %519 : vector<8x32xi32>
    %521 = vector.shape_cast %518 : vector<8x1xf32> to vector<8x1xf32>
    %522 = vector.broadcast %521 : vector<8x1xf32> to vector<8x32xf32>
    %523 = arith.select %520, %522, %492 : vector<8x32xi1>, vector<8x32xf32>
    %c0_188 = arith.constant 0 : index
    %c16 = arith.constant 16 : index
    %524 = memref.load %arg2[%c0_188, %c16] : memref<4x32xf32, #tpu.memory_space<smem>>
    %525 = vector.broadcast %524 : f32 to vector<8x256xf32>
    %526 = arith.mulf %7, %525 : vector<8x256xf32>
    %c1_189 = arith.constant 1 : index
    %c16_190 = arith.constant 16 : index
    %527 = memref.load %arg2[%c1_189, %c16_190] : memref<4x32xf32, #tpu.memory_space<smem>>
    %528 = vector.broadcast %527 : f32 to vector<8x256xf32>
    %529 = arith.mulf %13, %528 : vector<8x256xf32>
    %530 = arith.addf %526, %529 : vector<8x256xf32>
    %c2_191 = arith.constant 2 : index
    %c16_192 = arith.constant 16 : index
    %531 = memref.load %arg2[%c2_191, %c16_192] : memref<4x32xf32, #tpu.memory_space<smem>>
    %532 = vector.broadcast %531 : f32 to vector<8x256xf32>
    %533 = arith.mulf %19, %532 : vector<8x256xf32>
    %534 = arith.addf %530, %533 : vector<8x256xf32>
    %c3_193 = arith.constant 3 : index
    %c16_194 = arith.constant 16 : index
    %535 = memref.load %arg2[%c3_193, %c16_194] : memref<4x32xf32, #tpu.memory_space<smem>>
    %536 = vector.broadcast %535 : f32 to vector<8x256xf32>
    %537 = arith.mulf %25, %536 : vector<8x256xf32>
    %538 = arith.addf %534, %537 : vector<8x256xf32>
    %c16_195 = arith.constant 16 : index
    %539 = memref.load %arg3[%c16_195] : memref<32xf32, #tpu.memory_space<smem>>
    %540 = vector.broadcast %539 : f32 to vector<8x256xf32>
    %541 = arith.addf %538, %540 : vector<8x256xf32>
    %cst_196 = arith.constant 9.99999997E-7 : f32
    %542 = vector.broadcast %cst_196 : f32 to vector<8x256xf32>
    %543 = arith.maximumf %541, %542 : vector<8x256xf32>
    %544 = arith.mulf %543, %543 : vector<8x256xf32>
    %545 = arith.mulf %544, %543 : vector<8x256xf32>
    %cst_197 = arith.constant dense<0.000000e+00> : vector<8xf32>
    %546 = vector.multi_reduction <add>, %545, %cst_197 [1] : vector<8x256xf32> to vector<8xf32>
    %547 = vector.shape_cast %546 : vector<8xf32> to vector<8x1xf32>
    %cst_198 = arith.constant 2.560000e+02 : f32
    %548 = vector.broadcast %cst_198 : f32 to vector<8x1xf32>
    %549 = arith.divf %547, %548 : vector<8x1xf32>
    %c16_i32 = arith.constant 16 : i32
    %550 = vector.broadcast %c16_i32 : i32 to vector<8x32xi32>
    %551 = arith.cmpi eq, %26, %550 : vector<8x32xi32>
    %552 = vector.shape_cast %549 : vector<8x1xf32> to vector<8x1xf32>
    %553 = vector.broadcast %552 : vector<8x1xf32> to vector<8x32xf32>
    %554 = arith.select %551, %553, %523 : vector<8x32xi1>, vector<8x32xf32>
    %c0_199 = arith.constant 0 : index
    %c17 = arith.constant 17 : index
    %555 = memref.load %arg2[%c0_199, %c17] : memref<4x32xf32, #tpu.memory_space<smem>>
    %556 = vector.broadcast %555 : f32 to vector<8x256xf32>
    %557 = arith.mulf %7, %556 : vector<8x256xf32>
    %c1_200 = arith.constant 1 : index
    %c17_201 = arith.constant 17 : index
    %558 = memref.load %arg2[%c1_200, %c17_201] : memref<4x32xf32, #tpu.memory_space<smem>>
    %559 = vector.broadcast %558 : f32 to vector<8x256xf32>
    %560 = arith.mulf %13, %559 : vector<8x256xf32>
    %561 = arith.addf %557, %560 : vector<8x256xf32>
    %c2_202 = arith.constant 2 : index
    %c17_203 = arith.constant 17 : index
    %562 = memref.load %arg2[%c2_202, %c17_203] : memref<4x32xf32, #tpu.memory_space<smem>>
    %563 = vector.broadcast %562 : f32 to vector<8x256xf32>
    %564 = arith.mulf %19, %563 : vector<8x256xf32>
    %565 = arith.addf %561, %564 : vector<8x256xf32>
    %c3_204 = arith.constant 3 : index
    %c17_205 = arith.constant 17 : index
    %566 = memref.load %arg2[%c3_204, %c17_205] : memref<4x32xf32, #tpu.memory_space<smem>>
    %567 = vector.broadcast %566 : f32 to vector<8x256xf32>
    %568 = arith.mulf %25, %567 : vector<8x256xf32>
    %569 = arith.addf %565, %568 : vector<8x256xf32>
    %c17_206 = arith.constant 17 : index
    %570 = memref.load %arg3[%c17_206] : memref<32xf32, #tpu.memory_space<smem>>
    %571 = vector.broadcast %570 : f32 to vector<8x256xf32>
    %572 = arith.addf %569, %571 : vector<8x256xf32>
    %cst_207 = arith.constant 9.99999997E-7 : f32
    %573 = vector.broadcast %cst_207 : f32 to vector<8x256xf32>
    %574 = arith.maximumf %572, %573 : vector<8x256xf32>
    %575 = arith.mulf %574, %574 : vector<8x256xf32>
    %576 = arith.mulf %575, %574 : vector<8x256xf32>
    %cst_208 = arith.constant dense<0.000000e+00> : vector<8xf32>
    %577 = vector.multi_reduction <add>, %576, %cst_208 [1] : vector<8x256xf32> to vector<8xf32>
    %578 = vector.shape_cast %577 : vector<8xf32> to vector<8x1xf32>
    %cst_209 = arith.constant 2.560000e+02 : f32
    %579 = vector.broadcast %cst_209 : f32 to vector<8x1xf32>
    %580 = arith.divf %578, %579 : vector<8x1xf32>
    %c17_i32 = arith.constant 17 : i32
    %581 = vector.broadcast %c17_i32 : i32 to vector<8x32xi32>
    %582 = arith.cmpi eq, %26, %581 : vector<8x32xi32>
    %583 = vector.shape_cast %580 : vector<8x1xf32> to vector<8x1xf32>
    %584 = vector.broadcast %583 : vector<8x1xf32> to vector<8x32xf32>
    %585 = arith.select %582, %584, %554 : vector<8x32xi1>, vector<8x32xf32>
    %c0_210 = arith.constant 0 : index
    %c18 = arith.constant 18 : index
    %586 = memref.load %arg2[%c0_210, %c18] : memref<4x32xf32, #tpu.memory_space<smem>>
    %587 = vector.broadcast %586 : f32 to vector<8x256xf32>
    %588 = arith.mulf %7, %587 : vector<8x256xf32>
    %c1_211 = arith.constant 1 : index
    %c18_212 = arith.constant 18 : index
    %589 = memref.load %arg2[%c1_211, %c18_212] : memref<4x32xf32, #tpu.memory_space<smem>>
    %590 = vector.broadcast %589 : f32 to vector<8x256xf32>
    %591 = arith.mulf %13, %590 : vector<8x256xf32>
    %592 = arith.addf %588, %591 : vector<8x256xf32>
    %c2_213 = arith.constant 2 : index
    %c18_214 = arith.constant 18 : index
    %593 = memref.load %arg2[%c2_213, %c18_214] : memref<4x32xf32, #tpu.memory_space<smem>>
    %594 = vector.broadcast %593 : f32 to vector<8x256xf32>
    %595 = arith.mulf %19, %594 : vector<8x256xf32>
    %596 = arith.addf %592, %595 : vector<8x256xf32>
    %c3_215 = arith.constant 3 : index
    %c18_216 = arith.constant 18 : index
    %597 = memref.load %arg2[%c3_215, %c18_216] : memref<4x32xf32, #tpu.memory_space<smem>>
    %598 = vector.broadcast %597 : f32 to vector<8x256xf32>
    %599 = arith.mulf %25, %598 : vector<8x256xf32>
    %600 = arith.addf %596, %599 : vector<8x256xf32>
    %c18_217 = arith.constant 18 : index
    %601 = memref.load %arg3[%c18_217] : memref<32xf32, #tpu.memory_space<smem>>
    %602 = vector.broadcast %601 : f32 to vector<8x256xf32>
    %603 = arith.addf %600, %602 : vector<8x256xf32>
    %cst_218 = arith.constant 9.99999997E-7 : f32
    %604 = vector.broadcast %cst_218 : f32 to vector<8x256xf32>
    %605 = arith.maximumf %603, %604 : vector<8x256xf32>
    %606 = arith.mulf %605, %605 : vector<8x256xf32>
    %607 = arith.mulf %606, %605 : vector<8x256xf32>
    %cst_219 = arith.constant dense<0.000000e+00> : vector<8xf32>
    %608 = vector.multi_reduction <add>, %607, %cst_219 [1] : vector<8x256xf32> to vector<8xf32>
    %609 = vector.shape_cast %608 : vector<8xf32> to vector<8x1xf32>
    %cst_220 = arith.constant 2.560000e+02 : f32
    %610 = vector.broadcast %cst_220 : f32 to vector<8x1xf32>
    %611 = arith.divf %609, %610 : vector<8x1xf32>
    %c18_i32 = arith.constant 18 : i32
    %612 = vector.broadcast %c18_i32 : i32 to vector<8x32xi32>
    %613 = arith.cmpi eq, %26, %612 : vector<8x32xi32>
    %614 = vector.shape_cast %611 : vector<8x1xf32> to vector<8x1xf32>
    %615 = vector.broadcast %614 : vector<8x1xf32> to vector<8x32xf32>
    %616 = arith.select %613, %615, %585 : vector<8x32xi1>, vector<8x32xf32>
    %c0_221 = arith.constant 0 : index
    %c19 = arith.constant 19 : index
    %617 = memref.load %arg2[%c0_221, %c19] : memref<4x32xf32, #tpu.memory_space<smem>>
    %618 = vector.broadcast %617 : f32 to vector<8x256xf32>
    %619 = arith.mulf %7, %618 : vector<8x256xf32>
    %c1_222 = arith.constant 1 : index
    %c19_223 = arith.constant 19 : index
    %620 = memref.load %arg2[%c1_222, %c19_223] : memref<4x32xf32, #tpu.memory_space<smem>>
    %621 = vector.broadcast %620 : f32 to vector<8x256xf32>
    %622 = arith.mulf %13, %621 : vector<8x256xf32>
    %623 = arith.addf %619, %622 : vector<8x256xf32>
    %c2_224 = arith.constant 2 : index
    %c19_225 = arith.constant 19 : index
    %624 = memref.load %arg2[%c2_224, %c19_225] : memref<4x32xf32, #tpu.memory_space<smem>>
    %625 = vector.broadcast %624 : f32 to vector<8x256xf32>
    %626 = arith.mulf %19, %625 : vector<8x256xf32>
    %627 = arith.addf %623, %626 : vector<8x256xf32>
    %c3_226 = arith.constant 3 : index
    %c19_227 = arith.constant 19 : index
    %628 = memref.load %arg2[%c3_226, %c19_227] : memref<4x32xf32, #tpu.memory_space<smem>>
    %629 = vector.broadcast %628 : f32 to vector<8x256xf32>
    %630 = arith.mulf %25, %629 : vector<8x256xf32>
    %631 = arith.addf %627, %630 : vector<8x256xf32>
    %c19_228 = arith.constant 19 : index
    %632 = memref.load %arg3[%c19_228] : memref<32xf32, #tpu.memory_space<smem>>
    %633 = vector.broadcast %632 : f32 to vector<8x256xf32>
    %634 = arith.addf %631, %633 : vector<8x256xf32>
    %cst_229 = arith.constant 9.99999997E-7 : f32
    %635 = vector.broadcast %cst_229 : f32 to vector<8x256xf32>
    %636 = arith.maximumf %634, %635 : vector<8x256xf32>
    %637 = arith.mulf %636, %636 : vector<8x256xf32>
    %638 = arith.mulf %637, %636 : vector<8x256xf32>
    %cst_230 = arith.constant dense<0.000000e+00> : vector<8xf32>
    %639 = vector.multi_reduction <add>, %638, %cst_230 [1] : vector<8x256xf32> to vector<8xf32>
    %640 = vector.shape_cast %639 : vector<8xf32> to vector<8x1xf32>
    %cst_231 = arith.constant 2.560000e+02 : f32
    %641 = vector.broadcast %cst_231 : f32 to vector<8x1xf32>
    %642 = arith.divf %640, %641 : vector<8x1xf32>
    %c19_i32 = arith.constant 19 : i32
    %643 = vector.broadcast %c19_i32 : i32 to vector<8x32xi32>
    %644 = arith.cmpi eq, %26, %643 : vector<8x32xi32>
    %645 = vector.shape_cast %642 : vector<8x1xf32> to vector<8x1xf32>
    %646 = vector.broadcast %645 : vector<8x1xf32> to vector<8x32xf32>
    %647 = arith.select %644, %646, %616 : vector<8x32xi1>, vector<8x32xf32>
    %c0_232 = arith.constant 0 : index
    %c20 = arith.constant 20 : index
    %648 = memref.load %arg2[%c0_232, %c20] : memref<4x32xf32, #tpu.memory_space<smem>>
    %649 = vector.broadcast %648 : f32 to vector<8x256xf32>
    %650 = arith.mulf %7, %649 : vector<8x256xf32>
    %c1_233 = arith.constant 1 : index
    %c20_234 = arith.constant 20 : index
    %651 = memref.load %arg2[%c1_233, %c20_234] : memref<4x32xf32, #tpu.memory_space<smem>>
    %652 = vector.broadcast %651 : f32 to vector<8x256xf32>
    %653 = arith.mulf %13, %652 : vector<8x256xf32>
    %654 = arith.addf %650, %653 : vector<8x256xf32>
    %c2_235 = arith.constant 2 : index
    %c20_236 = arith.constant 20 : index
    %655 = memref.load %arg2[%c2_235, %c20_236] : memref<4x32xf32, #tpu.memory_space<smem>>
    %656 = vector.broadcast %655 : f32 to vector<8x256xf32>
    %657 = arith.mulf %19, %656 : vector<8x256xf32>
    %658 = arith.addf %654, %657 : vector<8x256xf32>
    %c3_237 = arith.constant 3 : index
    %c20_238 = arith.constant 20 : index
    %659 = memref.load %arg2[%c3_237, %c20_238] : memref<4x32xf32, #tpu.memory_space<smem>>
    %660 = vector.broadcast %659 : f32 to vector<8x256xf32>
    %661 = arith.mulf %25, %660 : vector<8x256xf32>
    %662 = arith.addf %658, %661 : vector<8x256xf32>
    %c20_239 = arith.constant 20 : index
    %663 = memref.load %arg3[%c20_239] : memref<32xf32, #tpu.memory_space<smem>>
    %664 = vector.broadcast %663 : f32 to vector<8x256xf32>
    %665 = arith.addf %662, %664 : vector<8x256xf32>
    %cst_240 = arith.constant 9.99999997E-7 : f32
    %666 = vector.broadcast %cst_240 : f32 to vector<8x256xf32>
    %667 = arith.maximumf %665, %666 : vector<8x256xf32>
    %668 = arith.mulf %667, %667 : vector<8x256xf32>
    %669 = arith.mulf %668, %667 : vector<8x256xf32>
    %cst_241 = arith.constant dense<0.000000e+00> : vector<8xf32>
    %670 = vector.multi_reduction <add>, %669, %cst_241 [1] : vector<8x256xf32> to vector<8xf32>
    %671 = vector.shape_cast %670 : vector<8xf32> to vector<8x1xf32>
    %cst_242 = arith.constant 2.560000e+02 : f32
    %672 = vector.broadcast %cst_242 : f32 to vector<8x1xf32>
    %673 = arith.divf %671, %672 : vector<8x1xf32>
    %c20_i32 = arith.constant 20 : i32
    %674 = vector.broadcast %c20_i32 : i32 to vector<8x32xi32>
    %675 = arith.cmpi eq, %26, %674 : vector<8x32xi32>
    %676 = vector.shape_cast %673 : vector<8x1xf32> to vector<8x1xf32>
    %677 = vector.broadcast %676 : vector<8x1xf32> to vector<8x32xf32>
    %678 = arith.select %675, %677, %647 : vector<8x32xi1>, vector<8x32xf32>
    %c0_243 = arith.constant 0 : index
    %c21 = arith.constant 21 : index
    %679 = memref.load %arg2[%c0_243, %c21] : memref<4x32xf32, #tpu.memory_space<smem>>
    %680 = vector.broadcast %679 : f32 to vector<8x256xf32>
    %681 = arith.mulf %7, %680 : vector<8x256xf32>
    %c1_244 = arith.constant 1 : index
    %c21_245 = arith.constant 21 : index
    %682 = memref.load %arg2[%c1_244, %c21_245] : memref<4x32xf32, #tpu.memory_space<smem>>
    %683 = vector.broadcast %682 : f32 to vector<8x256xf32>
    %684 = arith.mulf %13, %683 : vector<8x256xf32>
    %685 = arith.addf %681, %684 : vector<8x256xf32>
    %c2_246 = arith.constant 2 : index
    %c21_247 = arith.constant 21 : index
    %686 = memref.load %arg2[%c2_246, %c21_247] : memref<4x32xf32, #tpu.memory_space<smem>>
    %687 = vector.broadcast %686 : f32 to vector<8x256xf32>
    %688 = arith.mulf %19, %687 : vector<8x256xf32>
    %689 = arith.addf %685, %688 : vector<8x256xf32>
    %c3_248 = arith.constant 3 : index
    %c21_249 = arith.constant 21 : index
    %690 = memref.load %arg2[%c3_248, %c21_249] : memref<4x32xf32, #tpu.memory_space<smem>>
    %691 = vector.broadcast %690 : f32 to vector<8x256xf32>
    %692 = arith.mulf %25, %691 : vector<8x256xf32>
    %693 = arith.addf %689, %692 : vector<8x256xf32>
    %c21_250 = arith.constant 21 : index
    %694 = memref.load %arg3[%c21_250] : memref<32xf32, #tpu.memory_space<smem>>
    %695 = vector.broadcast %694 : f32 to vector<8x256xf32>
    %696 = arith.addf %693, %695 : vector<8x256xf32>
    %cst_251 = arith.constant 9.99999997E-7 : f32
    %697 = vector.broadcast %cst_251 : f32 to vector<8x256xf32>
    %698 = arith.maximumf %696, %697 : vector<8x256xf32>
    %699 = arith.mulf %698, %698 : vector<8x256xf32>
    %700 = arith.mulf %699, %698 : vector<8x256xf32>
    %cst_252 = arith.constant dense<0.000000e+00> : vector<8xf32>
    %701 = vector.multi_reduction <add>, %700, %cst_252 [1] : vector<8x256xf32> to vector<8xf32>
    %702 = vector.shape_cast %701 : vector<8xf32> to vector<8x1xf32>
    %cst_253 = arith.constant 2.560000e+02 : f32
    %703 = vector.broadcast %cst_253 : f32 to vector<8x1xf32>
    %704 = arith.divf %702, %703 : vector<8x1xf32>
    %c21_i32 = arith.constant 21 : i32
    %705 = vector.broadcast %c21_i32 : i32 to vector<8x32xi32>
    %706 = arith.cmpi eq, %26, %705 : vector<8x32xi32>
    %707 = vector.shape_cast %704 : vector<8x1xf32> to vector<8x1xf32>
    %708 = vector.broadcast %707 : vector<8x1xf32> to vector<8x32xf32>
    %709 = arith.select %706, %708, %678 : vector<8x32xi1>, vector<8x32xf32>
    %c0_254 = arith.constant 0 : index
    %c22 = arith.constant 22 : index
    %710 = memref.load %arg2[%c0_254, %c22] : memref<4x32xf32, #tpu.memory_space<smem>>
    %711 = vector.broadcast %710 : f32 to vector<8x256xf32>
    %712 = arith.mulf %7, %711 : vector<8x256xf32>
    %c1_255 = arith.constant 1 : index
    %c22_256 = arith.constant 22 : index
    %713 = memref.load %arg2[%c1_255, %c22_256] : memref<4x32xf32, #tpu.memory_space<smem>>
    %714 = vector.broadcast %713 : f32 to vector<8x256xf32>
    %715 = arith.mulf %13, %714 : vector<8x256xf32>
    %716 = arith.addf %712, %715 : vector<8x256xf32>
    %c2_257 = arith.constant 2 : index
    %c22_258 = arith.constant 22 : index
    %717 = memref.load %arg2[%c2_257, %c22_258] : memref<4x32xf32, #tpu.memory_space<smem>>
    %718 = vector.broadcast %717 : f32 to vector<8x256xf32>
    %719 = arith.mulf %19, %718 : vector<8x256xf32>
    %720 = arith.addf %716, %719 : vector<8x256xf32>
    %c3_259 = arith.constant 3 : index
    %c22_260 = arith.constant 22 : index
    %721 = memref.load %arg2[%c3_259, %c22_260] : memref<4x32xf32, #tpu.memory_space<smem>>
    %722 = vector.broadcast %721 : f32 to vector<8x256xf32>
    %723 = arith.mulf %25, %722 : vector<8x256xf32>
    %724 = arith.addf %720, %723 : vector<8x256xf32>
    %c22_261 = arith.constant 22 : index
    %725 = memref.load %arg3[%c22_261] : memref<32xf32, #tpu.memory_space<smem>>
    %726 = vector.broadcast %725 : f32 to vector<8x256xf32>
    %727 = arith.addf %724, %726 : vector<8x256xf32>
    %cst_262 = arith.constant 9.99999997E-7 : f32
    %728 = vector.broadcast %cst_262 : f32 to vector<8x256xf32>
    %729 = arith.maximumf %727, %728 : vector<8x256xf32>
    %730 = arith.mulf %729, %729 : vector<8x256xf32>
    %731 = arith.mulf %730, %729 : vector<8x256xf32>
    %cst_263 = arith.constant dense<0.000000e+00> : vector<8xf32>
    %732 = vector.multi_reduction <add>, %731, %cst_263 [1] : vector<8x256xf32> to vector<8xf32>
    %733 = vector.shape_cast %732 : vector<8xf32> to vector<8x1xf32>
    %cst_264 = arith.constant 2.560000e+02 : f32
    %734 = vector.broadcast %cst_264 : f32 to vector<8x1xf32>
    %735 = arith.divf %733, %734 : vector<8x1xf32>
    %c22_i32 = arith.constant 22 : i32
    %736 = vector.broadcast %c22_i32 : i32 to vector<8x32xi32>
    %737 = arith.cmpi eq, %26, %736 : vector<8x32xi32>
    %738 = vector.shape_cast %735 : vector<8x1xf32> to vector<8x1xf32>
    %739 = vector.broadcast %738 : vector<8x1xf32> to vector<8x32xf32>
    %740 = arith.select %737, %739, %709 : vector<8x32xi1>, vector<8x32xf32>
    %c0_265 = arith.constant 0 : index
    %c23 = arith.constant 23 : index
    %741 = memref.load %arg2[%c0_265, %c23] : memref<4x32xf32, #tpu.memory_space<smem>>
    %742 = vector.broadcast %741 : f32 to vector<8x256xf32>
    %743 = arith.mulf %7, %742 : vector<8x256xf32>
    %c1_266 = arith.constant 1 : index
    %c23_267 = arith.constant 23 : index
    %744 = memref.load %arg2[%c1_266, %c23_267] : memref<4x32xf32, #tpu.memory_space<smem>>
    %745 = vector.broadcast %744 : f32 to vector<8x256xf32>
    %746 = arith.mulf %13, %745 : vector<8x256xf32>
    %747 = arith.addf %743, %746 : vector<8x256xf32>
    %c2_268 = arith.constant 2 : index
    %c23_269 = arith.constant 23 : index
    %748 = memref.load %arg2[%c2_268, %c23_269] : memref<4x32xf32, #tpu.memory_space<smem>>
    %749 = vector.broadcast %748 : f32 to vector<8x256xf32>
    %750 = arith.mulf %19, %749 : vector<8x256xf32>
    %751 = arith.addf %747, %750 : vector<8x256xf32>
    %c3_270 = arith.constant 3 : index
    %c23_271 = arith.constant 23 : index
    %752 = memref.load %arg2[%c3_270, %c23_271] : memref<4x32xf32, #tpu.memory_space<smem>>
    %753 = vector.broadcast %752 : f32 to vector<8x256xf32>
    %754 = arith.mulf %25, %753 : vector<8x256xf32>
    %755 = arith.addf %751, %754 : vector<8x256xf32>
    %c23_272 = arith.constant 23 : index
    %756 = memref.load %arg3[%c23_272] : memref<32xf32, #tpu.memory_space<smem>>
    %757 = vector.broadcast %756 : f32 to vector<8x256xf32>
    %758 = arith.addf %755, %757 : vector<8x256xf32>
    %cst_273 = arith.constant 9.99999997E-7 : f32
    %759 = vector.broadcast %cst_273 : f32 to vector<8x256xf32>
    %760 = arith.maximumf %758, %759 : vector<8x256xf32>
    %761 = arith.mulf %760, %760 : vector<8x256xf32>
    %762 = arith.mulf %761, %760 : vector<8x256xf32>
    %cst_274 = arith.constant dense<0.000000e+00> : vector<8xf32>
    %763 = vector.multi_reduction <add>, %762, %cst_274 [1] : vector<8x256xf32> to vector<8xf32>
    %764 = vector.shape_cast %763 : vector<8xf32> to vector<8x1xf32>
    %cst_275 = arith.constant 2.560000e+02 : f32
    %765 = vector.broadcast %cst_275 : f32 to vector<8x1xf32>
    %766 = arith.divf %764, %765 : vector<8x1xf32>
    %c23_i32 = arith.constant 23 : i32
    %767 = vector.broadcast %c23_i32 : i32 to vector<8x32xi32>
    %768 = arith.cmpi eq, %26, %767 : vector<8x32xi32>
    %769 = vector.shape_cast %766 : vector<8x1xf32> to vector<8x1xf32>
    %770 = vector.broadcast %769 : vector<8x1xf32> to vector<8x32xf32>
    %771 = arith.select %768, %770, %740 : vector<8x32xi1>, vector<8x32xf32>
    %c0_276 = arith.constant 0 : index
    %c24 = arith.constant 24 : index
    %772 = memref.load %arg2[%c0_276, %c24] : memref<4x32xf32, #tpu.memory_space<smem>>
    %773 = vector.broadcast %772 : f32 to vector<8x256xf32>
    %774 = arith.mulf %7, %773 : vector<8x256xf32>
    %c1_277 = arith.constant 1 : index
    %c24_278 = arith.constant 24 : index
    %775 = memref.load %arg2[%c1_277, %c24_278] : memref<4x32xf32, #tpu.memory_space<smem>>
    %776 = vector.broadcast %775 : f32 to vector<8x256xf32>
    %777 = arith.mulf %13, %776 : vector<8x256xf32>
    %778 = arith.addf %774, %777 : vector<8x256xf32>
    %c2_279 = arith.constant 2 : index
    %c24_280 = arith.constant 24 : index
    %779 = memref.load %arg2[%c2_279, %c24_280] : memref<4x32xf32, #tpu.memory_space<smem>>
    %780 = vector.broadcast %779 : f32 to vector<8x256xf32>
    %781 = arith.mulf %19, %780 : vector<8x256xf32>
    %782 = arith.addf %778, %781 : vector<8x256xf32>
    %c3_281 = arith.constant 3 : index
    %c24_282 = arith.constant 24 : index
    %783 = memref.load %arg2[%c3_281, %c24_282] : memref<4x32xf32, #tpu.memory_space<smem>>
    %784 = vector.broadcast %783 : f32 to vector<8x256xf32>
    %785 = arith.mulf %25, %784 : vector<8x256xf32>
    %786 = arith.addf %782, %785 : vector<8x256xf32>
    %c24_283 = arith.constant 24 : index
    %787 = memref.load %arg3[%c24_283] : memref<32xf32, #tpu.memory_space<smem>>
    %788 = vector.broadcast %787 : f32 to vector<8x256xf32>
    %789 = arith.addf %786, %788 : vector<8x256xf32>
    %cst_284 = arith.constant 9.99999997E-7 : f32
    %790 = vector.broadcast %cst_284 : f32 to vector<8x256xf32>
    %791 = arith.maximumf %789, %790 : vector<8x256xf32>
    %792 = arith.mulf %791, %791 : vector<8x256xf32>
    %793 = arith.mulf %792, %791 : vector<8x256xf32>
    %cst_285 = arith.constant dense<0.000000e+00> : vector<8xf32>
    %794 = vector.multi_reduction <add>, %793, %cst_285 [1] : vector<8x256xf32> to vector<8xf32>
    %795 = vector.shape_cast %794 : vector<8xf32> to vector<8x1xf32>
    %cst_286 = arith.constant 2.560000e+02 : f32
    %796 = vector.broadcast %cst_286 : f32 to vector<8x1xf32>
    %797 = arith.divf %795, %796 : vector<8x1xf32>
    %c24_i32 = arith.constant 24 : i32
    %798 = vector.broadcast %c24_i32 : i32 to vector<8x32xi32>
    %799 = arith.cmpi eq, %26, %798 : vector<8x32xi32>
    %800 = vector.shape_cast %797 : vector<8x1xf32> to vector<8x1xf32>
    %801 = vector.broadcast %800 : vector<8x1xf32> to vector<8x32xf32>
    %802 = arith.select %799, %801, %771 : vector<8x32xi1>, vector<8x32xf32>
    %c0_287 = arith.constant 0 : index
    %c25 = arith.constant 25 : index
    %803 = memref.load %arg2[%c0_287, %c25] : memref<4x32xf32, #tpu.memory_space<smem>>
    %804 = vector.broadcast %803 : f32 to vector<8x256xf32>
    %805 = arith.mulf %7, %804 : vector<8x256xf32>
    %c1_288 = arith.constant 1 : index
    %c25_289 = arith.constant 25 : index
    %806 = memref.load %arg2[%c1_288, %c25_289] : memref<4x32xf32, #tpu.memory_space<smem>>
    %807 = vector.broadcast %806 : f32 to vector<8x256xf32>
    %808 = arith.mulf %13, %807 : vector<8x256xf32>
    %809 = arith.addf %805, %808 : vector<8x256xf32>
    %c2_290 = arith.constant 2 : index
    %c25_291 = arith.constant 25 : index
    %810 = memref.load %arg2[%c2_290, %c25_291] : memref<4x32xf32, #tpu.memory_space<smem>>
    %811 = vector.broadcast %810 : f32 to vector<8x256xf32>
    %812 = arith.mulf %19, %811 : vector<8x256xf32>
    %813 = arith.addf %809, %812 : vector<8x256xf32>
    %c3_292 = arith.constant 3 : index
    %c25_293 = arith.constant 25 : index
    %814 = memref.load %arg2[%c3_292, %c25_293] : memref<4x32xf32, #tpu.memory_space<smem>>
    %815 = vector.broadcast %814 : f32 to vector<8x256xf32>
    %816 = arith.mulf %25, %815 : vector<8x256xf32>
    %817 = arith.addf %813, %816 : vector<8x256xf32>
    %c25_294 = arith.constant 25 : index
    %818 = memref.load %arg3[%c25_294] : memref<32xf32, #tpu.memory_space<smem>>
    %819 = vector.broadcast %818 : f32 to vector<8x256xf32>
    %820 = arith.addf %817, %819 : vector<8x256xf32>
    %cst_295 = arith.constant 9.99999997E-7 : f32
    %821 = vector.broadcast %cst_295 : f32 to vector<8x256xf32>
    %822 = arith.maximumf %820, %821 : vector<8x256xf32>
    %823 = arith.mulf %822, %822 : vector<8x256xf32>
    %824 = arith.mulf %823, %822 : vector<8x256xf32>
    %cst_296 = arith.constant dense<0.000000e+00> : vector<8xf32>
    %825 = vector.multi_reduction <add>, %824, %cst_296 [1] : vector<8x256xf32> to vector<8xf32>
    %826 = vector.shape_cast %825 : vector<8xf32> to vector<8x1xf32>
    %cst_297 = arith.constant 2.560000e+02 : f32
    %827 = vector.broadcast %cst_297 : f32 to vector<8x1xf32>
    %828 = arith.divf %826, %827 : vector<8x1xf32>
    %c25_i32 = arith.constant 25 : i32
    %829 = vector.broadcast %c25_i32 : i32 to vector<8x32xi32>
    %830 = arith.cmpi eq, %26, %829 : vector<8x32xi32>
    %831 = vector.shape_cast %828 : vector<8x1xf32> to vector<8x1xf32>
    %832 = vector.broadcast %831 : vector<8x1xf32> to vector<8x32xf32>
    %833 = arith.select %830, %832, %802 : vector<8x32xi1>, vector<8x32xf32>
    %c0_298 = arith.constant 0 : index
    %c26 = arith.constant 26 : index
    %834 = memref.load %arg2[%c0_298, %c26] : memref<4x32xf32, #tpu.memory_space<smem>>
    %835 = vector.broadcast %834 : f32 to vector<8x256xf32>
    %836 = arith.mulf %7, %835 : vector<8x256xf32>
    %c1_299 = arith.constant 1 : index
    %c26_300 = arith.constant 26 : index
    %837 = memref.load %arg2[%c1_299, %c26_300] : memref<4x32xf32, #tpu.memory_space<smem>>
    %838 = vector.broadcast %837 : f32 to vector<8x256xf32>
    %839 = arith.mulf %13, %838 : vector<8x256xf32>
    %840 = arith.addf %836, %839 : vector<8x256xf32>
    %c2_301 = arith.constant 2 : index
    %c26_302 = arith.constant 26 : index
    %841 = memref.load %arg2[%c2_301, %c26_302] : memref<4x32xf32, #tpu.memory_space<smem>>
    %842 = vector.broadcast %841 : f32 to vector<8x256xf32>
    %843 = arith.mulf %19, %842 : vector<8x256xf32>
    %844 = arith.addf %840, %843 : vector<8x256xf32>
    %c3_303 = arith.constant 3 : index
    %c26_304 = arith.constant 26 : index
    %845 = memref.load %arg2[%c3_303, %c26_304] : memref<4x32xf32, #tpu.memory_space<smem>>
    %846 = vector.broadcast %845 : f32 to vector<8x256xf32>
    %847 = arith.mulf %25, %846 : vector<8x256xf32>
    %848 = arith.addf %844, %847 : vector<8x256xf32>
    %c26_305 = arith.constant 26 : index
    %849 = memref.load %arg3[%c26_305] : memref<32xf32, #tpu.memory_space<smem>>
    %850 = vector.broadcast %849 : f32 to vector<8x256xf32>
    %851 = arith.addf %848, %850 : vector<8x256xf32>
    %cst_306 = arith.constant 9.99999997E-7 : f32
    %852 = vector.broadcast %cst_306 : f32 to vector<8x256xf32>
    %853 = arith.maximumf %851, %852 : vector<8x256xf32>
    %854 = arith.mulf %853, %853 : vector<8x256xf32>
    %855 = arith.mulf %854, %853 : vector<8x256xf32>
    %cst_307 = arith.constant dense<0.000000e+00> : vector<8xf32>
    %856 = vector.multi_reduction <add>, %855, %cst_307 [1] : vector<8x256xf32> to vector<8xf32>
    %857 = vector.shape_cast %856 : vector<8xf32> to vector<8x1xf32>
    %cst_308 = arith.constant 2.560000e+02 : f32
    %858 = vector.broadcast %cst_308 : f32 to vector<8x1xf32>
    %859 = arith.divf %857, %858 : vector<8x1xf32>
    %c26_i32 = arith.constant 26 : i32
    %860 = vector.broadcast %c26_i32 : i32 to vector<8x32xi32>
    %861 = arith.cmpi eq, %26, %860 : vector<8x32xi32>
    %862 = vector.shape_cast %859 : vector<8x1xf32> to vector<8x1xf32>
    %863 = vector.broadcast %862 : vector<8x1xf32> to vector<8x32xf32>
    %864 = arith.select %861, %863, %833 : vector<8x32xi1>, vector<8x32xf32>
    %c0_309 = arith.constant 0 : index
    %c27 = arith.constant 27 : index
    %865 = memref.load %arg2[%c0_309, %c27] : memref<4x32xf32, #tpu.memory_space<smem>>
    %866 = vector.broadcast %865 : f32 to vector<8x256xf32>
    %867 = arith.mulf %7, %866 : vector<8x256xf32>
    %c1_310 = arith.constant 1 : index
    %c27_311 = arith.constant 27 : index
    %868 = memref.load %arg2[%c1_310, %c27_311] : memref<4x32xf32, #tpu.memory_space<smem>>
    %869 = vector.broadcast %868 : f32 to vector<8x256xf32>
    %870 = arith.mulf %13, %869 : vector<8x256xf32>
    %871 = arith.addf %867, %870 : vector<8x256xf32>
    %c2_312 = arith.constant 2 : index
    %c27_313 = arith.constant 27 : index
    %872 = memref.load %arg2[%c2_312, %c27_313] : memref<4x32xf32, #tpu.memory_space<smem>>
    %873 = vector.broadcast %872 : f32 to vector<8x256xf32>
    %874 = arith.mulf %19, %873 : vector<8x256xf32>
    %875 = arith.addf %871, %874 : vector<8x256xf32>
    %c3_314 = arith.constant 3 : index
    %c27_315 = arith.constant 27 : index
    %876 = memref.load %arg2[%c3_314, %c27_315] : memref<4x32xf32, #tpu.memory_space<smem>>
    %877 = vector.broadcast %876 : f32 to vector<8x256xf32>
    %878 = arith.mulf %25, %877 : vector<8x256xf32>
    %879 = arith.addf %875, %878 : vector<8x256xf32>
    %c27_316 = arith.constant 27 : index
    %880 = memref.load %arg3[%c27_316] : memref<32xf32, #tpu.memory_space<smem>>
    %881 = vector.broadcast %880 : f32 to vector<8x256xf32>
    %882 = arith.addf %879, %881 : vector<8x256xf32>
    %cst_317 = arith.constant 9.99999997E-7 : f32
    %883 = vector.broadcast %cst_317 : f32 to vector<8x256xf32>
    %884 = arith.maximumf %882, %883 : vector<8x256xf32>
    %885 = arith.mulf %884, %884 : vector<8x256xf32>
    %886 = arith.mulf %885, %884 : vector<8x256xf32>
    %cst_318 = arith.constant dense<0.000000e+00> : vector<8xf32>
    %887 = vector.multi_reduction <add>, %886, %cst_318 [1] : vector<8x256xf32> to vector<8xf32>
    %888 = vector.shape_cast %887 : vector<8xf32> to vector<8x1xf32>
    %cst_319 = arith.constant 2.560000e+02 : f32
    %889 = vector.broadcast %cst_319 : f32 to vector<8x1xf32>
    %890 = arith.divf %888, %889 : vector<8x1xf32>
    %c27_i32 = arith.constant 27 : i32
    %891 = vector.broadcast %c27_i32 : i32 to vector<8x32xi32>
    %892 = arith.cmpi eq, %26, %891 : vector<8x32xi32>
    %893 = vector.shape_cast %890 : vector<8x1xf32> to vector<8x1xf32>
    %894 = vector.broadcast %893 : vector<8x1xf32> to vector<8x32xf32>
    %895 = arith.select %892, %894, %864 : vector<8x32xi1>, vector<8x32xf32>
    %c0_320 = arith.constant 0 : index
    %c28 = arith.constant 28 : index
    %896 = memref.load %arg2[%c0_320, %c28] : memref<4x32xf32, #tpu.memory_space<smem>>
    %897 = vector.broadcast %896 : f32 to vector<8x256xf32>
    %898 = arith.mulf %7, %897 : vector<8x256xf32>
    %c1_321 = arith.constant 1 : index
    %c28_322 = arith.constant 28 : index
    %899 = memref.load %arg2[%c1_321, %c28_322] : memref<4x32xf32, #tpu.memory_space<smem>>
    %900 = vector.broadcast %899 : f32 to vector<8x256xf32>
    %901 = arith.mulf %13, %900 : vector<8x256xf32>
    %902 = arith.addf %898, %901 : vector<8x256xf32>
    %c2_323 = arith.constant 2 : index
    %c28_324 = arith.constant 28 : index
    %903 = memref.load %arg2[%c2_323, %c28_324] : memref<4x32xf32, #tpu.memory_space<smem>>
    %904 = vector.broadcast %903 : f32 to vector<8x256xf32>
    %905 = arith.mulf %19, %904 : vector<8x256xf32>
    %906 = arith.addf %902, %905 : vector<8x256xf32>
    %c3_325 = arith.constant 3 : index
    %c28_326 = arith.constant 28 : index
    %907 = memref.load %arg2[%c3_325, %c28_326] : memref<4x32xf32, #tpu.memory_space<smem>>
    %908 = vector.broadcast %907 : f32 to vector<8x256xf32>
    %909 = arith.mulf %25, %908 : vector<8x256xf32>
    %910 = arith.addf %906, %909 : vector<8x256xf32>
    %c28_327 = arith.constant 28 : index
    %911 = memref.load %arg3[%c28_327] : memref<32xf32, #tpu.memory_space<smem>>
    %912 = vector.broadcast %911 : f32 to vector<8x256xf32>
    %913 = arith.addf %910, %912 : vector<8x256xf32>
    %cst_328 = arith.constant 9.99999997E-7 : f32
    %914 = vector.broadcast %cst_328 : f32 to vector<8x256xf32>
    %915 = arith.maximumf %913, %914 : vector<8x256xf32>
    %916 = arith.mulf %915, %915 : vector<8x256xf32>
    %917 = arith.mulf %916, %915 : vector<8x256xf32>
    %cst_329 = arith.constant dense<0.000000e+00> : vector<8xf32>
    %918 = vector.multi_reduction <add>, %917, %cst_329 [1] : vector<8x256xf32> to vector<8xf32>
    %919 = vector.shape_cast %918 : vector<8xf32> to vector<8x1xf32>
    %cst_330 = arith.constant 2.560000e+02 : f32
    %920 = vector.broadcast %cst_330 : f32 to vector<8x1xf32>
    %921 = arith.divf %919, %920 : vector<8x1xf32>
    %c28_i32 = arith.constant 28 : i32
    %922 = vector.broadcast %c28_i32 : i32 to vector<8x32xi32>
    %923 = arith.cmpi eq, %26, %922 : vector<8x32xi32>
    %924 = vector.shape_cast %921 : vector<8x1xf32> to vector<8x1xf32>
    %925 = vector.broadcast %924 : vector<8x1xf32> to vector<8x32xf32>
    %926 = arith.select %923, %925, %895 : vector<8x32xi1>, vector<8x32xf32>
    %c0_331 = arith.constant 0 : index
    %c29 = arith.constant 29 : index
    %927 = memref.load %arg2[%c0_331, %c29] : memref<4x32xf32, #tpu.memory_space<smem>>
    %928 = vector.broadcast %927 : f32 to vector<8x256xf32>
    %929 = arith.mulf %7, %928 : vector<8x256xf32>
    %c1_332 = arith.constant 1 : index
    %c29_333 = arith.constant 29 : index
    %930 = memref.load %arg2[%c1_332, %c29_333] : memref<4x32xf32, #tpu.memory_space<smem>>
    %931 = vector.broadcast %930 : f32 to vector<8x256xf32>
    %932 = arith.mulf %13, %931 : vector<8x256xf32>
    %933 = arith.addf %929, %932 : vector<8x256xf32>
    %c2_334 = arith.constant 2 : index
    %c29_335 = arith.constant 29 : index
    %934 = memref.load %arg2[%c2_334, %c29_335] : memref<4x32xf32, #tpu.memory_space<smem>>
    %935 = vector.broadcast %934 : f32 to vector<8x256xf32>
    %936 = arith.mulf %19, %935 : vector<8x256xf32>
    %937 = arith.addf %933, %936 : vector<8x256xf32>
    %c3_336 = arith.constant 3 : index
    %c29_337 = arith.constant 29 : index
    %938 = memref.load %arg2[%c3_336, %c29_337] : memref<4x32xf32, #tpu.memory_space<smem>>
    %939 = vector.broadcast %938 : f32 to vector<8x256xf32>
    %940 = arith.mulf %25, %939 : vector<8x256xf32>
    %941 = arith.addf %937, %940 : vector<8x256xf32>
    %c29_338 = arith.constant 29 : index
    %942 = memref.load %arg3[%c29_338] : memref<32xf32, #tpu.memory_space<smem>>
    %943 = vector.broadcast %942 : f32 to vector<8x256xf32>
    %944 = arith.addf %941, %943 : vector<8x256xf32>
    %cst_339 = arith.constant 9.99999997E-7 : f32
    %945 = vector.broadcast %cst_339 : f32 to vector<8x256xf32>
    %946 = arith.maximumf %944, %945 : vector<8x256xf32>
    %947 = arith.mulf %946, %946 : vector<8x256xf32>
    %948 = arith.mulf %947, %946 : vector<8x256xf32>
    %cst_340 = arith.constant dense<0.000000e+00> : vector<8xf32>
    %949 = vector.multi_reduction <add>, %948, %cst_340 [1] : vector<8x256xf32> to vector<8xf32>
    %950 = vector.shape_cast %949 : vector<8xf32> to vector<8x1xf32>
    %cst_341 = arith.constant 2.560000e+02 : f32
    %951 = vector.broadcast %cst_341 : f32 to vector<8x1xf32>
    %952 = arith.divf %950, %951 : vector<8x1xf32>
    %c29_i32 = arith.constant 29 : i32
    %953 = vector.broadcast %c29_i32 : i32 to vector<8x32xi32>
    %954 = arith.cmpi eq, %26, %953 : vector<8x32xi32>
    %955 = vector.shape_cast %952 : vector<8x1xf32> to vector<8x1xf32>
    %956 = vector.broadcast %955 : vector<8x1xf32> to vector<8x32xf32>
    %957 = arith.select %954, %956, %926 : vector<8x32xi1>, vector<8x32xf32>
    %c0_342 = arith.constant 0 : index
    %c30 = arith.constant 30 : index
    %958 = memref.load %arg2[%c0_342, %c30] : memref<4x32xf32, #tpu.memory_space<smem>>
    %959 = vector.broadcast %958 : f32 to vector<8x256xf32>
    %960 = arith.mulf %7, %959 : vector<8x256xf32>
    %c1_343 = arith.constant 1 : index
    %c30_344 = arith.constant 30 : index
    %961 = memref.load %arg2[%c1_343, %c30_344] : memref<4x32xf32, #tpu.memory_space<smem>>
    %962 = vector.broadcast %961 : f32 to vector<8x256xf32>
    %963 = arith.mulf %13, %962 : vector<8x256xf32>
    %964 = arith.addf %960, %963 : vector<8x256xf32>
    %c2_345 = arith.constant 2 : index
    %c30_346 = arith.constant 30 : index
    %965 = memref.load %arg2[%c2_345, %c30_346] : memref<4x32xf32, #tpu.memory_space<smem>>
    %966 = vector.broadcast %965 : f32 to vector<8x256xf32>
    %967 = arith.mulf %19, %966 : vector<8x256xf32>
    %968 = arith.addf %964, %967 : vector<8x256xf32>
    %c3_347 = arith.constant 3 : index
    %c30_348 = arith.constant 30 : index
    %969 = memref.load %arg2[%c3_347, %c30_348] : memref<4x32xf32, #tpu.memory_space<smem>>
    %970 = vector.broadcast %969 : f32 to vector<8x256xf32>
    %971 = arith.mulf %25, %970 : vector<8x256xf32>
    %972 = arith.addf %968, %971 : vector<8x256xf32>
    %c30_349 = arith.constant 30 : index
    %973 = memref.load %arg3[%c30_349] : memref<32xf32, #tpu.memory_space<smem>>
    %974 = vector.broadcast %973 : f32 to vector<8x256xf32>
    %975 = arith.addf %972, %974 : vector<8x256xf32>
    %cst_350 = arith.constant 9.99999997E-7 : f32
    %976 = vector.broadcast %cst_350 : f32 to vector<8x256xf32>
    %977 = arith.maximumf %975, %976 : vector<8x256xf32>
    %978 = arith.mulf %977, %977 : vector<8x256xf32>
    %979 = arith.mulf %978, %977 : vector<8x256xf32>
    %cst_351 = arith.constant dense<0.000000e+00> : vector<8xf32>
    %980 = vector.multi_reduction <add>, %979, %cst_351 [1] : vector<8x256xf32> to vector<8xf32>
    %981 = vector.shape_cast %980 : vector<8xf32> to vector<8x1xf32>
    %cst_352 = arith.constant 2.560000e+02 : f32
    %982 = vector.broadcast %cst_352 : f32 to vector<8x1xf32>
    %983 = arith.divf %981, %982 : vector<8x1xf32>
    %c30_i32 = arith.constant 30 : i32
    %984 = vector.broadcast %c30_i32 : i32 to vector<8x32xi32>
    %985 = arith.cmpi eq, %26, %984 : vector<8x32xi32>
    %986 = vector.shape_cast %983 : vector<8x1xf32> to vector<8x1xf32>
    %987 = vector.broadcast %986 : vector<8x1xf32> to vector<8x32xf32>
    %988 = arith.select %985, %987, %957 : vector<8x32xi1>, vector<8x32xf32>
    %c0_353 = arith.constant 0 : index
    %c31 = arith.constant 31 : index
    %989 = memref.load %arg2[%c0_353, %c31] : memref<4x32xf32, #tpu.memory_space<smem>>
    %990 = vector.broadcast %989 : f32 to vector<8x256xf32>
    %991 = arith.mulf %7, %990 : vector<8x256xf32>
    %c1_354 = arith.constant 1 : index
    %c31_355 = arith.constant 31 : index
    %992 = memref.load %arg2[%c1_354, %c31_355] : memref<4x32xf32, #tpu.memory_space<smem>>
    %993 = vector.broadcast %992 : f32 to vector<8x256xf32>
    %994 = arith.mulf %13, %993 : vector<8x256xf32>
    %995 = arith.addf %991, %994 : vector<8x256xf32>
    %c2_356 = arith.constant 2 : index
    %c31_357 = arith.constant 31 : index
    %996 = memref.load %arg2[%c2_356, %c31_357] : memref<4x32xf32, #tpu.memory_space<smem>>
    %997 = vector.broadcast %996 : f32 to vector<8x256xf32>
    %998 = arith.mulf %19, %997 : vector<8x256xf32>
    %999 = arith.addf %995, %998 : vector<8x256xf32>
    %c3_358 = arith.constant 3 : index
    %c31_359 = arith.constant 31 : index
    %1000 = memref.load %arg2[%c3_358, %c31_359] : memref<4x32xf32, #tpu.memory_space<smem>>
    %1001 = vector.broadcast %1000 : f32 to vector<8x256xf32>
    %1002 = arith.mulf %25, %1001 : vector<8x256xf32>
    %1003 = arith.addf %999, %1002 : vector<8x256xf32>
    %c31_360 = arith.constant 31 : index
    %1004 = memref.load %arg3[%c31_360] : memref<32xf32, #tpu.memory_space<smem>>
    %1005 = vector.broadcast %1004 : f32 to vector<8x256xf32>
    %1006 = arith.addf %1003, %1005 : vector<8x256xf32>
    %cst_361 = arith.constant 9.99999997E-7 : f32
    %1007 = vector.broadcast %cst_361 : f32 to vector<8x256xf32>
    %1008 = arith.maximumf %1006, %1007 : vector<8x256xf32>
    %1009 = arith.mulf %1008, %1008 : vector<8x256xf32>
    %1010 = arith.mulf %1009, %1008 : vector<8x256xf32>
    %cst_362 = arith.constant dense<0.000000e+00> : vector<8xf32>
    %1011 = vector.multi_reduction <add>, %1010, %cst_362 [1] : vector<8x256xf32> to vector<8xf32>
    %1012 = vector.shape_cast %1011 : vector<8xf32> to vector<8x1xf32>
    %cst_363 = arith.constant 2.560000e+02 : f32
    %1013 = vector.broadcast %cst_363 : f32 to vector<8x1xf32>
    %1014 = arith.divf %1012, %1013 : vector<8x1xf32>
    %c31_i32 = arith.constant 31 : i32
    %1015 = vector.broadcast %c31_i32 : i32 to vector<8x32xi32>
    %1016 = arith.cmpi eq, %26, %1015 : vector<8x32xi32>
    %1017 = vector.shape_cast %1014 : vector<8x1xf32> to vector<8x1xf32>
    %1018 = vector.broadcast %1017 : vector<8x1xf32> to vector<8x32xf32>
    %1019 = arith.select %1016, %1018, %988 : vector<8x32xi1>, vector<8x32xf32>
    %1020 = math.log %1019 : vector<8x32xf32>
    %cst_364 = arith.constant 0.333333343 : f32
    %1021 = vector.broadcast %cst_364 : f32 to vector<8x32xf32>
    %1022 = arith.mulf %1020, %1021 : vector<8x32xf32>
    %1023 = math.exp %1022 : vector<8x32xf32>
    %c0_365 = arith.constant 0 : index
    %c0_366 = arith.constant 0 : index
    %1024 = vector.load %arg4[%c0_365, %c0_366] : memref<32x96xf32, #tpu.memory_space<vmem>>, vector<32x96xf32>
    %cst_367 = arith.constant dense<0.000000e+00> : vector<8x96xf32>
    %1025 = tpu.matmul %1023, %1024, %cst_367 {dimension_numbers = #tpu.dot_dimension_numbers<[1], [0], [0], [1], [0, 0, 1, 1], [], []>} : vector<8x32xf32>, vector<32x96xf32>, vector<8x96xf32> -> vector<8x96xf32>
    %c0_368 = arith.constant 0 : index
    %c0_369 = arith.constant 0 : index
    %1026 = vector.load %arg5[%c0_368, %c0_369] : memref<1x96xf32, #tpu.memory_space<vmem>>, vector<1x96xf32>
    %1027 = vector.broadcast %1026 : vector<1x96xf32> to vector<8x96xf32>
    %1028 = arith.addf %1025, %1027 : vector<8x96xf32>
    %c0_370 = arith.constant 0 : index
    %c0_371 = arith.constant 0 : index
    %1029 = vector.load %arg6[%c0_370, %c0_371] : memref<32x32xf32, #tpu.memory_space<vmem>>, vector<32x32xf32>
    %cst_372 = arith.constant 0.000000e+00 : f32
    %1030 = vector.broadcast %cst_372 : f32 to vector<8x32xf32>
    %1031 = vector.extract_strided_slice %1028 {offsets = [0, 0], sizes = [8, 8], strides = [1, 1]} : vector<8x96xf32> to vector<8x8xf32>
    %1032 = vector.extract_strided_slice %1028 {offsets = [0, 32], sizes = [8, 8], strides = [1, 1]} : vector<8x96xf32> to vector<8x8xf32>
    %1033 = vector.extract_strided_slice %1028 {offsets = [0, 64], sizes = [8, 8], strides = [1, 1]} : vector<8x96xf32> to vector<8x8xf32>
    %cst_373 = arith.constant dense<0.000000e+00> : vector<8x8xf32>
    %1034 = tpu.matmul %1031, %1032, %cst_373 {dimension_numbers = #tpu.dot_dimension_numbers<[1], [1], [0], [0], [0, 0, 1, 0], [], []>} : vector<8x8xf32>, vector<8x8xf32>, vector<8x8xf32> -> vector<8x8xf32>
    %cst_374 = arith.constant 0.353553385 : f32
    %1035 = vector.broadcast %cst_374 : f32 to vector<8x8xf32>
    %1036 = arith.mulf %1034, %1035 : vector<8x8xf32>
    %cst_375 = arith.constant dense<0xFF800000> : vector<8xf32>
    %1037 = vector.multi_reduction <maximumf>, %1036, %cst_375 [1] : vector<8x8xf32> to vector<8xf32>
    %1038 = vector.shape_cast %1037 : vector<8xf32> to vector<8x1xf32>
    %1039 = vector.broadcast %1038 : vector<8x1xf32> to vector<8x8xf32>
    %1040 = arith.subf %1036, %1039 : vector<8x8xf32>
    %1041 = math.exp %1040 : vector<8x8xf32>
    %cst_376 = arith.constant dense<0.000000e+00> : vector<8xf32>
    %1042 = vector.multi_reduction <add>, %1041, %cst_376 [1] : vector<8x8xf32> to vector<8xf32>
    %1043 = vector.shape_cast %1042 : vector<8xf32> to vector<8x1xf32>
    %1044 = tpu.reciprocal %1043 {approx = true} : vector<8x1xf32> -> vector<8x1xf32>
    %1045 = vector.broadcast %1044 : vector<8x1xf32> to vector<8x8xf32>
    %1046 = arith.mulf %1041, %1045 : vector<8x8xf32>
    %cst_377 = arith.constant dense<0.000000e+00> : vector<8x8xf32>
    %1047 = tpu.matmul %1046, %1033, %cst_377 {dimension_numbers = #tpu.dot_dimension_numbers<[1], [0], [0], [1], [0, 0, 1, 1], [], []>} : vector<8x8xf32>, vector<8x8xf32>, vector<8x8xf32> -> vector<8x8xf32>
    %1048 = vector.extract_strided_slice %1029 {offsets = [0, 0], sizes = [8, 32], strides = [1, 1]} : vector<32x32xf32> to vector<8x32xf32>
    %cst_378 = arith.constant dense<0.000000e+00> : vector<8x32xf32>
    %1049 = tpu.matmul %1047, %1048, %cst_378 {dimension_numbers = #tpu.dot_dimension_numbers<[1], [0], [0], [1], [0, 0, 1, 1], [], []>} : vector<8x8xf32>, vector<8x32xf32>, vector<8x32xf32> -> vector<8x32xf32>
    %1050 = arith.addf %1030, %1049 : vector<8x32xf32>
    %1051 = vector.extract_strided_slice %1028 {offsets = [0, 8], sizes = [8, 8], strides = [1, 1]} : vector<8x96xf32> to vector<8x8xf32>
    %1052 = vector.extract_strided_slice %1028 {offsets = [0, 40], sizes = [8, 8], strides = [1, 1]} : vector<8x96xf32> to vector<8x8xf32>
    %1053 = vector.extract_strided_slice %1028 {offsets = [0, 72], sizes = [8, 8], strides = [1, 1]} : vector<8x96xf32> to vector<8x8xf32>
    %cst_379 = arith.constant dense<0.000000e+00> : vector<8x8xf32>
    %1054 = tpu.matmul %1051, %1052, %cst_379 {dimension_numbers = #tpu.dot_dimension_numbers<[1], [1], [0], [0], [0, 0, 1, 0], [], []>} : vector<8x8xf32>, vector<8x8xf32>, vector<8x8xf32> -> vector<8x8xf32>
    %cst_380 = arith.constant 0.353553385 : f32
    %1055 = vector.broadcast %cst_380 : f32 to vector<8x8xf32>
    %1056 = arith.mulf %1054, %1055 : vector<8x8xf32>
    %cst_381 = arith.constant dense<0xFF800000> : vector<8xf32>
    %1057 = vector.multi_reduction <maximumf>, %1056, %cst_381 [1] : vector<8x8xf32> to vector<8xf32>
    %1058 = vector.shape_cast %1057 : vector<8xf32> to vector<8x1xf32>
    %1059 = vector.broadcast %1058 : vector<8x1xf32> to vector<8x8xf32>
    %1060 = arith.subf %1056, %1059 : vector<8x8xf32>
    %1061 = math.exp %1060 : vector<8x8xf32>
    %cst_382 = arith.constant dense<0.000000e+00> : vector<8xf32>
    %1062 = vector.multi_reduction <add>, %1061, %cst_382 [1] : vector<8x8xf32> to vector<8xf32>
    %1063 = vector.shape_cast %1062 : vector<8xf32> to vector<8x1xf32>
    %1064 = tpu.reciprocal %1063 {approx = true} : vector<8x1xf32> -> vector<8x1xf32>
    %1065 = vector.broadcast %1064 : vector<8x1xf32> to vector<8x8xf32>
    %1066 = arith.mulf %1061, %1065 : vector<8x8xf32>
    %cst_383 = arith.constant dense<0.000000e+00> : vector<8x8xf32>
    %1067 = tpu.matmul %1066, %1053, %cst_383 {dimension_numbers = #tpu.dot_dimension_numbers<[1], [0], [0], [1], [0, 0, 1, 1], [], []>} : vector<8x8xf32>, vector<8x8xf32>, vector<8x8xf32> -> vector<8x8xf32>
    %1068 = vector.extract_strided_slice %1029 {offsets = [8, 0], sizes = [8, 32], strides = [1, 1]} : vector<32x32xf32> to vector<8x32xf32>
    %cst_384 = arith.constant dense<0.000000e+00> : vector<8x32xf32>
    %1069 = tpu.matmul %1067, %1068, %cst_384 {dimension_numbers = #tpu.dot_dimension_numbers<[1], [0], [0], [1], [0, 0, 1, 1], [], []>} : vector<8x8xf32>, vector<8x32xf32>, vector<8x32xf32> -> vector<8x32xf32>
    %1070 = arith.addf %1050, %1069 : vector<8x32xf32>
    %1071 = vector.extract_strided_slice %1028 {offsets = [0, 16], sizes = [8, 8], strides = [1, 1]} : vector<8x96xf32> to vector<8x8xf32>
    %1072 = vector.extract_strided_slice %1028 {offsets = [0, 48], sizes = [8, 8], strides = [1, 1]} : vector<8x96xf32> to vector<8x8xf32>
    %1073 = vector.extract_strided_slice %1028 {offsets = [0, 80], sizes = [8, 8], strides = [1, 1]} : vector<8x96xf32> to vector<8x8xf32>
    %cst_385 = arith.constant dense<0.000000e+00> : vector<8x8xf32>
    %1074 = tpu.matmul %1071, %1072, %cst_385 {dimension_numbers = #tpu.dot_dimension_numbers<[1], [1], [0], [0], [0, 0, 1, 0], [], []>} : vector<8x8xf32>, vector<8x8xf32>, vector<8x8xf32> -> vector<8x8xf32>
    %cst_386 = arith.constant 0.353553385 : f32
    %1075 = vector.broadcast %cst_386 : f32 to vector<8x8xf32>
    %1076 = arith.mulf %1074, %1075 : vector<8x8xf32>
    %cst_387 = arith.constant dense<0xFF800000> : vector<8xf32>
    %1077 = vector.multi_reduction <maximumf>, %1076, %cst_387 [1] : vector<8x8xf32> to vector<8xf32>
    %1078 = vector.shape_cast %1077 : vector<8xf32> to vector<8x1xf32>
    %1079 = vector.broadcast %1078 : vector<8x1xf32> to vector<8x8xf32>
    %1080 = arith.subf %1076, %1079 : vector<8x8xf32>
    %1081 = math.exp %1080 : vector<8x8xf32>
    %cst_388 = arith.constant dense<0.000000e+00> : vector<8xf32>
    %1082 = vector.multi_reduction <add>, %1081, %cst_388 [1] : vector<8x8xf32> to vector<8xf32>
    %1083 = vector.shape_cast %1082 : vector<8xf32> to vector<8x1xf32>
    %1084 = tpu.reciprocal %1083 {approx = true} : vector<8x1xf32> -> vector<8x1xf32>
    %1085 = vector.broadcast %1084 : vector<8x1xf32> to vector<8x8xf32>
    %1086 = arith.mulf %1081, %1085 : vector<8x8xf32>
    %cst_389 = arith.constant dense<0.000000e+00> : vector<8x8xf32>
    %1087 = tpu.matmul %1086, %1073, %cst_389 {dimension_numbers = #tpu.dot_dimension_numbers<[1], [0], [0], [1], [0, 0, 1, 1], [], []>} : vector<8x8xf32>, vector<8x8xf32>, vector<8x8xf32> -> vector<8x8xf32>
    %1088 = vector.extract_strided_slice %1029 {offsets = [16, 0], sizes = [8, 32], strides = [1, 1]} : vector<32x32xf32> to vector<8x32xf32>
    %cst_390 = arith.constant dense<0.000000e+00> : vector<8x32xf32>
    %1089 = tpu.matmul %1087, %1088, %cst_390 {dimension_numbers = #tpu.dot_dimension_numbers<[1], [0], [0], [1], [0, 0, 1, 1], [], []>} : vector<8x8xf32>, vector<8x32xf32>, vector<8x32xf32> -> vector<8x32xf32>
    %1090 = arith.addf %1070, %1089 : vector<8x32xf32>
    %1091 = vector.extract_strided_slice %1028 {offsets = [0, 24], sizes = [8, 8], strides = [1, 1]} : vector<8x96xf32> to vector<8x8xf32>
    %1092 = vector.extract_strided_slice %1028 {offsets = [0, 56], sizes = [8, 8], strides = [1, 1]} : vector<8x96xf32> to vector<8x8xf32>
    %1093 = vector.extract_strided_slice %1028 {offsets = [0, 88], sizes = [8, 8], strides = [1, 1]} : vector<8x96xf32> to vector<8x8xf32>
    %cst_391 = arith.constant dense<0.000000e+00> : vector<8x8xf32>
    %1094 = tpu.matmul %1091, %1092, %cst_391 {dimension_numbers = #tpu.dot_dimension_numbers<[1], [1], [0], [0], [0, 0, 1, 0], [], []>} : vector<8x8xf32>, vector<8x8xf32>, vector<8x8xf32> -> vector<8x8xf32>
    %cst_392 = arith.constant 0.353553385 : f32
    %1095 = vector.broadcast %cst_392 : f32 to vector<8x8xf32>
    %1096 = arith.mulf %1094, %1095 : vector<8x8xf32>
    %cst_393 = arith.constant dense<0xFF800000> : vector<8xf32>
    %1097 = vector.multi_reduction <maximumf>, %1096, %cst_393 [1] : vector<8x8xf32> to vector<8xf32>
    %1098 = vector.shape_cast %1097 : vector<8xf32> to vector<8x1xf32>
    %1099 = vector.broadcast %1098 : vector<8x1xf32> to vector<8x8xf32>
    %1100 = arith.subf %1096, %1099 : vector<8x8xf32>
    %1101 = math.exp %1100 : vector<8x8xf32>
    %cst_394 = arith.constant dense<0.000000e+00> : vector<8xf32>
    %1102 = vector.multi_reduction <add>, %1101, %cst_394 [1] : vector<8x8xf32> to vector<8xf32>
    %1103 = vector.shape_cast %1102 : vector<8xf32> to vector<8x1xf32>
    %1104 = tpu.reciprocal %1103 {approx = true} : vector<8x1xf32> -> vector<8x1xf32>
    %1105 = vector.broadcast %1104 : vector<8x1xf32> to vector<8x8xf32>
    %1106 = arith.mulf %1101, %1105 : vector<8x8xf32>
    %cst_395 = arith.constant dense<0.000000e+00> : vector<8x8xf32>
    %1107 = tpu.matmul %1106, %1093, %cst_395 {dimension_numbers = #tpu.dot_dimension_numbers<[1], [0], [0], [1], [0, 0, 1, 1], [], []>} : vector<8x8xf32>, vector<8x8xf32>, vector<8x8xf32> -> vector<8x8xf32>
    %1108 = vector.extract_strided_slice %1029 {offsets = [24, 0], sizes = [8, 32], strides = [1, 1]} : vector<32x32xf32> to vector<8x32xf32>
    %cst_396 = arith.constant dense<0.000000e+00> : vector<8x32xf32>
    %1109 = tpu.matmul %1107, %1108, %cst_396 {dimension_numbers = #tpu.dot_dimension_numbers<[1], [0], [0], [1], [0, 0, 1, 1], [], []>} : vector<8x8xf32>, vector<8x32xf32>, vector<8x32xf32> -> vector<8x32xf32>
    %1110 = arith.addf %1090, %1109 : vector<8x32xf32>
    %c0_397 = arith.constant 0 : index
    %c0_398 = arith.constant 0 : index
    %1111 = vector.load %arg7[%c0_397, %c0_398] : memref<1x32xf32, #tpu.memory_space<vmem>>, vector<1x32xf32>
    %1112 = vector.broadcast %1111 : vector<1x32xf32> to vector<8x32xf32>
    %1113 = arith.addf %1110, %1112 : vector<8x32xf32>
    %c0_399 = arith.constant 0 : index
    %c0_400 = arith.constant 0 : index
    %1114 = vector.load %arg12[%c0_399, %c0_400] : memref<1x32xf32, #tpu.memory_space<vmem>>, vector<1x32xf32>
    %c0_401 = arith.constant 0 : index
    %c0_402 = arith.constant 0 : index
    %1115 = vector.load %arg13[%c0_401, %c0_402] : memref<1x32xf32, #tpu.memory_space<vmem>>, vector<1x32xf32>
    %1116 = arith.addf %1023, %1113 : vector<8x32xf32>
    %cst_403 = arith.constant dense<0.000000e+00> : vector<8xf32>
    %1117 = vector.multi_reduction <add>, %1116, %cst_403 [1] : vector<8x32xf32> to vector<8xf32>
    %1118 = vector.shape_cast %1117 : vector<8xf32> to vector<8x1xf32>
    %cst_404 = arith.constant 3.200000e+01 : f32
    %1119 = vector.broadcast %cst_404 : f32 to vector<8x1xf32>
    %1120 = arith.divf %1118, %1119 : vector<8x1xf32>
    %1121 = vector.broadcast %1120 : vector<8x1xf32> to vector<8x32xf32>
    %1122 = arith.subf %1116, %1121 : vector<8x32xf32>
    %1123 = arith.mulf %1122, %1122 : vector<8x32xf32>
    %cst_405 = arith.constant dense<0.000000e+00> : vector<8xf32>
    %1124 = vector.multi_reduction <add>, %1123, %cst_405 [1] : vector<8x32xf32> to vector<8xf32>
    %1125 = vector.shape_cast %1124 : vector<8xf32> to vector<8x1xf32>
    %cst_406 = arith.constant 3.200000e+01 : f32
    %1126 = vector.broadcast %cst_406 : f32 to vector<8x1xf32>
    %1127 = arith.divf %1125, %1126 : vector<8x1xf32>
    %cst_407 = arith.constant 9.99999974E-6 : f32
    %1128 = vector.broadcast %cst_407 : f32 to vector<8x1xf32>
    %1129 = arith.addf %1127, %1128 : vector<8x1xf32>
    %1130 = math.rsqrt %1129 : vector<8x1xf32>
    %1131 = vector.broadcast %1130 : vector<8x1xf32> to vector<8x32xf32>
    %1132 = arith.mulf %1122, %1131 : vector<8x32xf32>
    %1133 = vector.broadcast %1114 : vector<1x32xf32> to vector<8x32xf32>
    %1134 = arith.mulf %1132, %1133 : vector<8x32xf32>
    %1135 = vector.broadcast %1115 : vector<1x32xf32> to vector<8x32xf32>
    %1136 = arith.addf %1134, %1135 : vector<8x32xf32>
    %c0_408 = arith.constant 0 : index
    %c0_409 = arith.constant 0 : index
    %1137 = vector.load %arg8[%c0_408, %c0_409] : memref<32x128xf32, #tpu.memory_space<vmem>>, vector<32x128xf32>
    %cst_410 = arith.constant dense<0.000000e+00> : vector<8x128xf32>
    %1138 = tpu.matmul %1136, %1137, %cst_410 {dimension_numbers = #tpu.dot_dimension_numbers<[1], [0], [0], [1], [0, 0, 1, 1], [], []>} : vector<8x32xf32>, vector<32x128xf32>, vector<8x128xf32> -> vector<8x128xf32>
    %c0_411 = arith.constant 0 : index
    %c0_412 = arith.constant 0 : index
    %1139 = vector.load %arg9[%c0_411, %c0_412] : memref<1x128xf32, #tpu.memory_space<vmem>>, vector<1x128xf32>
    %1140 = vector.broadcast %1139 : vector<1x128xf32> to vector<8x128xf32>
    %1141 = arith.addf %1138, %1140 : vector<8x128xf32>
    %cst_413 = arith.constant 5.000000e-01 : f32
    %1142 = vector.broadcast %cst_413 : f32 to vector<8x128xf32>
    %1143 = arith.mulf %1142, %1141 : vector<8x128xf32>
    %cst_414 = arith.constant 0.707106769 : f32
    %1144 = vector.broadcast %cst_414 : f32 to vector<8x128xf32>
    %1145 = arith.mulf %1141, %1144 : vector<8x128xf32>
    %cst_415 = arith.constant 0.000000e+00 : f32
    %1146 = vector.broadcast %cst_415 : f32 to vector<8x128xf32>
    %1147 = arith.cmpf oge, %1145, %1146 : vector<8x128xf32>
    %cst_416 = arith.constant 1.000000e+00 : f32
    %cst_417 = arith.constant -1.000000e+00 : f32
    %1148 = vector.broadcast %cst_416 : f32 to vector<8x128xf32>
    %1149 = vector.broadcast %cst_417 : f32 to vector<8x128xf32>
    %1150 = arith.select %1147, %1148, %1149 : vector<8x128xi1>, vector<8x128xf32>
    %1151 = math.absf %1145 : vector<8x128xf32>
    %cst_418 = arith.constant 0.327591091 : f32
    %1152 = vector.broadcast %cst_418 : f32 to vector<8x128xf32>
    %1153 = arith.mulf %1152, %1151 : vector<8x128xf32>
    %cst_419 = arith.constant 1.000000e+00 : f32
    %1154 = vector.broadcast %cst_419 : f32 to vector<8x128xf32>
    %1155 = arith.addf %1154, %1153 : vector<8x128xf32>
    %cst_420 = arith.constant 1.000000e+00 : f32
    %1156 = vector.broadcast %cst_420 : f32 to vector<8x128xf32>
    %1157 = arith.divf %1156, %1155 : vector<8x128xf32>
    %cst_421 = arith.constant 1.06140542 : f32
    %1158 = vector.broadcast %cst_421 : f32 to vector<8x128xf32>
    %1159 = arith.mulf %1158, %1157 : vector<8x128xf32>
    %cst_422 = arith.constant -1.45315206 : f32
    %1160 = vector.broadcast %cst_422 : f32 to vector<8x128xf32>
    %1161 = arith.addf %1159, %1160 : vector<8x128xf32>
    %1162 = arith.mulf %1161, %1157 : vector<8x128xf32>
    %cst_423 = arith.constant 1.42141378 : f32
    %1163 = vector.broadcast %cst_423 : f32 to vector<8x128xf32>
    %1164 = arith.addf %1162, %1163 : vector<8x128xf32>
    %1165 = arith.mulf %1164, %1157 : vector<8x128xf32>
    %cst_424 = arith.constant -0.284496725 : f32
    %1166 = vector.broadcast %cst_424 : f32 to vector<8x128xf32>
    %1167 = arith.addf %1165, %1166 : vector<8x128xf32>
    %1168 = arith.mulf %1167, %1157 : vector<8x128xf32>
    %cst_425 = arith.constant 0.254829586 : f32
    %1169 = vector.broadcast %cst_425 : f32 to vector<8x128xf32>
    %1170 = arith.addf %1168, %1169 : vector<8x128xf32>
    %1171 = arith.mulf %1170, %1157 : vector<8x128xf32>
    %cst_426 = arith.constant 0.000000e+00 : f32
    %1172 = vector.broadcast %cst_426 : f32 to vector<8x128xf32>
    %1173 = arith.subf %1172, %1151 : vector<8x128xf32>
    %1174 = arith.mulf %1173, %1151 : vector<8x128xf32>
    %1175 = math.exp %1174 : vector<8x128xf32>
    %1176 = arith.mulf %1171, %1175 : vector<8x128xf32>
    %cst_427 = arith.constant 1.000000e+00 : f32
    %1177 = vector.broadcast %cst_427 : f32 to vector<8x128xf32>
    %1178 = arith.subf %1177, %1176 : vector<8x128xf32>
    %1179 = arith.mulf %1150, %1178 : vector<8x128xf32>
    %cst_428 = arith.constant 1.000000e+00 : f32
    %1180 = vector.broadcast %cst_428 : f32 to vector<8x128xf32>
    %1181 = arith.addf %1180, %1179 : vector<8x128xf32>
    %1182 = arith.mulf %1143, %1181 : vector<8x128xf32>
    %c0_429 = arith.constant 0 : index
    %c0_430 = arith.constant 0 : index
    %1183 = vector.load %arg10[%c0_429, %c0_430] : memref<128x32xf32, #tpu.memory_space<vmem>>, vector<128x32xf32>
    %cst_431 = arith.constant dense<0.000000e+00> : vector<8x32xf32>
    %1184 = tpu.matmul %1182, %1183, %cst_431 {dimension_numbers = #tpu.dot_dimension_numbers<[1], [0], [0], [1], [0, 0, 1, 1], [], []>} : vector<8x128xf32>, vector<128x32xf32>, vector<8x32xf32> -> vector<8x32xf32>
    %c0_432 = arith.constant 0 : index
    %c0_433 = arith.constant 0 : index
    %1185 = vector.load %arg11[%c0_432, %c0_433] : memref<1x32xf32, #tpu.memory_space<vmem>>, vector<1x32xf32>
    %1186 = vector.broadcast %1185 : vector<1x32xf32> to vector<8x32xf32>
    %1187 = arith.addf %1184, %1186 : vector<8x32xf32>
    %c0_434 = arith.constant 0 : index
    %c0_435 = arith.constant 0 : index
    %1188 = vector.load %arg14[%c0_434, %c0_435] : memref<1x32xf32, #tpu.memory_space<vmem>>, vector<1x32xf32>
    %c0_436 = arith.constant 0 : index
    %c0_437 = arith.constant 0 : index
    %1189 = vector.load %arg15[%c0_436, %c0_437] : memref<1x32xf32, #tpu.memory_space<vmem>>, vector<1x32xf32>
    %1190 = arith.addf %1136, %1187 : vector<8x32xf32>
    %cst_438 = arith.constant dense<0.000000e+00> : vector<8xf32>
    %1191 = vector.multi_reduction <add>, %1190, %cst_438 [1] : vector<8x32xf32> to vector<8xf32>
    %1192 = vector.shape_cast %1191 : vector<8xf32> to vector<8x1xf32>
    %cst_439 = arith.constant 3.200000e+01 : f32
    %1193 = vector.broadcast %cst_439 : f32 to vector<8x1xf32>
    %1194 = arith.divf %1192, %1193 : vector<8x1xf32>
    %1195 = vector.broadcast %1194 : vector<8x1xf32> to vector<8x32xf32>
    %1196 = arith.subf %1190, %1195 : vector<8x32xf32>
    %1197 = arith.mulf %1196, %1196 : vector<8x32xf32>
    %cst_440 = arith.constant dense<0.000000e+00> : vector<8xf32>
    %1198 = vector.multi_reduction <add>, %1197, %cst_440 [1] : vector<8x32xf32> to vector<8xf32>
    %1199 = vector.shape_cast %1198 : vector<8xf32> to vector<8x1xf32>
    %cst_441 = arith.constant 3.200000e+01 : f32
    %1200 = vector.broadcast %cst_441 : f32 to vector<8x1xf32>
    %1201 = arith.divf %1199, %1200 : vector<8x1xf32>
    %cst_442 = arith.constant 9.99999974E-6 : f32
    %1202 = vector.broadcast %cst_442 : f32 to vector<8x1xf32>
    %1203 = arith.addf %1201, %1202 : vector<8x1xf32>
    %1204 = math.rsqrt %1203 : vector<8x1xf32>
    %1205 = vector.broadcast %1204 : vector<8x1xf32> to vector<8x32xf32>
    %1206 = arith.mulf %1196, %1205 : vector<8x32xf32>
    %1207 = vector.broadcast %1188 : vector<1x32xf32> to vector<8x32xf32>
    %1208 = arith.mulf %1206, %1207 : vector<8x32xf32>
    %1209 = vector.broadcast %1189 : vector<1x32xf32> to vector<8x32xf32>
    %1210 = arith.addf %1208, %1209 : vector<8x32xf32>
    %c0_443 = arith.constant 0 : index
    %c0_444 = arith.constant 0 : index
    %1211 = vector.load %arg16[%c0_443, %c0_444] : memref<32x96xf32, #tpu.memory_space<vmem>>, vector<32x96xf32>
    %cst_445 = arith.constant dense<0.000000e+00> : vector<8x96xf32>
    %1212 = tpu.matmul %1210, %1211, %cst_445 {dimension_numbers = #tpu.dot_dimension_numbers<[1], [0], [0], [1], [0, 0, 1, 1], [], []>} : vector<8x32xf32>, vector<32x96xf32>, vector<8x96xf32> -> vector<8x96xf32>
    %c0_446 = arith.constant 0 : index
    %c0_447 = arith.constant 0 : index
    %1213 = vector.load %arg17[%c0_446, %c0_447] : memref<1x96xf32, #tpu.memory_space<vmem>>, vector<1x96xf32>
    %1214 = vector.broadcast %1213 : vector<1x96xf32> to vector<8x96xf32>
    %1215 = arith.addf %1212, %1214 : vector<8x96xf32>
    %c0_448 = arith.constant 0 : index
    %c0_449 = arith.constant 0 : index
    %1216 = vector.load %arg18[%c0_448, %c0_449] : memref<32x32xf32, #tpu.memory_space<vmem>>, vector<32x32xf32>
    %cst_450 = arith.constant 0.000000e+00 : f32
    %1217 = vector.broadcast %cst_450 : f32 to vector<8x32xf32>
    %1218 = vector.extract_strided_slice %1215 {offsets = [0, 0], sizes = [8, 8], strides = [1, 1]} : vector<8x96xf32> to vector<8x8xf32>
    %1219 = vector.extract_strided_slice %1215 {offsets = [0, 32], sizes = [8, 8], strides = [1, 1]} : vector<8x96xf32> to vector<8x8xf32>
    %1220 = vector.extract_strided_slice %1215 {offsets = [0, 64], sizes = [8, 8], strides = [1, 1]} : vector<8x96xf32> to vector<8x8xf32>
    %cst_451 = arith.constant dense<0.000000e+00> : vector<8x8xf32>
    %1221 = tpu.matmul %1218, %1219, %cst_451 {dimension_numbers = #tpu.dot_dimension_numbers<[1], [1], [0], [0], [0, 0, 1, 0], [], []>} : vector<8x8xf32>, vector<8x8xf32>, vector<8x8xf32> -> vector<8x8xf32>
    %cst_452 = arith.constant 0.353553385 : f32
    %1222 = vector.broadcast %cst_452 : f32 to vector<8x8xf32>
    %1223 = arith.mulf %1221, %1222 : vector<8x8xf32>
    %cst_453 = arith.constant dense<0xFF800000> : vector<8xf32>
    %1224 = vector.multi_reduction <maximumf>, %1223, %cst_453 [1] : vector<8x8xf32> to vector<8xf32>
    %1225 = vector.shape_cast %1224 : vector<8xf32> to vector<8x1xf32>
    %1226 = vector.broadcast %1225 : vector<8x1xf32> to vector<8x8xf32>
    %1227 = arith.subf %1223, %1226 : vector<8x8xf32>
    %1228 = math.exp %1227 : vector<8x8xf32>
    %cst_454 = arith.constant dense<0.000000e+00> : vector<8xf32>
    %1229 = vector.multi_reduction <add>, %1228, %cst_454 [1] : vector<8x8xf32> to vector<8xf32>
    %1230 = vector.shape_cast %1229 : vector<8xf32> to vector<8x1xf32>
    %1231 = tpu.reciprocal %1230 {approx = true} : vector<8x1xf32> -> vector<8x1xf32>
    %1232 = vector.broadcast %1231 : vector<8x1xf32> to vector<8x8xf32>
    %1233 = arith.mulf %1228, %1232 : vector<8x8xf32>
    %cst_455 = arith.constant dense<0.000000e+00> : vector<8x8xf32>
    %1234 = tpu.matmul %1233, %1220, %cst_455 {dimension_numbers = #tpu.dot_dimension_numbers<[1], [0], [0], [1], [0, 0, 1, 1], [], []>} : vector<8x8xf32>, vector<8x8xf32>, vector<8x8xf32> -> vector<8x8xf32>
    %1235 = vector.extract_strided_slice %1216 {offsets = [0, 0], sizes = [8, 32], strides = [1, 1]} : vector<32x32xf32> to vector<8x32xf32>
    %cst_456 = arith.constant dense<0.000000e+00> : vector<8x32xf32>
    %1236 = tpu.matmul %1234, %1235, %cst_456 {dimension_numbers = #tpu.dot_dimension_numbers<[1], [0], [0], [1], [0, 0, 1, 1], [], []>} : vector<8x8xf32>, vector<8x32xf32>, vector<8x32xf32> -> vector<8x32xf32>
    %1237 = arith.addf %1217, %1236 : vector<8x32xf32>
    %1238 = vector.extract_strided_slice %1215 {offsets = [0, 8], sizes = [8, 8], strides = [1, 1]} : vector<8x96xf32> to vector<8x8xf32>
    %1239 = vector.extract_strided_slice %1215 {offsets = [0, 40], sizes = [8, 8], strides = [1, 1]} : vector<8x96xf32> to vector<8x8xf32>
    %1240 = vector.extract_strided_slice %1215 {offsets = [0, 72], sizes = [8, 8], strides = [1, 1]} : vector<8x96xf32> to vector<8x8xf32>
    %cst_457 = arith.constant dense<0.000000e+00> : vector<8x8xf32>
    %1241 = tpu.matmul %1238, %1239, %cst_457 {dimension_numbers = #tpu.dot_dimension_numbers<[1], [1], [0], [0], [0, 0, 1, 0], [], []>} : vector<8x8xf32>, vector<8x8xf32>, vector<8x8xf32> -> vector<8x8xf32>
    %cst_458 = arith.constant 0.353553385 : f32
    %1242 = vector.broadcast %cst_458 : f32 to vector<8x8xf32>
    %1243 = arith.mulf %1241, %1242 : vector<8x8xf32>
    %cst_459 = arith.constant dense<0xFF800000> : vector<8xf32>
    %1244 = vector.multi_reduction <maximumf>, %1243, %cst_459 [1] : vector<8x8xf32> to vector<8xf32>
    %1245 = vector.shape_cast %1244 : vector<8xf32> to vector<8x1xf32>
    %1246 = vector.broadcast %1245 : vector<8x1xf32> to vector<8x8xf32>
    %1247 = arith.subf %1243, %1246 : vector<8x8xf32>
    %1248 = math.exp %1247 : vector<8x8xf32>
    %cst_460 = arith.constant dense<0.000000e+00> : vector<8xf32>
    %1249 = vector.multi_reduction <add>, %1248, %cst_460 [1] : vector<8x8xf32> to vector<8xf32>
    %1250 = vector.shape_cast %1249 : vector<8xf32> to vector<8x1xf32>
    %1251 = tpu.reciprocal %1250 {approx = true} : vector<8x1xf32> -> vector<8x1xf32>
    %1252 = vector.broadcast %1251 : vector<8x1xf32> to vector<8x8xf32>
    %1253 = arith.mulf %1248, %1252 : vector<8x8xf32>
    %cst_461 = arith.constant dense<0.000000e+00> : vector<8x8xf32>
    %1254 = tpu.matmul %1253, %1240, %cst_461 {dimension_numbers = #tpu.dot_dimension_numbers<[1], [0], [0], [1], [0, 0, 1, 1], [], []>} : vector<8x8xf32>, vector<8x8xf32>, vector<8x8xf32> -> vector<8x8xf32>
    %1255 = vector.extract_strided_slice %1216 {offsets = [8, 0], sizes = [8, 32], strides = [1, 1]} : vector<32x32xf32> to vector<8x32xf32>
    %cst_462 = arith.constant dense<0.000000e+00> : vector<8x32xf32>
    %1256 = tpu.matmul %1254, %1255, %cst_462 {dimension_numbers = #tpu.dot_dimension_numbers<[1], [0], [0], [1], [0, 0, 1, 1], [], []>} : vector<8x8xf32>, vector<8x32xf32>, vector<8x32xf32> -> vector<8x32xf32>
    %1257 = arith.addf %1237, %1256 : vector<8x32xf32>
    %1258 = vector.extract_strided_slice %1215 {offsets = [0, 16], sizes = [8, 8], strides = [1, 1]} : vector<8x96xf32> to vector<8x8xf32>
    %1259 = vector.extract_strided_slice %1215 {offsets = [0, 48], sizes = [8, 8], strides = [1, 1]} : vector<8x96xf32> to vector<8x8xf32>
    %1260 = vector.extract_strided_slice %1215 {offsets = [0, 80], sizes = [8, 8], strides = [1, 1]} : vector<8x96xf32> to vector<8x8xf32>
    %cst_463 = arith.constant dense<0.000000e+00> : vector<8x8xf32>
    %1261 = tpu.matmul %1258, %1259, %cst_463 {dimension_numbers = #tpu.dot_dimension_numbers<[1], [1], [0], [0], [0, 0, 1, 0], [], []>} : vector<8x8xf32>, vector<8x8xf32>, vector<8x8xf32> -> vector<8x8xf32>
    %cst_464 = arith.constant 0.353553385 : f32
    %1262 = vector.broadcast %cst_464 : f32 to vector<8x8xf32>
    %1263 = arith.mulf %1261, %1262 : vector<8x8xf32>
    %cst_465 = arith.constant dense<0xFF800000> : vector<8xf32>
    %1264 = vector.multi_reduction <maximumf>, %1263, %cst_465 [1] : vector<8x8xf32> to vector<8xf32>
    %1265 = vector.shape_cast %1264 : vector<8xf32> to vector<8x1xf32>
    %1266 = vector.broadcast %1265 : vector<8x1xf32> to vector<8x8xf32>
    %1267 = arith.subf %1263, %1266 : vector<8x8xf32>
    %1268 = math.exp %1267 : vector<8x8xf32>
    %cst_466 = arith.constant dense<0.000000e+00> : vector<8xf32>
    %1269 = vector.multi_reduction <add>, %1268, %cst_466 [1] : vector<8x8xf32> to vector<8xf32>
    %1270 = vector.shape_cast %1269 : vector<8xf32> to vector<8x1xf32>
    %1271 = tpu.reciprocal %1270 {approx = true} : vector<8x1xf32> -> vector<8x1xf32>
    %1272 = vector.broadcast %1271 : vector<8x1xf32> to vector<8x8xf32>
    %1273 = arith.mulf %1268, %1272 : vector<8x8xf32>
    %cst_467 = arith.constant dense<0.000000e+00> : vector<8x8xf32>
    %1274 = tpu.matmul %1273, %1260, %cst_467 {dimension_numbers = #tpu.dot_dimension_numbers<[1], [0], [0], [1], [0, 0, 1, 1], [], []>} : vector<8x8xf32>, vector<8x8xf32>, vector<8x8xf32> -> vector<8x8xf32>
    %1275 = vector.extract_strided_slice %1216 {offsets = [16, 0], sizes = [8, 32], strides = [1, 1]} : vector<32x32xf32> to vector<8x32xf32>
    %cst_468 = arith.constant dense<0.000000e+00> : vector<8x32xf32>
    %1276 = tpu.matmul %1274, %1275, %cst_468 {dimension_numbers = #tpu.dot_dimension_numbers<[1], [0], [0], [1], [0, 0, 1, 1], [], []>} : vector<8x8xf32>, vector<8x32xf32>, vector<8x32xf32> -> vector<8x32xf32>
    %1277 = arith.addf %1257, %1276 : vector<8x32xf32>
    %1278 = vector.extract_strided_slice %1215 {offsets = [0, 24], sizes = [8, 8], strides = [1, 1]} : vector<8x96xf32> to vector<8x8xf32>
    %1279 = vector.extract_strided_slice %1215 {offsets = [0, 56], sizes = [8, 8], strides = [1, 1]} : vector<8x96xf32> to vector<8x8xf32>
    %1280 = vector.extract_strided_slice %1215 {offsets = [0, 88], sizes = [8, 8], strides = [1, 1]} : vector<8x96xf32> to vector<8x8xf32>
    %cst_469 = arith.constant dense<0.000000e+00> : vector<8x8xf32>
    %1281 = tpu.matmul %1278, %1279, %cst_469 {dimension_numbers = #tpu.dot_dimension_numbers<[1], [1], [0], [0], [0, 0, 1, 0], [], []>} : vector<8x8xf32>, vector<8x8xf32>, vector<8x8xf32> -> vector<8x8xf32>
    %cst_470 = arith.constant 0.353553385 : f32
    %1282 = vector.broadcast %cst_470 : f32 to vector<8x8xf32>
    %1283 = arith.mulf %1281, %1282 : vector<8x8xf32>
    %cst_471 = arith.constant dense<0xFF800000> : vector<8xf32>
    %1284 = vector.multi_reduction <maximumf>, %1283, %cst_471 [1] : vector<8x8xf32> to vector<8xf32>
    %1285 = vector.shape_cast %1284 : vector<8xf32> to vector<8x1xf32>
    %1286 = vector.broadcast %1285 : vector<8x1xf32> to vector<8x8xf32>
    %1287 = arith.subf %1283, %1286 : vector<8x8xf32>
    %1288 = math.exp %1287 : vector<8x8xf32>
    %cst_472 = arith.constant dense<0.000000e+00> : vector<8xf32>
    %1289 = vector.multi_reduction <add>, %1288, %cst_472 [1] : vector<8x8xf32> to vector<8xf32>
    %1290 = vector.shape_cast %1289 : vector<8xf32> to vector<8x1xf32>
    %1291 = tpu.reciprocal %1290 {approx = true} : vector<8x1xf32> -> vector<8x1xf32>
    %1292 = vector.broadcast %1291 : vector<8x1xf32> to vector<8x8xf32>
    %1293 = arith.mulf %1288, %1292 : vector<8x8xf32>
    %cst_473 = arith.constant dense<0.000000e+00> : vector<8x8xf32>
    %1294 = tpu.matmul %1293, %1280, %cst_473 {dimension_numbers = #tpu.dot_dimension_numbers<[1], [0], [0], [1], [0, 0, 1, 1], [], []>} : vector<8x8xf32>, vector<8x8xf32>, vector<8x8xf32> -> vector<8x8xf32>
    %1295 = vector.extract_strided_slice %1216 {offsets = [24, 0], sizes = [8, 32], strides = [1, 1]} : vector<32x32xf32> to vector<8x32xf32>
    %cst_474 = arith.constant dense<0.000000e+00> : vector<8x32xf32>
    %1296 = tpu.matmul %1294, %1295, %cst_474 {dimension_numbers = #tpu.dot_dimension_numbers<[1], [0], [0], [1], [0, 0, 1, 1], [], []>} : vector<8x8xf32>, vector<8x32xf32>, vector<8x32xf32> -> vector<8x32xf32>
    %1297 = arith.addf %1277, %1296 : vector<8x32xf32>
    %c0_475 = arith.constant 0 : index
    %c0_476 = arith.constant 0 : index
    %1298 = vector.load %arg19[%c0_475, %c0_476] : memref<1x32xf32, #tpu.memory_space<vmem>>, vector<1x32xf32>
    %1299 = vector.broadcast %1298 : vector<1x32xf32> to vector<8x32xf32>
    %1300 = arith.addf %1297, %1299 : vector<8x32xf32>
    %c0_477 = arith.constant 0 : index
    %c0_478 = arith.constant 0 : index
    %1301 = vector.load %arg24[%c0_477, %c0_478] : memref<1x32xf32, #tpu.memory_space<vmem>>, vector<1x32xf32>
    %c0_479 = arith.constant 0 : index
    %c0_480 = arith.constant 0 : index
    %1302 = vector.load %arg25[%c0_479, %c0_480] : memref<1x32xf32, #tpu.memory_space<vmem>>, vector<1x32xf32>
    %1303 = arith.addf %1210, %1300 : vector<8x32xf32>
    %cst_481 = arith.constant dense<0.000000e+00> : vector<8xf32>
    %1304 = vector.multi_reduction <add>, %1303, %cst_481 [1] : vector<8x32xf32> to vector<8xf32>
    %1305 = vector.shape_cast %1304 : vector<8xf32> to vector<8x1xf32>
    %cst_482 = arith.constant 3.200000e+01 : f32
    %1306 = vector.broadcast %cst_482 : f32 to vector<8x1xf32>
    %1307 = arith.divf %1305, %1306 : vector<8x1xf32>
    %1308 = vector.broadcast %1307 : vector<8x1xf32> to vector<8x32xf32>
    %1309 = arith.subf %1303, %1308 : vector<8x32xf32>
    %1310 = arith.mulf %1309, %1309 : vector<8x32xf32>
    %cst_483 = arith.constant dense<0.000000e+00> : vector<8xf32>
    %1311 = vector.multi_reduction <add>, %1310, %cst_483 [1] : vector<8x32xf32> to vector<8xf32>
    %1312 = vector.shape_cast %1311 : vector<8xf32> to vector<8x1xf32>
    %cst_484 = arith.constant 3.200000e+01 : f32
    %1313 = vector.broadcast %cst_484 : f32 to vector<8x1xf32>
    %1314 = arith.divf %1312, %1313 : vector<8x1xf32>
    %cst_485 = arith.constant 9.99999974E-6 : f32
    %1315 = vector.broadcast %cst_485 : f32 to vector<8x1xf32>
    %1316 = arith.addf %1314, %1315 : vector<8x1xf32>
    %1317 = math.rsqrt %1316 : vector<8x1xf32>
    %1318 = vector.broadcast %1317 : vector<8x1xf32> to vector<8x32xf32>
    %1319 = arith.mulf %1309, %1318 : vector<8x32xf32>
    %1320 = vector.broadcast %1301 : vector<1x32xf32> to vector<8x32xf32>
    %1321 = arith.mulf %1319, %1320 : vector<8x32xf32>
    %1322 = vector.broadcast %1302 : vector<1x32xf32> to vector<8x32xf32>
    %1323 = arith.addf %1321, %1322 : vector<8x32xf32>
    %c0_486 = arith.constant 0 : index
    %c0_487 = arith.constant 0 : index
    %1324 = vector.load %arg20[%c0_486, %c0_487] : memref<32x128xf32, #tpu.memory_space<vmem>>, vector<32x128xf32>
    %cst_488 = arith.constant dense<0.000000e+00> : vector<8x128xf32>
    %1325 = tpu.matmul %1323, %1324, %cst_488 {dimension_numbers = #tpu.dot_dimension_numbers<[1], [0], [0], [1], [0, 0, 1, 1], [], []>} : vector<8x32xf32>, vector<32x128xf32>, vector<8x128xf32> -> vector<8x128xf32>
    %c0_489 = arith.constant 0 : index
    %c0_490 = arith.constant 0 : index
    %1326 = vector.load %arg21[%c0_489, %c0_490] : memref<1x128xf32, #tpu.memory_space<vmem>>, vector<1x128xf32>
    %1327 = vector.broadcast %1326 : vector<1x128xf32> to vector<8x128xf32>
    %1328 = arith.addf %1325, %1327 : vector<8x128xf32>
    %cst_491 = arith.constant 5.000000e-01 : f32
    %1329 = vector.broadcast %cst_491 : f32 to vector<8x128xf32>
    %1330 = arith.mulf %1329, %1328 : vector<8x128xf32>
    %cst_492 = arith.constant 0.707106769 : f32
    %1331 = vector.broadcast %cst_492 : f32 to vector<8x128xf32>
    %1332 = arith.mulf %1328, %1331 : vector<8x128xf32>
    %cst_493 = arith.constant 0.000000e+00 : f32
    %1333 = vector.broadcast %cst_493 : f32 to vector<8x128xf32>
    %1334 = arith.cmpf oge, %1332, %1333 : vector<8x128xf32>
    %cst_494 = arith.constant 1.000000e+00 : f32
    %cst_495 = arith.constant -1.000000e+00 : f32
    %1335 = vector.broadcast %cst_494 : f32 to vector<8x128xf32>
    %1336 = vector.broadcast %cst_495 : f32 to vector<8x128xf32>
    %1337 = arith.select %1334, %1335, %1336 : vector<8x128xi1>, vector<8x128xf32>
    %1338 = math.absf %1332 : vector<8x128xf32>
    %cst_496 = arith.constant 0.327591091 : f32
    %1339 = vector.broadcast %cst_496 : f32 to vector<8x128xf32>
    %1340 = arith.mulf %1339, %1338 : vector<8x128xf32>
    %cst_497 = arith.constant 1.000000e+00 : f32
    %1341 = vector.broadcast %cst_497 : f32 to vector<8x128xf32>
    %1342 = arith.addf %1341, %1340 : vector<8x128xf32>
    %cst_498 = arith.constant 1.000000e+00 : f32
    %1343 = vector.broadcast %cst_498 : f32 to vector<8x128xf32>
    %1344 = arith.divf %1343, %1342 : vector<8x128xf32>
    %cst_499 = arith.constant 1.06140542 : f32
    %1345 = vector.broadcast %cst_499 : f32 to vector<8x128xf32>
    %1346 = arith.mulf %1345, %1344 : vector<8x128xf32>
    %cst_500 = arith.constant -1.45315206 : f32
    %1347 = vector.broadcast %cst_500 : f32 to vector<8x128xf32>
    %1348 = arith.addf %1346, %1347 : vector<8x128xf32>
    %1349 = arith.mulf %1348, %1344 : vector<8x128xf32>
    %cst_501 = arith.constant 1.42141378 : f32
    %1350 = vector.broadcast %cst_501 : f32 to vector<8x128xf32>
    %1351 = arith.addf %1349, %1350 : vector<8x128xf32>
    %1352 = arith.mulf %1351, %1344 : vector<8x128xf32>
    %cst_502 = arith.constant -0.284496725 : f32
    %1353 = vector.broadcast %cst_502 : f32 to vector<8x128xf32>
    %1354 = arith.addf %1352, %1353 : vector<8x128xf32>
    %1355 = arith.mulf %1354, %1344 : vector<8x128xf32>
    %cst_503 = arith.constant 0.254829586 : f32
    %1356 = vector.broadcast %cst_503 : f32 to vector<8x128xf32>
    %1357 = arith.addf %1355, %1356 : vector<8x128xf32>
    %1358 = arith.mulf %1357, %1344 : vector<8x128xf32>
    %cst_504 = arith.constant 0.000000e+00 : f32
    %1359 = vector.broadcast %cst_504 : f32 to vector<8x128xf32>
    %1360 = arith.subf %1359, %1338 : vector<8x128xf32>
    %1361 = arith.mulf %1360, %1338 : vector<8x128xf32>
    %1362 = math.exp %1361 : vector<8x128xf32>
    %1363 = arith.mulf %1358, %1362 : vector<8x128xf32>
    %cst_505 = arith.constant 1.000000e+00 : f32
    %1364 = vector.broadcast %cst_505 : f32 to vector<8x128xf32>
    %1365 = arith.subf %1364, %1363 : vector<8x128xf32>
    %1366 = arith.mulf %1337, %1365 : vector<8x128xf32>
    %cst_506 = arith.constant 1.000000e+00 : f32
    %1367 = vector.broadcast %cst_506 : f32 to vector<8x128xf32>
    %1368 = arith.addf %1367, %1366 : vector<8x128xf32>
    %1369 = arith.mulf %1330, %1368 : vector<8x128xf32>
    %c0_507 = arith.constant 0 : index
    %c0_508 = arith.constant 0 : index
    %1370 = vector.load %arg22[%c0_507, %c0_508] : memref<128x32xf32, #tpu.memory_space<vmem>>, vector<128x32xf32>
    %cst_509 = arith.constant dense<0.000000e+00> : vector<8x32xf32>
    %1371 = tpu.matmul %1369, %1370, %cst_509 {dimension_numbers = #tpu.dot_dimension_numbers<[1], [0], [0], [1], [0, 0, 1, 1], [], []>} : vector<8x128xf32>, vector<128x32xf32>, vector<8x32xf32> -> vector<8x32xf32>
    %c0_510 = arith.constant 0 : index
    %c0_511 = arith.constant 0 : index
    %1372 = vector.load %arg23[%c0_510, %c0_511] : memref<1x32xf32, #tpu.memory_space<vmem>>, vector<1x32xf32>
    %1373 = vector.broadcast %1372 : vector<1x32xf32> to vector<8x32xf32>
    %1374 = arith.addf %1371, %1373 : vector<8x32xf32>
    %c0_512 = arith.constant 0 : index
    %c0_513 = arith.constant 0 : index
    %1375 = vector.load %arg26[%c0_512, %c0_513] : memref<1x32xf32, #tpu.memory_space<vmem>>, vector<1x32xf32>
    %c0_514 = arith.constant 0 : index
    %c0_515 = arith.constant 0 : index
    %1376 = vector.load %arg27[%c0_514, %c0_515] : memref<1x32xf32, #tpu.memory_space<vmem>>, vector<1x32xf32>
    %1377 = arith.addf %1323, %1374 : vector<8x32xf32>
    %cst_516 = arith.constant dense<0.000000e+00> : vector<8xf32>
    %1378 = vector.multi_reduction <add>, %1377, %cst_516 [1] : vector<8x32xf32> to vector<8xf32>
    %1379 = vector.shape_cast %1378 : vector<8xf32> to vector<8x1xf32>
    %cst_517 = arith.constant 3.200000e+01 : f32
    %1380 = vector.broadcast %cst_517 : f32 to vector<8x1xf32>
    %1381 = arith.divf %1379, %1380 : vector<8x1xf32>
    %1382 = vector.broadcast %1381 : vector<8x1xf32> to vector<8x32xf32>
    %1383 = arith.subf %1377, %1382 : vector<8x32xf32>
    %1384 = arith.mulf %1383, %1383 : vector<8x32xf32>
    %cst_518 = arith.constant dense<0.000000e+00> : vector<8xf32>
    %1385 = vector.multi_reduction <add>, %1384, %cst_518 [1] : vector<8x32xf32> to vector<8xf32>
    %1386 = vector.shape_cast %1385 : vector<8xf32> to vector<8x1xf32>
    %cst_519 = arith.constant 3.200000e+01 : f32
    %1387 = vector.broadcast %cst_519 : f32 to vector<8x1xf32>
    %1388 = arith.divf %1386, %1387 : vector<8x1xf32>
    %cst_520 = arith.constant 9.99999974E-6 : f32
    %1389 = vector.broadcast %cst_520 : f32 to vector<8x1xf32>
    %1390 = arith.addf %1388, %1389 : vector<8x1xf32>
    %1391 = math.rsqrt %1390 : vector<8x1xf32>
    %1392 = vector.broadcast %1391 : vector<8x1xf32> to vector<8x32xf32>
    %1393 = arith.mulf %1383, %1392 : vector<8x32xf32>
    %1394 = vector.broadcast %1375 : vector<1x32xf32> to vector<8x32xf32>
    %1395 = arith.mulf %1393, %1394 : vector<8x32xf32>
    %1396 = vector.broadcast %1376 : vector<1x32xf32> to vector<8x32xf32>
    %1397 = arith.addf %1395, %1396 : vector<8x32xf32>
    %c0_521 = arith.constant 0 : index
    %c0_522 = arith.constant 0 : index
    %1398 = vector.load %arg28[%c0_521, %c0_522] : memref<32x128xf32, #tpu.memory_space<vmem>>, vector<32x128xf32>
    %cst_523 = arith.constant dense<0.000000e+00> : vector<8x128xf32>
    %1399 = tpu.matmul %1397, %1398, %cst_523 {dimension_numbers = #tpu.dot_dimension_numbers<[1], [0], [0], [1], [0, 0, 1, 1], [], []>} : vector<8x32xf32>, vector<32x128xf32>, vector<8x128xf32> -> vector<8x128xf32>
    %c0_524 = arith.constant 0 : index
    %c0_525 = arith.constant 0 : index
    %1400 = vector.load %arg29[%c0_524, %c0_525] : memref<1x128xf32, #tpu.memory_space<vmem>>, vector<1x128xf32>
    %1401 = vector.broadcast %1400 : vector<1x128xf32> to vector<8x128xf32>
    %1402 = arith.addf %1399, %1401 : vector<8x128xf32>
    %c0_526 = arith.constant 0 : index
    %c0_527 = arith.constant 0 : index
    %c0_528 = arith.constant 0 : index
    %1403 = vector.load %arg30[%c0_526, %c0_527, %c0_528] : memref<1x8x128xf32, #tpu.memory_space<vmem>>, vector<1x8x128xf32>
    %1404 = vector.shape_cast %1403 : vector<1x8x128xf32> to vector<8x128xf32>
    %1405 = vector.shape_cast %1402 : vector<8x128xf32> to vector<1x8x128xf32>
    tpu.vector_store %arg30[%c0_526, %c0_527, %c0_528], %1405 {strides = array<i32>} : memref<1x8x128xf32, #tpu.memory_space<vmem>>, vector<1x8x128xf32>,
    return
  }
  func.func @transform_0(%arg0: i32) -> (i32, i32, i32, i32) {
    %c0_i32 = arith.constant 0 : i32
    %c0_i32_0 = arith.constant 0 : i32
    %c0_i32_1 = arith.constant 0 : i32
    %c0_i32_2 = arith.constant 0 : i32
    return %arg0, %c0_i32, %c0_i32_0, %c0_i32_1 : i32, i32, i32, i32
  }
  func.func @transform_1(%arg0: i32) -> (i32, i32) {
    %c0_i32 = arith.constant 0 : i32
    %c0_i32_0 = arith.constant 0 : i32
    %c0_i32_1 = arith.constant 0 : i32
    return %c0_i32, %c0_i32_0 : i32, i32
  }
  func.func @transform_2(%arg0: i32) -> i32 {
    %c0_i32 = arith.constant 0 : i32
    %c0_i32_0 = arith.constant 0 : i32
    return %c0_i32 : i32
  }
  func.func @transform_3(%arg0: i32) -> (i32, i32) {
    %c0_i32 = arith.constant 0 : i32
    %c0_i32_0 = arith.constant 0 : i32
    %c0_i32_1 = arith.constant 0 : i32
    return %c0_i32, %c0_i32_0 : i32, i32
  }
  func.func @transform_4(%arg0: i32) -> (i32, i32) {
    %c0_i32 = arith.constant 0 : i32
    %c0_i32_0 = arith.constant 0 : i32
    %c0_i32_1 = arith.constant 0 : i32
    return %c0_i32, %c0_i32_0 : i32, i32
  }
  func.func @transform_5(%arg0: i32) -> (i32, i32) {
    %c0_i32 = arith.constant 0 : i32
    %c0_i32_0 = arith.constant 0 : i32
    %c0_i32_1 = arith.constant 0 : i32
    return %c0_i32, %c0_i32_0 : i32, i32
  }
  func.func @transform_6(%arg0: i32) -> (i32, i32) {
    %c0_i32 = arith.constant 0 : i32
    %c0_i32_0 = arith.constant 0 : i32
    %c0_i32_1 = arith.constant 0 : i32
    return %c0_i32, %c0_i32_0 : i32, i32
  }
  func.func @transform_7(%arg0: i32) -> (i32, i32) {
    %c0_i32 = arith.constant 0 : i32
    %c0_i32_0 = arith.constant 0 : i32
    %c0_i32_1 = arith.constant 0 : i32
    return %c0_i32, %c0_i32_0 : i32, i32
  }
  func.func @transform_8(%arg0: i32) -> (i32, i32) {
    %c0_i32 = arith.constant 0 : i32
    %c0_i32_0 = arith.constant 0 : i32
    %c0_i32_1 = arith.constant 0 : i32
    return %c0_i32, %c0_i32_0 : i32, i32
  }
  func.func @transform_9(%arg0: i32) -> (i32, i32) {
    %c0_i32 = arith.constant 0 : i32
    %c0_i32_0 = arith.constant 0 : i32
    %c0_i32_1 = arith.constant 0 : i32
    return %c0_i32, %c0_i32_0 : i32, i32
  }
  func.func @transform_10(%arg0: i32) -> (i32, i32) {
    %c0_i32 = arith.constant 0 : i32
    %c0_i32_0 = arith.constant 0 : i32
    %c0_i32_1 = arith.constant 0 : i32
    return %c0_i32, %c0_i32_0 : i32, i32
  }
  func.func @transform_11(%arg0: i32) -> (i32, i32) {
    %c0_i32 = arith.constant 0 : i32
    %c0_i32_0 = arith.constant 0 : i32
    %c0_i32_1 = arith.constant 0 : i32
    return %c0_i32, %c0_i32_0 : i32, i32
  }
  func.func @transform_12(%arg0: i32) -> (i32, i32) {
    %c0_i32 = arith.constant 0 : i32
    %c0_i32_0 = arith.constant 0 : i32
    %c0_i32_1 = arith.constant 0 : i32
    return %c0_i32, %c0_i32_0 : i32, i32
  }
  func.func @transform_13(%arg0: i32) -> (i32, i32) {
    %c0_i32 = arith.constant 0 : i32
    %c0_i32_0 = arith.constant 0 : i32
    %c0_i32_1 = arith.constant 0 : i32
    return %c0_i32, %c0_i32_0 : i32, i32
  }
  func.func @transform_14(%arg0: i32) -> (i32, i32) {
    %c0_i32 = arith.constant 0 : i32
    %c0_i32_0 = arith.constant 0 : i32
    %c0_i32_1 = arith.constant 0 : i32
    return %c0_i32, %c0_i32_0 : i32, i32
  }
  func.func @transform_15(%arg0: i32) -> (i32, i32) {
    %c0_i32 = arith.constant 0 : i32
    %c0_i32_0 = arith.constant 0 : i32
    %c0_i32_1 = arith.constant 0 : i32
    return %c0_i32, %c0_i32_0 : i32, i32
  }
  func.func @transform_16(%arg0: i32) -> (i32, i32) {
    %c0_i32 = arith.constant 0 : i32
    %c0_i32_0 = arith.constant 0 : i32
    %c0_i32_1 = arith.constant 0 : i32
    return %c0_i32, %c0_i32_0 : i32, i32
  }
  func.func @transform_17(%arg0: i32) -> (i32, i32) {
    %c0_i32 = arith.constant 0 : i32
    %c0_i32_0 = arith.constant 0 : i32
    %c0_i32_1 = arith.constant 0 : i32
    return %c0_i32, %c0_i32_0 : i32, i32
  }
  func.func @transform_18(%arg0: i32) -> (i32, i32) {
    %c0_i32 = arith.constant 0 : i32
    %c0_i32_0 = arith.constant 0 : i32
    %c0_i32_1 = arith.constant 0 : i32
    return %c0_i32, %c0_i32_0 : i32, i32
  }
  func.func @transform_19(%arg0: i32) -> (i32, i32) {
    %c0_i32 = arith.constant 0 : i32
    %c0_i32_0 = arith.constant 0 : i32
    %c0_i32_1 = arith.constant 0 : i32
    return %c0_i32, %c0_i32_0 : i32, i32
  }
  func.func @transform_20(%arg0: i32) -> (i32, i32) {
    %c0_i32 = arith.constant 0 : i32
    %c0_i32_0 = arith.constant 0 : i32
    %c0_i32_1 = arith.constant 0 : i32
    return %c0_i32, %c0_i32_0 : i32, i32
  }
  func.func @transform_21(%arg0: i32) -> (i32, i32) {
    %c0_i32 = arith.constant 0 : i32
    %c0_i32_0 = arith.constant 0 : i32
    %c0_i32_1 = arith.constant 0 : i32
    return %c0_i32, %c0_i32_0 : i32, i32
  }
  func.func @transform_22(%arg0: i32) -> (i32, i32) {
    %c0_i32 = arith.constant 0 : i32
    %c0_i32_0 = arith.constant 0 : i32
    %c0_i32_1 = arith.constant 0 : i32
    return %c0_i32, %c0_i32_0 : i32, i32
  }
  func.func @transform_23(%arg0: i32) -> (i32, i32) {
    %c0_i32 = arith.constant 0 : i32
    %c0_i32_0 = arith.constant 0 : i32
    %c0_i32_1 = arith.constant 0 : i32
    return %c0_i32, %c0_i32_0 : i32, i32
  }
  func.func @transform_24(%arg0: i32) -> (i32, i32) {
    %c0_i32 = arith.constant 0 : i32
    %c0_i32_0 = arith.constant 0 : i32
    %c0_i32_1 = arith.constant 0 : i32
    return %c0_i32, %c0_i32_0 : i32, i32
  }
  func.func @transform_25(%arg0: i32) -> (i32, i32) {
    %c0_i32 = arith.constant 0 : i32
    %c0_i32_0 = arith.constant 0 : i32
    %c0_i32_1 = arith.constant 0 : i32
    return %c0_i32, %c0_i32_0 : i32, i32
  }
  func.func @transform_26(%arg0: i32) -> (i32, i32) {
    %c0_i32 = arith.constant 0 : i32
    %c0_i32_0 = arith.constant 0 : i32
    %c0_i32_1 = arith.constant 0 : i32
    return %c0_i32, %c0_i32_0 : i32, i32
  }
  func.func @transform_27(%arg0: i32) -> (i32, i32) {
    %c0_i32 = arith.constant 0 : i32
    %c0_i32_0 = arith.constant 0 : i32
    %c0_i32_1 = arith.constant 0 : i32
    return %c0_i32, %c0_i32_0 : i32, i32
  }
  func.func @transform_28(%arg0: i32) -> (i32, i32) {
    %c0_i32 = arith.constant 0 : i32
    %c0_i32_0 = arith.constant 0 : i32
    %c0_i32_1 = arith.constant 0 : i32
    return %c0_i32, %c0_i32_0 : i32, i32
  }
  func.func @transform_29(%arg0: i32) -> (i32, i32, i32) {
    %c0_i32 = arith.constant 0 : i32
    %c0_i32_0 = arith.constant 0 : i32
    %c0_i32_1 = arith.constant 0 : i32
    return %arg0, %c0_i32, %c0_i32_0 : i32, i32, i32
  }
}

</mosaic_0001>

<bundles_post_ra>
// kernel: net_forward.1
= control target key start
LH: loop header
LB: loop body
LE: loop exit
PB: predicated region body
PF: predicated region fallthrough
CT: control target
= control target key end

     0   :  { %s5838_s6 = smov 1   ;;  %s5839_s10 = smov 2   ;;  %s7198_s0 = inlined_call_operand.smem [shape: u32[30], index: -1, kind: input, shape index: {}] }
   0x1   :  { %s5892_s5 = sld [smem:[%s7198_s0]]   ;;  %s5840_s14 = smov 3  }
   0x2   :  { %s5897_s9 = sld [smem:[%s7198_s0 + %s5838_s6]]   ;;  %s5841_s18 = smov 4  }
   0x3   :  { %s5902_s13 = sld [smem:[%s7198_s0 + %s5839_s10]]   ;;  %s5842_s22 = smov 5  }
   0x4   :  { %s5907_s17 = sld [smem:[%s7198_s0 + %s5840_s14]]   ;;  %s5843_s26 = smov 6  }
   0x5   :  { %s5912_s21 = sld [smem:[%s7198_s0 + %s5841_s18]]   ;;  %s5844_s30 = smov 7  }
   0x6   :  { %s5917_s25 = sld [smem:[%s7198_s0 + %s5842_s22]]   ;;  %s5845_s4 = smov 8  }
   0x7   :  { %s5922_s29 = sld [smem:[%s7198_s0 + %s5843_s26]]   ;;  %s5846_s10 = smov 9  }
   0x8   :  { %s5927_s3 = sld [smem:[%s7198_s0 + %s5844_s30]]   ;;  %s5847_s15 = smov 10  }
   0x9   :  { %s5932_s8 = sld [smem:[%s7198_s0 + %s5845_s4]]   ;;  %s5848_s20 = smov 11  }
   0xa   :  { %s5937_s14 = sld [smem:[%s7198_s0 + %s5846_s10]]   ;;  %s5849_s26 = smov 12  }
   0xb   :  { %s5942_s19 = sld [smem:[%s7198_s0 + %s5847_s15]]   ;;  %s5850_s1 = smov 13  }
   0xc   :  { %s5947_s24 = sld [smem:[%s7198_s0 + %s5848_s20]]   ;;  %s5851_s7 = smov 14  }
   0xd   :  { %s5952_s30 = sld [smem:[%s7198_s0 + %s5849_s26]]   ;;  %s5852_s15 = smov 15  }
   0xe   :  { %s5957_s6 = sld [smem:[%s7198_s0 + %s5850_s1]]   ;;  %s5853_s22 = smov 16  }
   0xf   :  { %s5962_s12 = sld [smem:[%s7198_s0 + %s5851_s7]]   ;;  %s5854_s28 = smov 17  }
  0x10   :  { %s5967_s20 = sld [smem:[%s7198_s0 + %s5852_s15]]   ;;  %s5855_s7 = smov 18  }
  0x11   :  { %s5972_s27 = sld [smem:[%s7198_s0 + %s5853_s22]]   ;;  %s5856_s15 = smov 19  }
  0x12   :  { %s5977_s4 = sld [smem:[%s7198_s0 + %s5854_s28]]   ;;  %s5857_s22 = smov 20  }
  0x13   :  { %s5858_s28 = smov 21  }
  0x14   :  { %7207 = sst [smem:[#allocation8_spill]] %s5957_s6 }
  0x15   :  { %7208 = sst [smem:[#allocation9_spill]] %s5962_s12 }
  0x16   :  { %s5982_s12 = sld [smem:[%s7198_s0 + %s5855_s7]]   ;;  %s5859_s7 = smov 22  }
  0x17   :  { %7209 = sst [smem:[#allocation10_spill]] %s5972_s27 }
  0x18   :  { %7210 = sst [smem:[#allocation11_spill]] %s5977_s4 }
  0x19   :  { %s5987_s6 = sld [smem:[%s7198_s0 + %s5856_s15]]   ;;  %s5860_s15 = smov 23  }
  0x1a   :  { %s5992_s27 = sld [smem:[%s7198_s0 + %s5857_s22]]   ;;  %s5861_s22 = smov 24  }
  0x1b   :  { %s5997_s4 = sld [smem:[%s7198_s0 + %s5858_s28]]   ;;  %s5862_s28 = smov 25  }
  0x1c   :  { %7211 = sst [smem:[#allocation12_spill]] %s5982_s12 }
  0x1d   :  { %s6002_s12 = sld [smem:[%s7198_s0 + %s5859_s7]]   ;;  %s5863_s7 = smov 26  }
  0x1f   :  { %7212 = sst [smem:[#allocation13_spill]] %s5987_s6 }
  0x20   :  { %7213 = sst [smem:[#allocation14_spill]] %s5992_s27 }
  0x21   :  { %7214 = sst [smem:[#allocation15_spill]] %s5997_s4 }
  0x22   :  { %s6007_s6 = sld [smem:[%s7198_s0 + %s5860_s15]]   ;;  %s5864_s15 = smov 27  }
  0x23   :  { %7215 = sst [smem:[#allocation16_spill]] %s6002_s12 }
  0x24   :  { %s6012_s27 = sld [smem:[%s7198_s0 + %s5861_s22]]   ;;  %s5865_s22 = smov 28  }
  0x25   :  { %s6017_s4 = sld [smem:[%s7198_s0 + %s5862_s28]]   ;;  %s5866_s28 = smov 29  }
  0x26   :  { %s6022_s12 = sld [smem:[%s7198_s0 + %s5863_s7]]  }
  0x28   :  { %7216 = sst [smem:[#allocation17_spill]] %s6007_s6 }
  0x29   :  { %s6027_s6 = sld [smem:[%s7198_s0 + %s5864_s15]]  }
  0x2a   :  { %7217 = sst [smem:[#allocation18_spill]] %s6012_s27 }
  0x2b   :  { %7218 = sst [smem:[#allocation19_spill]] %s6017_s4 }
  0x2c   :  { %s6032_s27 = sld [smem:[%s7198_s0 + %s5865_s22]]  }
  0x2d   :  { %s6037_s4 = sld [smem:[%s7198_s0 + %s5866_s28]]  }
  0x2e   :  { %64 = vsyncpa [#allocation3], 0 }
  0x2f   :  { %65 = vsyncpa [#allocation5], 0  ;;  %s6039_s7 = smov 0  }
  0x30 LB: > { %s6045_s10 = sadd.s32 4294967295, %s5836_s7   ;;  %p5004_p0 = scmp.ge.s32.totalorder %s5836_s7, 1  ;;  %s5836_s7 = sphi %s6039_s7, %s71_s7  }
  0x31   : > { %p716_p1 = scmp.lt.s32.totalorder %s5836_s7, 3  ;;  %s729_s0 = sshll.u32 %s5897_s9, 4  ;;  %s730_s0 = int_to_ptr.vmem [resolvable:$true] %s729_s0 }
  0x32   : > { %p7202_p3 = scmp.eq.s32.totalorder %s6045_s10, 0  ;;  %s740_s15 = sshll.u32 %s5902_s13, 4  ;;  %s741_s15 = int_to_ptr.vmem [resolvable:$true] %s740_s15 }
  0x33   : > { %p6050_p2 = pnand %p5004_p0, %p716_p1  ;;  %s5792_s18 = scalar_lea.vmem %s730_s0, 64 }
  0x34   : > { %p5793_p6 = scmp.ne.s32.totalorder %s730_s0, %s5792_s18  ;;  %p5800_p10 = scmp.lt.s32.totalorder %s730_s0, %s730_s0 }
  0x35   : > { %s7219_s11 = scalar_select %p6050_p2, 1, 0 }
  0x36   : > { %p5675_p4 = pneg %p6050_p2  ;;  %p5801_p11 = scmp.lt.s32.totalorder %s5792_s18, %s5792_s18 }
  0x38   : > { %p6060_p5 = pnand %p7202_p3, %p5675_p4  ;;  %p5802_p12 = por %p5801_p11, %p5800_p10 }
  0x3a   : > { %p5794_p7 = pneg %p6060_p5 }
  0x3c   : > { %p5795_p8 = pnand %p5794_p7, %p5793_p6 }
  0x3e   : > { %p5796_p9 = pneg %p5795_p8 }
  0x40   : > { %p5803_p13 = pnand %p5802_p12, %p5796_p9 }
  0x42   : > { %5806 = shalt.err (!%p5803_p13)
}
  0x43   : > { %s5867_s22 = smov [#allocation2]   ;;  %s5807_s23 = scalar_lea.vmem %s741_s15, 16 }
  0x44   : > { %5678 = dma.vmem_to_smem (!%p6060_p5), %s730_s0, 64, %s5867_s22, [#allocation3]  }
  0x45   : > { %p5808_p0 = scmp.ne.s32.totalorder %s741_s15, %s5807_s23  ;;  %p5815_p3 = scmp.lt.s32.totalorder %s741_s15, %s741_s15 }
  0x46   : > { %p5816_p2 = scmp.lt.s32.totalorder %s5807_s23, %s5807_s23 }
  0x47   : > { %p5810_p1 = pnand %p5808_p0, %p5794_p7 }
  0x48   : > { %p5817_p6 = por %p5816_p2, %p5815_p3 }
  0x49   : > { %p5811_p4 = pneg %p5810_p1 }
  0x4b   : > { %p5818_p8 = pnand %p5817_p6, %p5811_p4 }
  0x4d   : > { %5821 = shalt.err (!%p5818_p8)
}
  0x4e   : > { %s5868_s26 = smov [#allocation4]   ;;  %p7221_p9 = scmp.ne.s32.totalorder %s7219_s11, 0 }
  0x4f   : > { %5681 = dma.vmem_to_smem (!%p6060_p5), %s741_s15, 16, %s5868_s26, [#allocation5]  }
  0x50   : > { %839 = sbr.rel (%p7221_p9) target bundleno = 9128 (0x23a8), region = 136  ;;  %p7222_p10 = scmp.eq.s32.totalorder (!%p7221_p9), %s6045_s10, 0 }
  0x57   : > { %5827 = dma.done.wait (%p7222_p10), [#allocation3], 64   ;;  %p7223_p11 = pmov %p7222_p10 }
  0x58   : > { %p7224_p7 = pmov %p7222_p10 }
  0x59   : > { %5829 = vsyncadd (%p7223_p11), [#allocation3], 4294967232 }
  0x5a   : > { %5831 = dma.done.wait (%p7224_p7), [#allocation5], 16   ;;  %p7225_p2 = pmov %p7224_p7 }
  0x5c   : > { %5833 = vsyncadd (%p7225_p2), [#allocation5], 4294967280 }
  0x5d   : > { %849 = sfence }
  0x5e   : > { %p919_p3 = scmp.lt.s32.totalorder %s6045_s10, 1  ;;  %s6081_s28 = sld [smem:[#allocation2]]  ;;  %vm5870_vm0 = vmmov 0  }
  0x5f   : > { %s6083_s1 = sld [smem:[#allocation2 + $0x80]]  ;;  %s6095_s16 = sld [smem:[#allocation2 + $0x2]] }
  0x60   : > { %s6085_s2 = sld [smem:[#allocation2 + $0x100]]  ;;  %s7242_s10 = smov (!%p919_p3, %s6045_s10), 1 }
  0x61   : > { %s6090_s0 = sld [smem:[#allocation2 + $0x180]]  ;;  %s5236_s15 = sshll.u32 %s7242_s10, 6 }
  0x62   : > { %s6092_s11 = sld [smem:[#allocation4]]  ;;  %s923_s18 = scalar_lea.vmem %s5892_s5, %s5236_s15 }
  0x63   : > { %s6098_s22 = sld [smem:[#allocation2 + $0x82]]  ;;  %v928_v0 = vld [vmem:[%s923_s18] sm:$0xff]  ;;  %v929_v1 = vld [vmem:[%s923_s18 + $0x8] sm:$0xff]  ;;  %v930_v2 = vld [vmem:[%s923_s18 + $0x10] sm:$0xff]  ;;  %s6141_s15 = sld [smem:[#allocation2 + $0x101]] }
  0x64   : > { %v955_v3 = vstv %s6081_s28  ;;  %s6101_s23 = sld [smem:[#allocation2 + $0x102]]  ;;  %v931_v4 = vld [vmem:[%s923_s18 + $0x18] sm:$0xff]  ;;  %v932_v5 = vld [vmem:[%s923_s18 + $0x20] sm:$0xff]  ;;  %v933_v6 = vld [vmem:[%s923_s18 + $0x28] sm:$0xff]  ;;  %v5014_v7 = vadd.f32 -0.5, %v928_v0  ;;  %v5015_v8 = vadd.f32 -0.5, %v929_v1 }
  0x65   : > { %v5016_v9 = vadd.f32 -0.5, %v930_v2  ;;  %v959_v10 = vstv %s6083_s1  ;;  %v934_v11 = vld [vmem:[%s923_s18 + $0x30] sm:$0xff]  ;;  %v935_v12 = vld [vmem:[%s923_s18 + $0x38] sm:$0xff]  ;;  %v5017_v13 = vadd.f32 -0.5, %v931_v4  ;;  %v5018_v14 = vadd.f32 -0.5, %v932_v5  ;;  %s6111_s26 = sld [smem:[#allocation2 + $0x182]] }
  0x66   : > { %v5019_v15 = vadd.f32 -0.5, %v933_v6  ;;  %v965_v16 = vstv %s6085_s2  ;;  %v6105_v17 = vmul.f32 4.0, %v5014_v7  ;;  %v6107_v18 = vmul.f32 4.0, %v5015_v8  ;;  %s6119_s28 = sld [smem:[#allocation4 + $0x2]]  ;;  %s6126_s1 = sld [smem:[#allocation2 + $0x1]] }
  0x67   : > { %v6109_v19 = vmul.f32 4.0, %v5016_v9  ;;  %v5020_v20 = vadd.f32 -0.5, %v934_v11  ;;  %v6113_v21 = vmul.f32 4.0, %v5017_v13  ;;  %v6115_v22 = vmul.f32 4.0, %v5018_v14  ;;  %s6128_s2 = sld [smem:[#allocation2 + $0x81]]  ;;  %s6162_s18 = sld [smem:[#allocation2 + $0x83]] }
  0x68   : > { %v6117_v23 = vmul.f32 4.0, %v5019_v15  ;;  %v5021_v24 = vadd.f32 -0.5, %v935_v12  ;;  %v956_v26 = vmul.f32 %v955_v3, %v6105_v17  ;;  %v957_v27 = vmul.f32 %v955_v3, %v6107_v18 }
  0x69   : > { %v6121_v25 = vmul.f32 4.0, %v5020_v20  ;;  %v960_v28 = vmul.f32 %v959_v10, %v6109_v19  ;;  %v961_v30 = vmul.f32 %v959_v10, %v6113_v21  ;;  %v966_v31 = vmul.f32 %v965_v16, %v6115_v22 }
  0x6a   : > { %v6130_v29 = vmul.f32 4.0, %v5021_v24  ;;  %v967_v32 = vmul.f32 %v965_v16, %v6117_v23  ;;  %v971_v34 = vstv %s6090_s0  ;;  %v977_v35 = vstv %s6092_s11  ;;  %s6152_s0 = sld [smem:[#allocation2 + $0x181]] }
  0x6b   : > { %v962_v33 = vadd.f32 %v960_v28, %v956_v26  ;;  %v1032_v36 = vstv %s6095_s16  ;;  %v963_v37 = vadd.f32 %v961_v30, %v957_v27  ;;  %v972_v38 = vmul.f32 %v971_v34, %v6121_v25  ;;  %s6154_s11 = sld [smem:[#allocation4 + $0x1]]  ;;  %s6160_s16 = sld [smem:[#allocation2 + $0x3]] }
  0x6c   : > { %v973_v39 = vmul.f32 %v971_v34, %v6130_v29  ;;  %v1033_v40 = vmul.f32 %v1032_v36, %v6105_v17  ;;  %v1034_v42 = vmul.f32 %v1032_v36, %v6107_v18  ;;  %v1036_v43 = vstv %s6098_s22  ;;  %s6169_s22 = sld [smem:[#allocation2 + $0x103]] }
  0x6d   : > { %v968_v41 = vadd.f32 %v966_v31, %v962_v33  ;;  %v1042_v44 = vstv %s6101_s23  ;;  %v969_v45 = vadd.f32 %v967_v32, %v963_v37  ;;  %v1037_v46 = vmul.f32 %v1036_v43, %v6109_v19  ;;  %s6173_s23 = sld [smem:[#allocation2 + $0x183]] }
  0x6e   : > { %v1038_v47 = vmul.f32 %v1036_v43, %v6113_v21  ;;  %v1043_v48 = vmul.f32 %v1042_v44, %v6115_v22  ;;  %v1044_v50 = vmul.f32 %v1042_v44, %v6117_v23  ;;  %v1048_v51 = vstv %s6111_s26  ;;  %s6177_s26 = sld [smem:[#allocation4 + $0x3]] }
  0x6f   : > { %v974_v49 = vadd.f32 %v972_v38, %v968_v41  ;;  %v1054_v52 = vstv %s6119_s28  ;;  %v975_v53 = vadd.f32 %v973_v39, %v969_v45  ;;  %v1039_v54 = vadd.f32 %v1037_v46, %v1033_v40  ;;  %s6179_s28 = sld [smem:[#allocation2 + $0x4]] }
  0x70   : > { %v1040_v55 = vadd.f32 %v1038_v47, %v1034_v42  ;;  %v1049_v56 = vmul.f32 %v1048_v51, %v6121_v25  ;;  %v1050_v58 = vmul.f32 %v1048_v51, %v6130_v29  ;;  %v994_v59 = vstv %s6126_s1  ;;  %s6186_s1 = sld [smem:[#allocation2 + $0x84]] }
  0x71   : > { %v978_v57 = vadd.f32 %v977_v35, %v974_v49  ;;  %v998_v60 = vstv %s6128_s2  ;;  %v979_v61 = vadd.f32 %v977_v35, %v975_v53  ;;  %v1045_v62 = vadd.f32 %v1043_v48, %v1039_v54  ;;  %s6188_s2 = sld [smem:[#allocation2 + $0x104]] }
  0x72   : > { %v1046_v63 = vadd.f32 %v1044_v50, %v1040_v55  ;;  %v995_v0 = vmul.f32 %v994_v59, %v6105_v17  ;;  %v996_v2 = vmul.f32 %v994_v59, %v6107_v18  ;;  %v999_v3 = vmul.f32 %v998_v60, %v6109_v19 }
  0x73   : > { %v980_v1 = vmax.f32 %v978_v57, 1e-06  ;;  %v1000_v4 = vmul.f32 %v998_v60, %v6113_v21  ;;  %v981_v5 = vmax.f32 %v979_v61, 1e-06  ;;  %v1051_v6 = vadd.f32 %v1049_v56, %v1045_v62 }
  0x74   : > { %v1052_v7 = vadd.f32 %v1050_v58, %v1046_v63  ;;  %v1004_v8 = vstv %s6141_s15  ;;  %v1001_v10 = vadd.f32 %v999_v3, %v995_v0  ;;  %v1010_v26 = vstv %s6152_s0  ;;  %s6195_s15 = sld [smem:[#allocation2 + $0x184]] }
  0x75   : > { %v982_v9 = vmul.f32 %v980_v1, %v980_v1  ;;  %v1002_v11 = vadd.f32 %v1000_v4, %v996_v2  ;;  %v1005_v12 = vmul.f32 %v1004_v8, %v6115_v22  ;;  %v983_v13 = vmul.f32 %v981_v5, %v981_v5  ;;  %s6199_s0 = sld [smem:[#allocation4 + $0x4]] }
  0x76   : > { %v1055_v14 = vadd.f32 %v1054_v52, %v1051_v6  ;;  %v1056_v15 = vadd.f32 %v1054_v52, %v1052_v7  ;;  %v1006_v16 = vmul.f32 %v1004_v8, %v6117_v23  ;;  %v1016_v27 = vstv %s6154_s11  ;;  %s6202_s11 = sld [smem:[#allocation2 + $0x5]] }
  0x77   : > { %v984_v20 = vmul.f32 %v982_v9, %v980_v1  ;;  %v1007_v24 = vadd.f32 %v1005_v12, %v1001_v10  ;;  %v985_v28 = vmul.f32 %v983_v13, %v981_v5  ;;  %v1011_v33 = vmul.f32 %v1010_v26, %v6121_v25 }
  0x78   : > { %v1057_v30 = vmax.f32 %v1055_v14, 1e-06  ;;  %v1058_v31 = vmax.f32 %v1056_v15, 1e-06  ;;  %v1008_v32 = vadd.f32 %v1006_v16, %v1002_v11  ;;  %v1012_v34 = vmul.f32 %v1010_v26, %v6130_v29 }
  0x79   : > { %v1070_v35 = vstv %s6160_s16  ;;  %v1074_v36 = vstv %s6162_s18  ;;  %v986_v37 = vadd.f32 %v985_v28, %v984_v20  ;;  %v1013_v41 = vadd.f32 %v1011_v33, %v1007_v24  ;;  %s6208_s16 = sld [smem:[#allocation2 + $0x85]] }
  0x7a   : > { %v1059_v38 = vmul.f32 %v1057_v30, %v1057_v30  ;;  %v1060_v39 = vmul.f32 %v1058_v31, %v1058_v31  ;;  %v1071_v40 = vmul.f32 %v1070_v35, %v6105_v17  ;;  %v1014_v42 = vadd.f32 %v1012_v34, %v1008_v32  ;;  %s6210_s18 = sld [smem:[#allocation2 + $0x105]] }
  0x7b   : > { %v1072_v43 = vmul.f32 %v1070_v35, %v6107_v18  ;;  %v1075_v44 = vmul.f32 %v1074_v36, %v6109_v19  ;;  %987 = vadd.xlane.f32.xlu0 %v986_v37  ;;  %v1076_v47 = vmul.f32 %v1074_v36, %v6113_v21  ;;  %v1080_v48 = vstv %s6169_s22  ;;  %s6216_s22 = sld [smem:[#allocation2 + $0x185]] }
  0x7c   : > { %v1061_v45 = vmul.f32 %v1059_v38, %v1057_v30  ;;  %v1062_v46 = vmul.f32 %v1060_v39, %v1058_v31  ;;  %v1017_v49 = vadd.f32 %v1016_v27, %v1013_v41  ;;  %v1018_v50 = vadd.f32 %v1016_v27, %v1014_v42 }
  0x7d   : > { %v1077_v51 = vadd.f32 %v1075_v44, %v1071_v40  ;;  %v1081_v52 = vmul.f32 %v1080_v48, %v6115_v22  ;;  %v1078_v54 = vadd.f32 %v1076_v47, %v1072_v43  ;;  %v1082_v55 = vmul.f32 %v1080_v48, %v6117_v23 }
  0x7e   : > { %v1063_v53 = vadd.f32 %v1062_v46, %v1061_v45  ;;  %v1086_v56 = vstv %s6173_s23  ;;  %v1019_v57 = vmax.f32 %v1017_v49, 1e-06  ;;  %v1020_v58 = vmax.f32 %v1018_v50, 1e-06  ;;  %s6222_s23 = sld [smem:[#allocation4 + $0x5]] }
  0x7f   : > { %v1083_v59 = vadd.f32 %v1081_v52, %v1077_v51  ;;  %v1087_v60 = vmul.f32 %v1086_v56, %v6121_v25  ;;  %v1084_v61 = vadd.f32 %v1082_v55, %v1078_v54  ;;  %v1088_v62 = vmul.f32 %v1086_v56, %v6130_v29 }
  0x80   : > { %1064 = vadd.xlane.f32.xlu1 %v1063_v53  ;;  %v1092_v63 = vstv %s6177_s26  ;;  %v1108_v0 = vstv %s6179_s28  ;;  %v1021_v1 = vmul.f32 %v1019_v57, %v1019_v57  ;;  %v1022_v2 = vmul.f32 %v1020_v58, %v1020_v58  ;;  %s6226_s26 = sld [smem:[#allocation2 + $0x6]] }
  0x81   : > { %v1089_v3 = vadd.f32 %v1087_v60, %v1083_v59  ;;  %v1109_v4 = vmul.f32 %v1108_v0, %v6105_v17  ;;  %v1090_v5 = vadd.f32 %v1088_v62, %v1084_v61  ;;  %v1110_v6 = vmul.f32 %v1108_v0, %v6107_v18  ;;  %s6230_s28 = sld [smem:[#allocation2 + $0x86]] }
  0x82   : > { %v1112_v7 = vstv %s6186_s1  ;;  %v1118_v8 = vstv %s6188_s2  ;;  %v1023_v9 = vmul.f32 %v1021_v1, %v1019_v57  ;;  %v1024_v10 = vmul.f32 %v1022_v2, %v1020_v58  ;;  %s6236_s1 = sld [smem:[#allocation2 + $0x106]] }
  0x83   : > { %v1093_v11 = vadd.f32 %v1092_v63, %v1089_v3  ;;  %v1113_v12 = vmul.f32 %v1112_v7, %v6109_v19  ;;  %v1094_v13 = vadd.f32 %v1092_v63, %v1090_v5  ;;  %v1114_v14 = vmul.f32 %v1112_v7, %v6113_v21  ;;  %s6238_s2 = sld [smem:[#allocation2 + $0x186]] }
  0x84   : > { %v1119_v15 = vmul.f32 %v1118_v8, %v6115_v22  ;;  %v1120_v16 = vmul.f32 %v1118_v8, %v6117_v23  ;;  %v1025_v20 = vadd.f32 %v1024_v10, %v1023_v9  ;;  %v1124_v27 = vstv %s6195_s15  ;;  %s6248_s15 = sld [smem:[#allocation4 + $0x6]] }
  0x85   : > { %v1095_v24 = vmax.f32 %v1093_v11, 1e-06  ;;  %v1115_v26 = vadd.f32 %v1113_v12, %v1109_v4  ;;  %v1096_v28 = vmax.f32 %v1094_v13, 1e-06  ;;  %v1116_v30 = vadd.f32 %v1114_v14, %v1110_v6 }
  0x86   : > { %v1125_v31 = vmul.f32 %v1124_v27, %v6121_v25  ;;  %v1126_v32 = vmul.f32 %v1124_v27, %v6130_v29  ;;  %1026 = vadd.xlane.f32.xlu0 %v1025_v20  ;;  %v1130_v35 = vstv %s6199_s0  ;;  %v1146_v36 = vstv %s6202_s11  ;;  %s6250_s0 = sld [smem:[#allocation2 + $0x7]] }
  0x87   : > { %v1097_v33 = vmul.f32 %v1095_v24, %v1095_v24  ;;  %v1121_v34 = vadd.f32 %v1119_v15, %v1115_v26  ;;  %v1098_v37 = vmul.f32 %v1096_v28, %v1096_v28  ;;  %v1122_v38 = vadd.f32 %v1120_v16, %v1116_v30  ;;  %s6256_s11 = sld [smem:[#allocation2 + $0x87]] }
  0x88   : > { %v1147_v39 = vmul.f32 %v1146_v36, %v6105_v17  ;;  %v1148_v40 = vmul.f32 %v1146_v36, %v6107_v18  ;;  %v1150_v43 = vstv %s6208_s16  ;;  %v1156_v44 = vstv %s6210_s18  ;;  %s6258_s16 = sld [smem:[#allocation2 + $0x107]] }
  0x89   : > { %v1099_v41 = vmul.f32 %v1097_v33, %v1095_v24  ;;  %v1127_v42 = vadd.f32 %v1125_v31, %v1121_v34  ;;  %v1100_v45 = vmul.f32 %v1098_v37, %v1096_v28  ;;  %v1128_v46 = vadd.f32 %v1126_v32, %v1122_v38  ;;  %s6264_s18 = sld [smem:[#allocation2 + $0x187]] }
  0x8a   : > { %v1151_v47 = vmul.f32 %v1150_v43, %v6109_v19  ;;  %v1152_v48 = vmul.f32 %v1150_v43, %v6113_v21  ;;  %v1157_v50 = vmul.f32 %v1156_v44, %v6115_v22  ;;  %v1158_v51 = vmul.f32 %v1156_v44, %v6117_v23 }
  0x8b   : > { %v1131_v49 = vadd.f32 %v1130_v35, %v1127_v42  ;;  %v1162_v52 = vstv %s6216_s22  ;;  %v1101_v53 = vadd.f32 %v1100_v45, %v1099_v41  ;;  %v1132_v54 = vadd.f32 %v1130_v35, %v1128_v46  ;;  %s6269_s22 = sld [smem:[#allocation4 + $0x7]] }
  0x8c   : > { %v1153_v55 = vadd.f32 %v1151_v47, %v1147_v39  ;;  %v1154_v56 = vadd.f32 %v1152_v48, %v1148_v40  ;;  %v1163_v58 = vmul.f32 %v1162_v52, %v6121_v25  ;;  %v1164_v59 = vmul.f32 %v1162_v52, %v6130_v29 }
  0x8d   : > { %v1133_v57 = vmax.f32 %v1131_v49, 1e-06  ;;  %v1168_v60 = vstv %s6222_s23  ;;  %1102 = vadd.xlane.f32.xlu1 %v1101_v53  ;;  %v1134_v61 = vmax.f32 %v1132_v54, 1e-06  ;;  %v1184_v0 = vstv %s6226_s26  ;;  %s6272_s23 = sld [smem:[#allocation2 + $0x8]] }
  0x8e   : > { %v1159_v62 = vadd.f32 %v1157_v50, %v1153_v55  ;;  %v1160_v63 = vadd.f32 %v1158_v51, %v1154_v56  ;;  %v1185_v2 = vmul.f32 %v1184_v0, %v6105_v17  ;;  %v1186_v3 = vmul.f32 %v1184_v0, %v6107_v18  ;;  %s6278_s26 = sld [smem:[#allocation2 + $0x88]] }
  0x8f   : > { %v1135_v1 = vmul.f32 %v1133_v57, %v1133_v57  ;;  %v1188_v4 = vstv %s6230_s28  ;;  %v1136_v5 = vmul.f32 %v1134_v61, %v1134_v61  ;;  %v1194_v11 = vstv %s6236_s1  ;;  %s6280_s28 = sld [smem:[#allocation2 + $0x108]] }
  0x90   : > { %v1165_v6 = vadd.f32 %v1163_v58, %v1159_v62  ;;  %v1166_v7 = vadd.f32 %v1164_v59, %v1160_v63  ;;  %v1189_v8 = vmul.f32 %v1188_v4, %v6109_v19  ;;  %v1190_v10 = vmul.f32 %v1188_v4, %v6113_v21  ;;  %s6288_s1 = sld [smem:[#allocation2 + $0x188]] }
  0x91   : > { %v1137_v9 = vmul.f32 %v1135_v1, %v1133_v57  ;;  %v1200_v12 = vstv %s6238_s2  ;;  %v1138_v13 = vmul.f32 %v1136_v5, %v1134_v61  ;;  %v1195_v24 = vmul.f32 %v1194_v11, %v6115_v22  ;;  %s6291_s2 = sld [smem:[#allocation4 + $0x8]] }
  0x92   : > { %v1169_v14 = vadd.f32 %v1168_v60, %v1165_v6  ;;  %v1170_v15 = vadd.f32 %v1168_v60, %v1166_v7  ;;  %v1191_v16 = vadd.f32 %v1189_v8, %v1185_v2  ;;  %v1192_v20 = vadd.f32 %v1190_v10, %v1186_v3 }
  0x93   : > { %v1196_v26 = vmul.f32 %v1194_v11, %v6117_v23  ;;  %v1201_v27 = vmul.f32 %v1200_v12, %v6121_v25  ;;  %v1139_v28 = vadd.f32 %v1138_v13, %v1137_v9  ;;  %v1202_v32 = vmul.f32 %v1200_v12, %v6130_v29 }
  0x94   : > { %v1171_v30 = vmax.f32 %v1169_v14, 1e-06  ;;  %v1172_v31 = vmax.f32 %v1170_v15, 1e-06  ;;  %v1197_v33 = vadd.f32 %v1195_v24, %v1191_v16  ;;  %v1206_v35 = vstv %s6248_s15  ;;  %s6295_s15 = sld [smem:[#allocation2 + $0x9]] }
  0x95   : > { %v1198_v34 = vadd.f32 %v1196_v26, %v1192_v20  ;;  %v1222_v36 = vstv %s6250_s0  ;;  %1140 = vadd.xlane.f32.xlu0 %v1139_v28  ;;  %v1226_v43 = vstv %s6256_s11  ;;  %v1232_v44 = vstv %s6258_s16  ;;  %s6301_s0 = sld [smem:[#allocation2 + $0x89]] }
  0x96   : > { %v1173_v37 = vmul.f32 %v1171_v30, %v1171_v30  ;;  %v1174_v38 = vmul.f32 %v1172_v31, %v1172_v31  ;;  %v1223_v39 = vmul.f32 %v1222_v36, %v6105_v17  ;;  %v1224_v40 = vmul.f32 %v1222_v36, %v6107_v18  ;;  %s6303_s11 = sld [smem:[#allocation2 + $0x109]] }
  0x97   : > { %v1203_v41 = vadd.f32 %v1201_v27, %v1197_v33  ;;  %v1204_v42 = vadd.f32 %v1202_v32, %v1198_v34  ;;  %v1227_v47 = vmul.f32 %v1226_v43, %v6109_v19  ;;  %v1228_v48 = vmul.f32 %v1226_v43, %v6113_v21  ;;  %s6311_s16 = sld [smem:[#allocation2 + $0x189]] }
  0x98   : > { %v1175_v45 = vmul.f32 %v1173_v37, %v1171_v30  ;;  %v1176_v46 = vmul.f32 %v1174_v38, %v1172_v31  ;;  %v1233_v51 = vmul.f32 %v1232_v44, %v6115_v22  ;;  %v1234_v52 = vmul.f32 %v1232_v44, %v6117_v23 }
  0x99   : > { %v1207_v49 = vadd.f32 %v1206_v35, %v1203_v41  ;;  %v1208_v50 = vadd.f32 %v1206_v35, %v1204_v42  ;;  %v1229_v54 = vadd.f32 %v1227_v47, %v1223_v39  ;;  %v1230_v55 = vadd.f32 %v1228_v48, %v1224_v40 }
  0x9a   : > { %v1177_v53 = vadd.f32 %v1176_v46, %v1175_v45  ;;  %v1238_v56 = vstv %s6264_s18  ;;  %v1244_v63 = vstv %s6269_s22  ;;  %v1260_v0 = vstv %s6272_s23  ;;  %s6314_s18 = sld [smem:[#allocation4 + $0x9]]  ;;  %s6318_s22 = sld [smem:[#allocation2 + $0xa]] }
  0x9b   : > { %v1209_v57 = vmax.f32 %v1207_v49, 1e-06  ;;  %v1210_v58 = vmax.f32 %v1208_v50, 1e-06  ;;  %v1239_v59 = vmul.f32 %v1238_v56, %v6121_v25  ;;  %v1240_v60 = vmul.f32 %v1238_v56, %v6130_v29  ;;  %s6324_s23 = sld [smem:[#allocation2 + $0x8a]] }
  0x9c   : > { %1178 = vadd.xlane.f32.xlu1 %v1177_v53  ;;  %v1235_v61 = vadd.f32 %v1233_v51, %v1229_v54  ;;  %v1236_v62 = vadd.f32 %v1234_v52, %v1230_v55  ;;  %v1261_v3 = vmul.f32 %v1260_v0, %v6105_v17  ;;  %v1262_v4 = vmul.f32 %v1260_v0, %v6107_v18 }
  0x9d   : > { %v1211_v1 = vmul.f32 %v1209_v57, %v1209_v57  ;;  %v1212_v2 = vmul.f32 %v1210_v58, %v1210_v58  ;;  %v1264_v7 = vstv %s6278_s26  ;;  %v1270_v8 = vstv %s6280_s28  ;;  %s6326_s26 = sld [smem:[#allocation2 + $0x10a]] }
  0x9e   : > { %v1241_v5 = vadd.f32 %v1239_v59, %v1235_v61  ;;  %v1242_v6 = vadd.f32 %v1240_v60, %v1236_v62  ;;  %v1265_v11 = vmul.f32 %v1264_v7, %v6109_v19  ;;  %v1266_v12 = vmul.f32 %v1264_v7, %v6113_v21  ;;  %s6334_s28 = sld [smem:[#allocation2 + $0x18a]] }
  0x9f   : > { %v1213_v9 = vmul.f32 %v1211_v1, %v1209_v57  ;;  %v1214_v10 = vmul.f32 %v1212_v2, %v1210_v58  ;;  %v1271_v15 = vmul.f32 %v1270_v8, %v6115_v22  ;;  %v1272_v16 = vmul.f32 %v1270_v8, %v6117_v23 }
  0xa0   : > { %v1245_v13 = vadd.f32 %v1244_v63, %v1241_v5  ;;  %v1246_v14 = vadd.f32 %v1244_v63, %v1242_v6  ;;  %v1267_v24 = vadd.f32 %v1265_v11, %v1261_v3  ;;  %v1268_v26 = vadd.f32 %v1266_v12, %v1262_v4 }
  0xa1   : > { %v1215_v20 = vadd.f32 %v1214_v10, %v1213_v9  ;;  %v1276_v27 = vstv %s6288_s1  ;;  %v1282_v35 = vstv %s6291_s2  ;;  %v1298_v36 = vstv %s6295_s15  ;;  %s6337_s1 = sld [smem:[#allocation4 + $0xa]]  ;;  %s6341_s2 = sld [smem:[#allocation2 + $0xb]] }
  0xa2   : > { %v1247_v28 = vmax.f32 %v1245_v13, 1e-06  ;;  %v1248_v30 = vmax.f32 %v1246_v14, 1e-06  ;;  %v1277_v31 = vmul.f32 %v1276_v27, %v6121_v25  ;;  %v1278_v32 = vmul.f32 %v1276_v27, %v6130_v29  ;;  %s6347_s15 = sld [smem:[#allocation2 + $0x8b]] }
  0xa3   : > { %1216 = vadd.xlane.f32.xlu0 %v1215_v20  ;;  %v1273_v33 = vadd.f32 %v1271_v15, %v1267_v24  ;;  %v1274_v34 = vadd.f32 %v1272_v16, %v1268_v26  ;;  %v1299_v39 = vmul.f32 %v1298_v36, %v6105_v17  ;;  %v1300_v40 = vmul.f32 %v1298_v36, %v6107_v18 }
  0xa4   : > { %v1249_v37 = vmul.f32 %v1247_v28, %v1247_v28  ;;  %v1250_v38 = vmul.f32 %v1248_v30, %v1248_v30  ;;  %v1302_v43 = vstv %s6301_s0  ;;  %v1308_v44 = vstv %s6303_s11  ;;  %s6349_s0 = sld [smem:[#allocation2 + $0x10b]] }
  0xa5   : > { %v1279_v41 = vadd.f32 %v1277_v31, %v1273_v33  ;;  %v1280_v42 = vadd.f32 %v1278_v32, %v1274_v34  ;;  %v1303_v47 = vmul.f32 %v1302_v43, %v6109_v19  ;;  %v1304_v48 = vmul.f32 %v1302_v43, %v6113_v21  ;;  %s6357_s11 = sld [smem:[#allocation2 + $0x18b]] }
  0xa6   : > { %v1251_v45 = vmul.f32 %v1249_v37, %v1247_v28  ;;  %v1252_v46 = vmul.f32 %v1250_v38, %v1248_v30  ;;  %v1309_v51 = vmul.f32 %v1308_v44, %v6115_v22  ;;  %v1310_v52 = vmul.f32 %v1308_v44, %v6117_v23 }
  0xa7   : > { %v1283_v49 = vadd.f32 %v1282_v35, %v1279_v41  ;;  %v1284_v50 = vadd.f32 %v1282_v35, %v1280_v42  ;;  %v1305_v54 = vadd.f32 %v1303_v47, %v1299_v39  ;;  %v1306_v55 = vadd.f32 %v1304_v48, %v1300_v40 }
  0xa8   : > { %v1253_v53 = vadd.f32 %v1252_v46, %v1251_v45  ;;  %v1314_v56 = vstv %s6311_s16  ;;  %v1320_v63 = vstv %s6314_s18  ;;  %v1336_v0 = vstv %s6318_s22  ;;  %s6360_s16 = sld [smem:[#allocation4 + $0xb]]  ;;  %s6364_s18 = sld [smem:[#allocation2 + $0xc]] }
  0xa9   : > { %v1285_v57 = vmax.f32 %v1283_v49, 1e-06  ;;  %v1286_v58 = vmax.f32 %v1284_v50, 1e-06  ;;  %v1315_v59 = vmul.f32 %v1314_v56, %v6121_v25  ;;  %v1316_v60 = vmul.f32 %v1314_v56, %v6130_v29  ;;  %s6370_s22 = sld [smem:[#allocation2 + $0x8c]] }
  0xaa   : > { %1254 = vadd.xlane.f32.xlu1 %v1253_v53  ;;  %v1311_v61 = vadd.f32 %v1309_v51, %v1305_v54  ;;  %v1312_v62 = vadd.f32 %v1310_v52, %v1306_v55  ;;  %v1337_v3 = vmul.f32 %v1336_v0, %v6105_v17  ;;  %v1338_v4 = vmul.f32 %v1336_v0, %v6107_v18 }
  0xab   : > { %v1287_v1 = vmul.f32 %v1285_v57, %v1285_v57  ;;  %v1288_v2 = vmul.f32 %v1286_v58, %v1286_v58  ;;  %v1340_v7 = vstv %s6324_s23  ;;  %v1346_v8 = vstv %s6326_s26  ;;  %s6372_s23 = sld [smem:[#allocation2 + $0x10c]] }
  0xac   : > { %v1317_v5 = vadd.f32 %v1315_v59, %v1311_v61  ;;  %v1318_v6 = vadd.f32 %v1316_v60, %v1312_v62  ;;  %v1341_v11 = vmul.f32 %v1340_v7, %v6109_v19  ;;  %v1342_v12 = vmul.f32 %v1340_v7, %v6113_v21  ;;  %s6380_s26 = sld [smem:[#allocation2 + $0x18c]] }
  0xad   : > { %v1289_v9 = vmul.f32 %v1287_v1, %v1285_v57  ;;  %v1290_v10 = vmul.f32 %v1288_v2, %v1286_v58  ;;  %v1347_v15 = vmul.f32 %v1346_v8, %v6115_v22  ;;  %v1348_v16 = vmul.f32 %v1346_v8, %v6117_v23 }
  0xae   : > { %v1321_v13 = vadd.f32 %v1320_v63, %v1317_v5  ;;  %v1322_v14 = vadd.f32 %v1320_v63, %v1318_v6  ;;  %v1343_v24 = vadd.f32 %v1341_v11, %v1337_v3  ;;  %v1344_v26 = vadd.f32 %v1342_v12, %v1338_v4 }
  0xaf   : > { %v1291_v20 = vadd.f32 %v1290_v10, %v1289_v9  ;;  %v1352_v27 = vstv %s6334_s28  ;;  %v1358_v35 = vstv %s6337_s1  ;;  %v1374_v36 = vstv %s6341_s2  ;;  %s6383_s28 = sld [smem:[#allocation4 + $0xc]]  ;;  %s6387_s1 = sld [smem:[#allocation2 + $0xd]] }
  0xb0   : > { %v1323_v28 = vmax.f32 %v1321_v13, 1e-06  ;;  %v1324_v30 = vmax.f32 %v1322_v14, 1e-06  ;;  %v1353_v31 = vmul.f32 %v1352_v27, %v6121_v25  ;;  %v1354_v32 = vmul.f32 %v1352_v27, %v6130_v29  ;;  %s6393_s2 = sld [smem:[#allocation2 + $0x8d]] }
  0xb1   : > { %1292 = vadd.xlane.f32.xlu0 %v1291_v20  ;;  %v1349_v33 = vadd.f32 %v1347_v15, %v1343_v24  ;;  %v1350_v34 = vadd.f32 %v1348_v16, %v1344_v26  ;;  %v1375_v39 = vmul.f32 %v1374_v36, %v6105_v17  ;;  %v1376_v40 = vmul.f32 %v1374_v36, %v6107_v18 }
  0xb2   : > { %v1325_v37 = vmul.f32 %v1323_v28, %v1323_v28  ;;  %v1326_v38 = vmul.f32 %v1324_v30, %v1324_v30  ;;  %v1378_v43 = vstv %s6347_s15  ;;  %v1384_v44 = vstv %s6349_s0  ;;  %s6395_s15 = sld [smem:[#allocation2 + $0x10d]] }
  0xb3   : > { %v1355_v41 = vadd.f32 %v1353_v31, %v1349_v33  ;;  %v1356_v42 = vadd.f32 %v1354_v32, %v1350_v34  ;;  %v1379_v47 = vmul.f32 %v1378_v43, %v6109_v19  ;;  %v1380_v48 = vmul.f32 %v1378_v43, %v6113_v21  ;;  %s6403_s0 = sld [smem:[#allocation2 + $0x18d]] }
  0xb4   : > { %v1327_v45 = vmul.f32 %v1325_v37, %v1323_v28  ;;  %v1328_v46 = vmul.f32 %v1326_v38, %v1324_v30  ;;  %v1385_v51 = vmul.f32 %v1384_v44, %v6115_v22  ;;  %v1386_v52 = vmul.f32 %v1384_v44, %v6117_v23 }
  0xb5   : > { %v1359_v49 = vadd.f32 %v1358_v35, %v1355_v41  ;;  %v1360_v50 = vadd.f32 %v1358_v35, %v1356_v42  ;;  %v1381_v54 = vadd.f32 %v1379_v47, %v1375_v39  ;;  %v1382_v55 = vadd.f32 %v1380_v48, %v1376_v40 }
  0xb6   : > { %v1329_v53 = vadd.f32 %v1328_v46, %v1327_v45  ;;  %v1390_v56 = vstv %s6357_s11  ;;  %v1396_v63 = vstv %s6360_s16  ;;  %v1412_v0 = vstv %s6364_s18  ;;  %s6406_s11 = sld [smem:[#allocation4 + $0xd]]  ;;  %s6410_s16 = sld [smem:[#allocation2 + $0xe]] }
  0xb7   : > { %v1361_v57 = vmax.f32 %v1359_v49, 1e-06  ;;  %v1362_v58 = vmax.f32 %v1360_v50, 1e-06  ;;  %v1391_v59 = vmul.f32 %v1390_v56, %v6121_v25  ;;  %v1392_v60 = vmul.f32 %v1390_v56, %v6130_v29  ;;  %s6416_s18 = sld [smem:[#allocation2 + $0x8e]] }
  0xb8   : > { %1330 = vadd.xlane.f32.xlu1 %v1329_v53  ;;  %v1387_v61 = vadd.f32 %v1385_v51, %v1381_v54  ;;  %v1388_v62 = vadd.f32 %v1386_v52, %v1382_v55  ;;  %v1413_v3 = vmul.f32 %v1412_v0, %v6105_v17  ;;  %v1414_v4 = vmul.f32 %v1412_v0, %v6107_v18 }
  0xb9   : > { %v1363_v1 = vmul.f32 %v1361_v57, %v1361_v57  ;;  %v1364_v2 = vmul.f32 %v1362_v58, %v1362_v58  ;;  %v1416_v7 = vstv %s6370_s22  ;;  %v1422_v8 = vstv %s6372_s23  ;;  %s6418_s22 = sld [smem:[#allocation2 + $0x10e]] }
  0xba   : > { %v1393_v5 = vadd.f32 %v1391_v59, %v1387_v61  ;;  %v1394_v6 = vadd.f32 %v1392_v60, %v1388_v62  ;;  %v1417_v11 = vmul.f32 %v1416_v7, %v6109_v19  ;;  %v1418_v12 = vmul.f32 %v1416_v7, %v6113_v21  ;;  %s6426_s23 = sld [smem:[#allocation2 + $0x18e]] }
  0xbb   : > { %v1365_v9 = vmul.f32 %v1363_v1, %v1361_v57  ;;  %v1366_v10 = vmul.f32 %v1364_v2, %v1362_v58  ;;  %v1423_v15 = vmul.f32 %v1422_v8, %v6115_v22  ;;  %v1424_v16 = vmul.f32 %v1422_v8, %v6117_v23 }
  0xbc   : > { %v1397_v13 = vadd.f32 %v1396_v63, %v1393_v5  ;;  %v1398_v14 = vadd.f32 %v1396_v63, %v1394_v6  ;;  %v1419_v24 = vadd.f32 %v1417_v11, %v1413_v3  ;;  %v1420_v26 = vadd.f32 %v1418_v12, %v1414_v4 }
  0xbd   : > { %v1367_v20 = vadd.f32 %v1366_v10, %v1365_v9  ;;  %v1428_v27 = vstv %s6380_s26  ;;  %v1434_v35 = vstv %s6383_s28  ;;  %v1450_v36 = vstv %s6387_s1  ;;  %s6429_s26 = sld [smem:[#allocation4 + $0xe]]  ;;  %s6433_s28 = sld [smem:[#allocation2 + $0xf]] }
  0xbe   : > { %v1399_v28 = vmax.f32 %v1397_v13, 1e-06  ;;  %v1400_v30 = vmax.f32 %v1398_v14, 1e-06  ;;  %v1429_v31 = vmul.f32 %v1428_v27, %v6121_v25  ;;  %v1430_v32 = vmul.f32 %v1428_v27, %v6130_v29  ;;  %s6439_s1 = sld [smem:[#allocation2 + $0x8f]] }
  0xbf   : > { %1368 = vadd.xlane.f32.xlu0 %v1367_v20  ;;  %v1425_v33 = vadd.f32 %v1423_v15, %v1419_v24  ;;  %v1426_v34 = vadd.f32 %v1424_v16, %v1420_v26  ;;  %v1451_v39 = vmul.f32 %v1450_v36, %v6105_v17  ;;  %v1452_v40 = vmul.f32 %v1450_v36, %v6107_v18 }
  0xc0   : > { %v1401_v37 = vmul.f32 %v1399_v28, %v1399_v28  ;;  %v1402_v38 = vmul.f32 %v1400_v30, %v1400_v30  ;;  %v1454_v43 = vstv %s6393_s2  ;;  %v1460_v44 = vstv %s6395_s15  ;;  %s6441_s2 = sld [smem:[#allocation2 + $0x10f]] }
  0xc1   : > { %v1431_v41 = vadd.f32 %v1429_v31, %v1425_v33  ;;  %v1432_v42 = vadd.f32 %v1430_v32, %v1426_v34  ;;  %v1455_v47 = vmul.f32 %v1454_v43, %v6109_v19  ;;  %v1456_v48 = vmul.f32 %v1454_v43, %v6113_v21  ;;  %s6449_s15 = sld [smem:[#allocation2 + $0x18f]] }
  0xc2   : > { %v1403_v45 = vmul.f32 %v1401_v37, %v1399_v28  ;;  %v1404_v46 = vmul.f32 %v1402_v38, %v1400_v30  ;;  %v1461_v51 = vmul.f32 %v1460_v44, %v6115_v22  ;;  %v1462_v52 = vmul.f32 %v1460_v44, %v6117_v23 }
  0xc3   : > { %v1435_v49 = vadd.f32 %v1434_v35, %v1431_v41  ;;  %v1436_v50 = vadd.f32 %v1434_v35, %v1432_v42  ;;  %v1457_v54 = vadd.f32 %v1455_v47, %v1451_v39  ;;  %v1458_v55 = vadd.f32 %v1456_v48, %v1452_v40 }
  0xc4   : > { %v1405_v53 = vadd.f32 %v1404_v46, %v1403_v45  ;;  %v1466_v56 = vstv %s6403_s0  ;;  %v1472_v63 = vstv %s6406_s11  ;;  %v1488_v0 = vstv %s6410_s16  ;;  %s6452_s0 = sld [smem:[#allocation4 + $0xf]]  ;;  %s6456_s11 = sld [smem:[#allocation2 + $0x10]] }
  0xc5   : > { %v1437_v57 = vmax.f32 %v1435_v49, 1e-06  ;;  %v1438_v58 = vmax.f32 %v1436_v50, 1e-06  ;;  %v1467_v59 = vmul.f32 %v1466_v56, %v6121_v25  ;;  %v1468_v60 = vmul.f32 %v1466_v56, %v6130_v29  ;;  %s6462_s16 = sld [smem:[#allocation2 + $0x90]] }
  0xc6   : > { %1406 = vadd.xlane.f32.xlu1 %v1405_v53  ;;  %v1463_v61 = vadd.f32 %v1461_v51, %v1457_v54  ;;  %v1464_v62 = vadd.f32 %v1462_v52, %v1458_v55  ;;  %v1489_v3 = vmul.f32 %v1488_v0, %v6105_v17  ;;  %v1490_v4 = vmul.f32 %v1488_v0, %v6107_v18 }
  0xc7   : > { %v1439_v1 = vmul.f32 %v1437_v57, %v1437_v57  ;;  %v1440_v2 = vmul.f32 %v1438_v58, %v1438_v58  ;;  %v1492_v7 = vstv %s6416_s18  ;;  %v1498_v8 = vstv %s6418_s22  ;;  %s6464_s18 = sld [smem:[#allocation2 + $0x110]] }
  0xc8   : > { %v1469_v5 = vadd.f32 %v1467_v59, %v1463_v61  ;;  %v1470_v6 = vadd.f32 %v1468_v60, %v1464_v62  ;;  %v1493_v11 = vmul.f32 %v1492_v7, %v6109_v19  ;;  %v1494_v12 = vmul.f32 %v1492_v7, %v6113_v21  ;;  %s6472_s22 = sld [smem:[#allocation2 + $0x190]] }
  0xc9   : > { %v1441_v9 = vmul.f32 %v1439_v1, %v1437_v57  ;;  %v1442_v10 = vmul.f32 %v1440_v2, %v1438_v58  ;;  %v1499_v15 = vmul.f32 %v1498_v8, %v6115_v22  ;;  %v1500_v16 = vmul.f32 %v1498_v8, %v6117_v23 }
  0xca   : > { %v1473_v13 = vadd.f32 %v1472_v63, %v1469_v5  ;;  %v1474_v14 = vadd.f32 %v1472_v63, %v1470_v6  ;;  %v1495_v24 = vadd.f32 %v1493_v11, %v1489_v3  ;;  %v1496_v26 = vadd.f32 %v1494_v12, %v1490_v4 }
  0xcb   : > { %v1443_v20 = vadd.f32 %v1442_v10, %v1441_v9  ;;  %v1504_v27 = vstv %s6426_s23  ;;  %v1510_v35 = vstv %s6429_s26  ;;  %v1526_v36 = vstv %s6433_s28  ;;  %s6475_s23 = sld [smem:[#allocation4 + $0x10]]  ;;  %s6479_s26 = sld [smem:[#allocation2 + $0x11]] }
  0xcc   : > { %v1475_v28 = vmax.f32 %v1473_v13, 1e-06  ;;  %v1476_v30 = vmax.f32 %v1474_v14, 1e-06  ;;  %v1505_v31 = vmul.f32 %v1504_v27, %v6121_v25  ;;  %v1506_v32 = vmul.f32 %v1504_v27, %v6130_v29  ;;  %s6485_s28 = sld [smem:[#allocation2 + $0x91]] }
  0xcd   : > { %1444 = vadd.xlane.f32.xlu0 %v1443_v20  ;;  %v1501_v33 = vadd.f32 %v1499_v15, %v1495_v24  ;;  %v1502_v34 = vadd.f32 %v1500_v16, %v1496_v26  ;;  %v1527_v39 = vmul.f32 %v1526_v36, %v6105_v17  ;;  %v1528_v40 = vmul.f32 %v1526_v36, %v6107_v18 }
  0xce   : > { %v1477_v37 = vmul.f32 %v1475_v28, %v1475_v28  ;;  %v1478_v38 = vmul.f32 %v1476_v30, %v1476_v30  ;;  %v1530_v43 = vstv %s6439_s1  ;;  %v1536_v44 = vstv %s6441_s2  ;;  %s6487_s1 = sld [smem:[#allocation2 + $0x111]] }
  0xcf   : > { %v1507_v41 = vadd.f32 %v1505_v31, %v1501_v33  ;;  %v1508_v42 = vadd.f32 %v1506_v32, %v1502_v34  ;;  %v1531_v47 = vmul.f32 %v1530_v43, %v6109_v19  ;;  %v1532_v48 = vmul.f32 %v1530_v43, %v6113_v21  ;;  %s6495_s2 = sld [smem:[#allocation2 + $0x191]] }
  0xd0   : > { %v1479_v45 = vmul.f32 %v1477_v37, %v1475_v28  ;;  %v1480_v46 = vmul.f32 %v1478_v38, %v1476_v30  ;;  %v1537_v51 = vmul.f32 %v1536_v44, %v6115_v22  ;;  %v1538_v52 = vmul.f32 %v1536_v44, %v6117_v23 }
  0xd1   : > { %v1511_v49 = vadd.f32 %v1510_v35, %v1507_v41  ;;  %v1512_v50 = vadd.f32 %v1510_v35, %v1508_v42  ;;  %v1533_v54 = vadd.f32 %v1531_v47, %v1527_v39  ;;  %v1534_v55 = vadd.f32 %v1532_v48, %v1528_v40 }
  0xd2   : > { %v1481_v53 = vadd.f32 %v1480_v46, %v1479_v45  ;;  %v1542_v56 = vstv %s6449_s15  ;;  %v1548_v63 = vstv %s6452_s0  ;;  %v1564_v0 = vstv %s6456_s11  ;;  %s6498_s15 = sld [smem:[#allocation4 + $0x11]]  ;;  %s6502_s0 = sld [smem:[#allocation2 + $0x12]] }
  0xd3   : > { %v1513_v57 = vmax.f32 %v1511_v49, 1e-06  ;;  %v1514_v58 = vmax.f32 %v1512_v50, 1e-06  ;;  %v1543_v59 = vmul.f32 %v1542_v56, %v6121_v25  ;;  %v1544_v60 = vmul.f32 %v1542_v56, %v6130_v29  ;;  %s6508_s11 = sld [smem:[#allocation2 + $0x92]] }
  0xd4   : > { %1482 = vadd.xlane.f32.xlu1 %v1481_v53  ;;  %v1539_v61 = vadd.f32 %v1537_v51, %v1533_v54  ;;  %v1540_v62 = vadd.f32 %v1538_v52, %v1534_v55  ;;  %v1565_v3 = vmul.f32 %v1564_v0, %v6105_v17  ;;  %v1566_v4 = vmul.f32 %v1564_v0, %v6107_v18 }
  0xd5   : > { %v1515_v1 = vmul.f32 %v1513_v57, %v1513_v57  ;;  %v1516_v2 = vmul.f32 %v1514_v58, %v1514_v58  ;;  %v1568_v7 = vstv %s6462_s16  ;;  %v1574_v8 = vstv %s6464_s18  ;;  %s6510_s16 = sld [smem:[#allocation2 + $0x112]] }
  0xd6   : > { %v1545_v5 = vadd.f32 %v1543_v59, %v1539_v61  ;;  %v1546_v6 = vadd.f32 %v1544_v60, %v1540_v62  ;;  %v1569_v11 = vmul.f32 %v1568_v7, %v6109_v19  ;;  %v1570_v12 = vmul.f32 %v1568_v7, %v6113_v21  ;;  %s6518_s18 = sld [smem:[#allocation2 + $0x192]] }
  0xd7   : > { %v1517_v9 = vmul.f32 %v1515_v1, %v1513_v57  ;;  %v1518_v10 = vmul.f32 %v1516_v2, %v1514_v58  ;;  %v1575_v15 = vmul.f32 %v1574_v8, %v6115_v22  ;;  %v1576_v16 = vmul.f32 %v1574_v8, %v6117_v23 }
  0xd8   : > { %v1549_v13 = vadd.f32 %v1548_v63, %v1545_v5  ;;  %v1550_v14 = vadd.f32 %v1548_v63, %v1546_v6  ;;  %v1571_v24 = vadd.f32 %v1569_v11, %v1565_v3  ;;  %v1572_v26 = vadd.f32 %v1570_v12, %v1566_v4 }
  0xd9   : > { %v1519_v20 = vadd.f32 %v1518_v10, %v1517_v9  ;;  %v1580_v27 = vstv %s6472_s22  ;;  %v1586_v35 = vstv %s6475_s23  ;;  %v1602_v36 = vstv %s6479_s26  ;;  %s6521_s22 = sld [smem:[#allocation4 + $0x12]]  ;;  %s6525_s23 = sld [smem:[#allocation2 + $0x13]] }
  0xda   : > { %v1551_v28 = vmax.f32 %v1549_v13, 1e-06  ;;  %v1552_v30 = vmax.f32 %v1550_v14, 1e-06  ;;  %v1581_v31 = vmul.f32 %v1580_v27, %v6121_v25  ;;  %v1582_v32 = vmul.f32 %v1580_v27, %v6130_v29  ;;  %s6531_s26 = sld [smem:[#allocation2 + $0x93]] }
  0xdb   : > { %1520 = vadd.xlane.f32.xlu0 %v1519_v20  ;;  %v1577_v33 = vadd.f32 %v1575_v15, %v1571_v24  ;;  %v1578_v34 = vadd.f32 %v1576_v16, %v1572_v26  ;;  %v1603_v39 = vmul.f32 %v1602_v36, %v6105_v17  ;;  %v1604_v40 = vmul.f32 %v1602_v36, %v6107_v18 }
  0xdc   : > { %v1553_v37 = vmul.f32 %v1551_v28, %v1551_v28  ;;  %v1554_v38 = vmul.f32 %v1552_v30, %v1552_v30  ;;  %v1606_v43 = vstv %s6485_s28  ;;  %v1612_v44 = vstv %s6487_s1  ;;  %s6533_s28 = sld [smem:[#allocation2 + $0x113]] }
  0xdd   : > { %v1583_v41 = vadd.f32 %v1581_v31, %v1577_v33  ;;  %v1584_v42 = vadd.f32 %v1582_v32, %v1578_v34  ;;  %v1607_v47 = vmul.f32 %v1606_v43, %v6109_v19  ;;  %v1608_v48 = vmul.f32 %v1606_v43, %v6113_v21  ;;  %s6541_s1 = sld [smem:[#allocation2 + $0x193]] }
  0xde   : > { %v1555_v45 = vmul.f32 %v1553_v37, %v1551_v28  ;;  %v1556_v46 = vmul.f32 %v1554_v38, %v1552_v30  ;;  %v1613_v51 = vmul.f32 %v1612_v44, %v6115_v22  ;;  %v1614_v52 = vmul.f32 %v1612_v44, %v6117_v23 }
  0xdf   : > { %v1587_v49 = vadd.f32 %v1586_v35, %v1583_v41  ;;  %v1588_v50 = vadd.f32 %v1586_v35, %v1584_v42  ;;  %v1609_v54 = vadd.f32 %v1607_v47, %v1603_v39  ;;  %v1610_v55 = vadd.f32 %v1608_v48, %v1604_v40 }
  0xe0   : > { %v1557_v53 = vadd.f32 %v1556_v46, %v1555_v45  ;;  %v1618_v56 = vstv %s6495_s2  ;;  %v1624_v63 = vstv %s6498_s15  ;;  %v1640_v0 = vstv %s6502_s0  ;;  %s6544_s2 = sld [smem:[#allocation4 + $0x13]]  ;;  %s6548_s15 = sld [smem:[#allocation2 + $0x14]] }
  0xe1   : > { %v1589_v57 = vmax.f32 %v1587_v49, 1e-06  ;;  %v1590_v58 = vmax.f32 %v1588_v50, 1e-06  ;;  %v1619_v59 = vmul.f32 %v1618_v56, %v6121_v25  ;;  %v1620_v60 = vmul.f32 %v1618_v56, %v6130_v29  ;;  %s6554_s0 = sld [smem:[#allocation2 + $0x94]] }
  0xe2   : > { %1558 = vadd.xlane.f32.xlu1 %v1557_v53  ;;  %v1615_v61 = vadd.f32 %v1613_v51, %v1609_v54  ;;  %v1616_v62 = vadd.f32 %v1614_v52, %v1610_v55  ;;  %v1641_v3 = vmul.f32 %v1640_v0, %v6105_v17  ;;  %v1642_v4 = vmul.f32 %v1640_v0, %v6107_v18 }
  0xe3   : > { %v1591_v1 = vmul.f32 %v1589_v57, %v1589_v57  ;;  %v1592_v2 = vmul.f32 %v1590_v58, %v1590_v58  ;;  %v1644_v7 = vstv %s6508_s11  ;;  %v1650_v8 = vstv %s6510_s16  ;;  %s6556_s11 = sld [smem:[#allocation2 + $0x114]] }
  0xe4   : > { %v1621_v5 = vadd.f32 %v1619_v59, %v1615_v61  ;;  %v1622_v6 = vadd.f32 %v1620_v60, %v1616_v62  ;;  %v1645_v11 = vmul.f32 %v1644_v7, %v6109_v19  ;;  %v1646_v12 = vmul.f32 %v1644_v7, %v6113_v21  ;;  %s6564_s16 = sld [smem:[#allocation2 + $0x194]] }
  0xe5   : > { %v1593_v9 = vmul.f32 %v1591_v1, %v1589_v57  ;;  %v1594_v10 = vmul.f32 %v1592_v2, %v1590_v58  ;;  %v1651_v15 = vmul.f32 %v1650_v8, %v6115_v22  ;;  %v1652_v16 = vmul.f32 %v1650_v8, %v6117_v23 }
  0xe6   : > { %v1625_v13 = vadd.f32 %v1624_v63, %v1621_v5  ;;  %v1626_v14 = vadd.f32 %v1624_v63, %v1622_v6  ;;  %v1647_v24 = vadd.f32 %v1645_v11, %v1641_v3  ;;  %v1648_v26 = vadd.f32 %v1646_v12, %v1642_v4 }
  0xe7   : > { %v1595_v20 = vadd.f32 %v1594_v10, %v1593_v9  ;;  %v1656_v27 = vstv %s6518_s18  ;;  %v1662_v35 = vstv %s6521_s22  ;;  %v1678_v36 = vstv %s6525_s23  ;;  %s6567_s18 = sld [smem:[#allocation4 + $0x14]]  ;;  %s6571_s22 = sld [smem:[#allocation2 + $0x15]] }
  0xe8   : > { %v1627_v28 = vmax.f32 %v1625_v13, 1e-06  ;;  %v1628_v30 = vmax.f32 %v1626_v14, 1e-06  ;;  %v1657_v31 = vmul.f32 %v1656_v27, %v6121_v25  ;;  %v1658_v32 = vmul.f32 %v1656_v27, %v6130_v29  ;;  %s6577_s23 = sld [smem:[#allocation2 + $0x95]] }
  0xe9   : > { %1596 = vadd.xlane.f32.xlu0 %v1595_v20  ;;  %v1653_v33 = vadd.f32 %v1651_v15, %v1647_v24  ;;  %v1654_v34 = vadd.f32 %v1652_v16, %v1648_v26  ;;  %v1679_v39 = vmul.f32 %v1678_v36, %v6105_v17  ;;  %v1680_v40 = vmul.f32 %v1678_v36, %v6107_v18 }
  0xea   : > { %v1629_v37 = vmul.f32 %v1627_v28, %v1627_v28  ;;  %v1630_v38 = vmul.f32 %v1628_v30, %v1628_v30  ;;  %v1682_v43 = vstv %s6531_s26  ;;  %v1688_v44 = vstv %s6533_s28  ;;  %s6579_s26 = sld [smem:[#allocation2 + $0x115]] }
  0xeb   : > { %v1659_v41 = vadd.f32 %v1657_v31, %v1653_v33  ;;  %v1660_v42 = vadd.f32 %v1658_v32, %v1654_v34  ;;  %v1683_v47 = vmul.f32 %v1682_v43, %v6109_v19  ;;  %v1684_v48 = vmul.f32 %v1682_v43, %v6113_v21  ;;  %s6587_s28 = sld [smem:[#allocation2 + $0x195]] }
  0xec   : > { %v1631_v45 = vmul.f32 %v1629_v37, %v1627_v28  ;;  %v1632_v46 = vmul.f32 %v1630_v38, %v1628_v30  ;;  %v1689_v51 = vmul.f32 %v1688_v44, %v6115_v22  ;;  %v1690_v52 = vmul.f32 %v1688_v44, %v6117_v23 }
  0xed   : > { %v1663_v49 = vadd.f32 %v1662_v35, %v1659_v41  ;;  %v1664_v50 = vadd.f32 %v1662_v35, %v1660_v42  ;;  %v1685_v54 = vadd.f32 %v1683_v47, %v1679_v39  ;;  %v1686_v55 = vadd.f32 %v1684_v48, %v1680_v40 }
  0xee   : > { %v1633_v53 = vadd.f32 %v1632_v46, %v1631_v45  ;;  %v1694_v56 = vstv %s6541_s1  ;;  %v1700_v63 = vstv %s6544_s2  ;;  %v1716_v0 = vstv %s6548_s15  ;;  %s6590_s1 = sld [smem:[#allocation4 + $0x15]]  ;;  %s6594_s2 = sld [smem:[#allocation2 + $0x16]] }
  0xef   : > { %v1665_v57 = vmax.f32 %v1663_v49, 1e-06  ;;  %v1666_v58 = vmax.f32 %v1664_v50, 1e-06  ;;  %v1695_v59 = vmul.f32 %v1694_v56, %v6121_v25  ;;  %v1696_v60 = vmul.f32 %v1694_v56, %v6130_v29  ;;  %s6600_s15 = sld [smem:[#allocation2 + $0x96]] }
  0xf0   : > { %1634 = vadd.xlane.f32.xlu1 %v1633_v53  ;;  %v1691_v61 = vadd.f32 %v1689_v51, %v1685_v54  ;;  %v1692_v62 = vadd.f32 %v1690_v52, %v1686_v55  ;;  %v1717_v3 = vmul.f32 %v1716_v0, %v6105_v17  ;;  %v1718_v4 = vmul.f32 %v1716_v0, %v6107_v18 }
  0xf1   : > { %v1667_v1 = vmul.f32 %v1665_v57, %v1665_v57  ;;  %v1668_v2 = vmul.f32 %v1666_v58, %v1666_v58  ;;  %v1720_v7 = vstv %s6554_s0  ;;  %v1726_v8 = vstv %s6556_s11  ;;  %s6602_s0 = sld [smem:[#allocation2 + $0x116]] }
  0xf2   : > { %v1697_v5 = vadd.f32 %v1695_v59, %v1691_v61  ;;  %v1698_v6 = vadd.f32 %v1696_v60, %v1692_v62  ;;  %v1721_v11 = vmul.f32 %v1720_v7, %v6109_v19  ;;  %v1722_v12 = vmul.f32 %v1720_v7, %v6113_v21  ;;  %s6610_s11 = sld [smem:[#allocation2 + $0x196]] }
  0xf3   : > { %v1669_v9 = vmul.f32 %v1667_v1, %v1665_v57  ;;  %v1670_v10 = vmul.f32 %v1668_v2, %v1666_v58  ;;  %v1727_v15 = vmul.f32 %v1726_v8, %v6115_v22  ;;  %v1728_v16 = vmul.f32 %v1726_v8, %v6117_v23 }
  0xf4   : > { %v1701_v13 = vadd.f32 %v1700_v63, %v1697_v5  ;;  %v1702_v14 = vadd.f32 %v1700_v63, %v1698_v6  ;;  %v1723_v24 = vadd.f32 %v1721_v11, %v1717_v3  ;;  %v1724_v26 = vadd.f32 %v1722_v12, %v1718_v4 }
  0xf5   : > { %v1671_v20 = vadd.f32 %v1670_v10, %v1669_v9  ;;  %v1732_v27 = vstv %s6564_s16  ;;  %v1738_v35 = vstv %s6567_s18  ;;  %v1754_v36 = vstv %s6571_s22  ;;  %s6613_s16 = sld [smem:[#allocation4 + $0x16]]  ;;  %s6617_s18 = sld [smem:[#allocation2 + $0x17]] }
  0xf6   : > { %v1703_v28 = vmax.f32 %v1701_v13, 1e-06  ;;  %v1704_v30 = vmax.f32 %v1702_v14, 1e-06  ;;  %v1733_v31 = vmul.f32 %v1732_v27, %v6121_v25  ;;  %v1734_v32 = vmul.f32 %v1732_v27, %v6130_v29  ;;  %s6623_s22 = sld [smem:[#allocation2 + $0x97]] }
  0xf7   : > { %1672 = vadd.xlane.f32.xlu0 %v1671_v20  ;;  %v1729_v33 = vadd.f32 %v1727_v15, %v1723_v24  ;;  %v1730_v34 = vadd.f32 %v1728_v16, %v1724_v26  ;;  %v1755_v39 = vmul.f32 %v1754_v36, %v6105_v17  ;;  %v1756_v40 = vmul.f32 %v1754_v36, %v6107_v18 }
  0xf8   : > { %v1705_v37 = vmul.f32 %v1703_v28, %v1703_v28  ;;  %v1706_v38 = vmul.f32 %v1704_v30, %v1704_v30  ;;  %v1758_v43 = vstv %s6577_s23  ;;  %v1764_v44 = vstv %s6579_s26  ;;  %s6625_s23 = sld [smem:[#allocation2 + $0x117]] }
  0xf9   : > { %v1735_v41 = vadd.f32 %v1733_v31, %v1729_v33  ;;  %v1736_v42 = vadd.f32 %v1734_v32, %v1730_v34  ;;  %v1759_v47 = vmul.f32 %v1758_v43, %v6109_v19  ;;  %v1760_v48 = vmul.f32 %v1758_v43, %v6113_v21  ;;  %s6633_s26 = sld [smem:[#allocation2 + $0x197]] }
  0xfa   : > { %v1707_v45 = vmul.f32 %v1705_v37, %v1703_v28  ;;  %v1708_v46 = vmul.f32 %v1706_v38, %v1704_v30  ;;  %v1765_v51 = vmul.f32 %v1764_v44, %v6115_v22  ;;  %v1766_v52 = vmul.f32 %v1764_v44, %v6117_v23 }
  0xfb   : > { %v1739_v49 = vadd.f32 %v1738_v35, %v1735_v41  ;;  %v1740_v50 = vadd.f32 %v1738_v35, %v1736_v42  ;;  %v1761_v54 = vadd.f32 %v1759_v47, %v1755_v39  ;;  %v1762_v55 = vadd.f32 %v1760_v48, %v1756_v40 }
  0xfc   : > { %v1709_v53 = vadd.f32 %v1708_v46, %v1707_v45  ;;  %v1770_v56 = vstv %s6587_s28  ;;  %v1776_v63 = vstv %s6590_s1  ;;  %v1792_v0 = vstv %s6594_s2  ;;  %s6636_s28 = sld [smem:[#allocation4 + $0x17]]  ;;  %s6640_s1 = sld [smem:[#allocation2 + $0x18]] }
  0xfd   : > { %v1741_v57 = vmax.f32 %v1739_v49, 1e-06  ;;  %v1742_v58 = vmax.f32 %v1740_v50, 1e-06  ;;  %v1771_v59 = vmul.f32 %v1770_v56, %v6121_v25  ;;  %v1772_v60 = vmul.f32 %v1770_v56, %v6130_v29  ;;  %s6646_s2 = sld [smem:[#allocation2 + $0x98]] }
  0xfe   : > { %1710 = vadd.xlane.f32.xlu1 %v1709_v53  ;;  %v1767_v61 = vadd.f32 %v1765_v51, %v1761_v54  ;;  %v1768_v62 = vadd.f32 %v1766_v52, %v1762_v55  ;;  %v1793_v3 = vmul.f32 %v1792_v0, %v6105_v17  ;;  %v1794_v4 = vmul.f32 %v1792_v0, %v6107_v18 }
  0xff   : > { %v1743_v1 = vmul.f32 %v1741_v57, %v1741_v57  ;;  %v1744_v2 = vmul.f32 %v1742_v58, %v1742_v58  ;;  %v1796_v7 = vstv %s6600_s15  ;;  %v1802_v8 = vstv %s6602_s0  ;;  %s6648_s15 = sld [smem:[#allocation2 + $0x118]] }
 0x100   : > { %v1773_v5 = vadd.f32 %v1771_v59, %v1767_v61  ;;  %v1774_v6 = vadd.f32 %v1772_v60, %v1768_v62  ;;  %v1797_v11 = vmul.f32 %v1796_v7, %v6109_v19  ;;  %v1798_v12 = vmul.f32 %v1796_v7, %v6113_v21  ;;  %s6656_s0 = sld [smem:[#allocation2 + $0x198]] }
 0x101   : > { %v1745_v9 = vmul.f32 %v1743_v1, %v1741_v57  ;;  %v1746_v10 = vmul.f32 %v1744_v2, %v1742_v58  ;;  %v1803_v15 = vmul.f32 %v1802_v8, %v6115_v22  ;;  %v1804_v16 = vmul.f32 %v1802_v8, %v6117_v23 }
 0x102   : > { %v1777_v13 = vadd.f32 %v1776_v63, %v1773_v5  ;;  %v1778_v14 = vadd.f32 %v1776_v63, %v1774_v6  ;;  %v1799_v24 = vadd.f32 %v1797_v11, %v1793_v3  ;;  %v1800_v26 = vadd.f32 %v1798_v12, %v1794_v4 }
 0x103   : > { %v1747_v20 = vadd.f32 %v1746_v10, %v1745_v9  ;;  %v1808_v27 = vstv %s6610_s11  ;;  %v1814_v35 = vstv %s6613_s16  ;;  %v1830_v36 = vstv %s6617_s18  ;;  %s6659_s11 = sld [smem:[#allocation4 + $0x18]]  ;;  %s6663_s16 = sld [smem:[#allocation2 + $0x19]] }
 0x104   : > { %v1779_v28 = vmax.f32 %v1777_v13, 1e-06  ;;  %v1780_v30 = vmax.f32 %v1778_v14, 1e-06  ;;  %v1809_v31 = vmul.f32 %v1808_v27, %v6121_v25  ;;  %v1810_v32 = vmul.f32 %v1808_v27, %v6130_v29  ;;  %s6669_s18 = sld [smem:[#allocation2 + $0x99]] }
 0x105   : > { %1748 = vadd.xlane.f32.xlu0 %v1747_v20  ;;  %v1805_v33 = vadd.f32 %v1803_v15, %v1799_v24  ;;  %v1806_v34 = vadd.f32 %v1804_v16, %v1800_v26  ;;  %v1831_v39 = vmul.f32 %v1830_v36, %v6105_v17  ;;  %v1832_v40 = vmul.f32 %v1830_v36, %v6107_v18 }
 0x106   : > { %v1781_v37 = vmul.f32 %v1779_v28, %v1779_v28  ;;  %v1782_v38 = vmul.f32 %v1780_v30, %v1780_v30  ;;  %v1834_v43 = vstv %s6623_s22  ;;  %v1840_v44 = vstv %s6625_s23  ;;  %s6671_s22 = sld [smem:[#allocation2 + $0x119]] }
 0x107   : > { %v1811_v41 = vadd.f32 %v1809_v31, %v1805_v33  ;;  %v1812_v42 = vadd.f32 %v1810_v32, %v1806_v34  ;;  %v1835_v47 = vmul.f32 %v1834_v43, %v6109_v19  ;;  %v1836_v48 = vmul.f32 %v1834_v43, %v6113_v21  ;;  %s6679_s23 = sld [smem:[#allocation2 + $0x199]] }
 0x108   : > { %v1783_v45 = vmul.f32 %v1781_v37, %v1779_v28  ;;  %v1784_v46 = vmul.f32 %v1782_v38, %v1780_v30  ;;  %v1841_v51 = vmul.f32 %v1840_v44, %v6115_v22  ;;  %v1842_v52 = vmul.f32 %v1840_v44, %v6117_v23 }
 0x109   : > { %v1815_v49 = vadd.f32 %v1814_v35, %v1811_v41  ;;  %v1816_v50 = vadd.f32 %v1814_v35, %v1812_v42  ;;  %v1837_v54 = vadd.f32 %v1835_v47, %v1831_v39  ;;  %v1838_v55 = vadd.f32 %v1836_v48, %v1832_v40 }
 0x10a   : > { %v1785_v53 = vadd.f32 %v1784_v46, %v1783_v45  ;;  %v1846_v56 = vstv %s6633_s26  ;;  %v1852_v63 = vstv %s6636_s28  ;;  %v1868_v0 = vstv %s6640_s1  ;;  %s6682_s26 = sld [smem:[#allocation4 + $0x19]]  ;;  %s6686_s28 = sld [smem:[#allocation2 + $0x1a]] }
 0x10b   : > { %v1817_v57 = vmax.f32 %v1815_v49, 1e-06  ;;  %v1818_v58 = vmax.f32 %v1816_v50, 1e-06  ;;  %v1847_v59 = vmul.f32 %v1846_v56, %v6121_v25  ;;  %v1848_v60 = vmul.f32 %v1846_v56, %v6130_v29  ;;  %s6692_s1 = sld [smem:[#allocation2 + $0x9a]] }
 0x10c   : > { %1786 = vadd.xlane.f32.xlu1 %v1785_v53  ;;  %v1843_v61 = vadd.f32 %v1841_v51, %v1837_v54  ;;  %v1844_v62 = vadd.f32 %v1842_v52, %v1838_v55  ;;  %v1869_v3 = vmul.f32 %v1868_v0, %v6105_v17  ;;  %v1870_v4 = vmul.f32 %v1868_v0, %v6107_v18 }
 0x10d   : > { %v1819_v1 = vmul.f32 %v1817_v57, %v1817_v57  ;;  %v1820_v2 = vmul.f32 %v1818_v58, %v1818_v58  ;;  %v1872_v7 = vstv %s6646_s2  ;;  %v1878_v8 = vstv %s6648_s15  ;;  %s6694_s2 = sld [smem:[#allocation2 + $0x11a]] }
 0x10e   : > { %v1849_v5 = vadd.f32 %v1847_v59, %v1843_v61  ;;  %v1850_v6 = vadd.f32 %v1848_v60, %v1844_v62  ;;  %v1873_v11 = vmul.f32 %v1872_v7, %v6109_v19  ;;  %v1874_v12 = vmul.f32 %v1872_v7, %v6113_v21  ;;  %s6702_s15 = sld [smem:[#allocation2 + $0x19a]] }
 0x10f   : > { %v1821_v9 = vmul.f32 %v1819_v1, %v1817_v57  ;;  %v1822_v10 = vmul.f32 %v1820_v2, %v1818_v58  ;;  %v1879_v15 = vmul.f32 %v1878_v8, %v6115_v22  ;;  %v1880_v16 = vmul.f32 %v1878_v8, %v6117_v23 }
 0x110   : > { %v1853_v13 = vadd.f32 %v1852_v63, %v1849_v5  ;;  %v1854_v14 = vadd.f32 %v1852_v63, %v1850_v6  ;;  %v1875_v24 = vadd.f32 %v1873_v11, %v1869_v3  ;;  %v1876_v26 = vadd.f32 %v1874_v12, %v1870_v4 }
 0x111   : > { %v1823_v20 = vadd.f32 %v1822_v10, %v1821_v9  ;;  %v1884_v27 = vstv %s6656_s0  ;;  %v1890_v35 = vstv %s6659_s11  ;;  %v1906_v36 = vstv %s6663_s16  ;;  %s6705_s0 = sld [smem:[#allocation4 + $0x1a]]  ;;  %s6709_s11 = sld [smem:[#allocation2 + $0x1b]] }
 0x112   : > { %v1855_v28 = vmax.f32 %v1853_v13, 1e-06  ;;  %v1856_v30 = vmax.f32 %v1854_v14, 1e-06  ;;  %v1885_v31 = vmul.f32 %v1884_v27, %v6121_v25  ;;  %v1886_v32 = vmul.f32 %v1884_v27, %v6130_v29  ;;  %s6715_s16 = sld [smem:[#allocation2 + $0x9b]] }
 0x113   : > { %1824 = vadd.xlane.f32.xlu0 %v1823_v20  ;;  %v1881_v33 = vadd.f32 %v1879_v15, %v1875_v24  ;;  %v1882_v34 = vadd.f32 %v1880_v16, %v1876_v26  ;;  %v1907_v39 = vmul.f32 %v1906_v36, %v6105_v17  ;;  %v1908_v40 = vmul.f32 %v1906_v36, %v6107_v18 }
 0x114   : > { %v1857_v37 = vmul.f32 %v1855_v28, %v1855_v28  ;;  %v1858_v38 = vmul.f32 %v1856_v30, %v1856_v30  ;;  %v1910_v43 = vstv %s6669_s18  ;;  %v1916_v44 = vstv %s6671_s22  ;;  %s6717_s18 = sld [smem:[#allocation2 + $0x11b]] }
 0x115   : > { %v1887_v41 = vadd.f32 %v1885_v31, %v1881_v33  ;;  %v1888_v42 = vadd.f32 %v1886_v32, %v1882_v34  ;;  %v1911_v47 = vmul.f32 %v1910_v43, %v6109_v19  ;;  %v1912_v48 = vmul.f32 %v1910_v43, %v6113_v21  ;;  %s6725_s22 = sld [smem:[#allocation2 + $0x19b]] }
 0x116   : > { %v1859_v45 = vmul.f32 %v1857_v37, %v1855_v28  ;;  %v1860_v46 = vmul.f32 %v1858_v38, %v1856_v30  ;;  %v1917_v51 = vmul.f32 %v1916_v44, %v6115_v22  ;;  %v1918_v52 = vmul.f32 %v1916_v44, %v6117_v23 }
 0x117   : > { %v1891_v49 = vadd.f32 %v1890_v35, %v1887_v41  ;;  %v1892_v50 = vadd.f32 %v1890_v35, %v1888_v42  ;;  %v1913_v54 = vadd.f32 %v1911_v47, %v1907_v39  ;;  %v1914_v55 = vadd.f32 %v1912_v48, %v1908_v40 }
 0x118   : > { %v1861_v53 = vadd.f32 %v1860_v46, %v1859_v45  ;;  %v1922_v56 = vstv %s6679_s23  ;;  %v1928_v63 = vstv %s6682_s26  ;;  %v1944_v0 = vstv %s6686_s28  ;;  %s6728_s23 = sld [smem:[#allocation4 + $0x1b]]  ;;  %s6732_s26 = sld [smem:[#allocation2 + $0x1c]] }
 0x119   : > { %v1893_v57 = vmax.f32 %v1891_v49, 1e-06  ;;  %v1894_v58 = vmax.f32 %v1892_v50, 1e-06  ;;  %v1923_v59 = vmul.f32 %v1922_v56, %v6121_v25  ;;  %v1924_v60 = vmul.f32 %v1922_v56, %v6130_v29  ;;  %s6738_s28 = sld [smem:[#allocation2 + $0x9c]] }
 0x11a   : > { %1862 = vadd.xlane.f32.xlu1 %v1861_v53  ;;  %v1919_v61 = vadd.f32 %v1917_v51, %v1913_v54  ;;  %v1920_v62 = vadd.f32 %v1918_v52, %v1914_v55  ;;  %v1945_v3 = vmul.f32 %v1944_v0, %v6105_v17  ;;  %v1946_v4 = vmul.f32 %v1944_v0, %v6107_v18 }
 0x11b   : > { %v1895_v1 = vmul.f32 %v1893_v57, %v1893_v57  ;;  %v1896_v2 = vmul.f32 %v1894_v58, %v1894_v58  ;;  %v1948_v7 = vstv %s6692_s1  ;;  %v1954_v8 = vstv %s6694_s2  ;;  %s6740_s1 = sld [smem:[#allocation2 + $0x11c]] }
 0x11c   : > { %v1925_v5 = vadd.f32 %v1923_v59, %v1919_v61  ;;  %v1926_v6 = vadd.f32 %v1924_v60, %v1920_v62  ;;  %v1949_v11 = vmul.f32 %v1948_v7, %v6109_v19  ;;  %v1950_v12 = vmul.f32 %v1948_v7, %v6113_v21  ;;  %s6748_s2 = sld [smem:[#allocation2 + $0x19c]] }
 0x11d   : > { %v1897_v9 = vmul.f32 %v1895_v1, %v1893_v57  ;;  %v1898_v10 = vmul.f32 %v1896_v2, %v1894_v58  ;;  %v1955_v15 = vmul.f32 %v1954_v8, %v6115_v22  ;;  %v1956_v16 = vmul.f32 %v1954_v8, %v6117_v23 }
 0x11e   : > { %v1929_v13 = vadd.f32 %v1928_v63, %v1925_v5  ;;  %v1930_v14 = vadd.f32 %v1928_v63, %v1926_v6  ;;  %v1951_v24 = vadd.f32 %v1949_v11, %v1945_v3  ;;  %v1952_v26 = vadd.f32 %v1950_v12, %v1946_v4 }
 0x11f   : > { %v1899_v20 = vadd.f32 %v1898_v10, %v1897_v9  ;;  %v1960_v27 = vstv %s6702_s15  ;;  %v1966_v35 = vstv %s6705_s0  ;;  %v1982_v36 = vstv %s6709_s11  ;;  %s6751_s15 = sld [smem:[#allocation4 + $0x1c]]  ;;  %s6755_s0 = sld [smem:[#allocation2 + $0x1d]] }
 0x120   : > { %v1931_v28 = vmax.f32 %v1929_v13, 1e-06  ;;  %v1932_v30 = vmax.f32 %v1930_v14, 1e-06  ;;  %v1961_v31 = vmul.f32 %v1960_v27, %v6121_v25  ;;  %v1962_v32 = vmul.f32 %v1960_v27, %v6130_v29  ;;  %s6761_s11 = sld [smem:[#allocation2 + $0x9d]] }
 0x121   : > { %1900 = vadd.xlane.f32.xlu0 %v1899_v20  ;;  %v1957_v33 = vadd.f32 %v1955_v15, %v1951_v24  ;;  %v1958_v34 = vadd.f32 %v1956_v16, %v1952_v26  ;;  %v1983_v39 = vmul.f32 %v1982_v36, %v6105_v17  ;;  %v1984_v40 = vmul.f32 %v1982_v36, %v6107_v18 }
 0x122   : > { %v1933_v37 = vmul.f32 %v1931_v28, %v1931_v28  ;;  %v1934_v38 = vmul.f32 %v1932_v30, %v1932_v30  ;;  %v1986_v43 = vstv %s6715_s16  ;;  %v1992_v44 = vstv %s6717_s18  ;;  %s6763_s16 = sld [smem:[#allocation2 + $0x11d]] }
 0x123   : > { %v1963_v41 = vadd.f32 %v1961_v31, %v1957_v33  ;;  %v1964_v42 = vadd.f32 %v1962_v32, %v1958_v34  ;;  %v1987_v47 = vmul.f32 %v1986_v43, %v6109_v19  ;;  %v1988_v48 = vmul.f32 %v1986_v43, %v6113_v21  ;;  %s6771_s18 = sld [smem:[#allocation2 + $0x19d]] }
 0x124   : > { %v1935_v45 = vmul.f32 %v1933_v37, %v1931_v28  ;;  %v1936_v46 = vmul.f32 %v1934_v38, %v1932_v30  ;;  %v1993_v51 = vmul.f32 %v1992_v44, %v6115_v22  ;;  %v1994_v52 = vmul.f32 %v1992_v44, %v6117_v23 }
 0x125   : > { %v1967_v49 = vadd.f32 %v1966_v35, %v1963_v41  ;;  %v1968_v50 = vadd.f32 %v1966_v35, %v1964_v42  ;;  %v1989_v54 = vadd.f32 %v1987_v47, %v1983_v39  ;;  %v1990_v55 = vadd.f32 %v1988_v48, %v1984_v40 }
 0x126   : > { %v1937_v53 = vadd.f32 %v1936_v46, %v1935_v45  ;;  %v1998_v56 = vstv %s6725_s22  ;;  %v2004_v63 = vstv %s6728_s23  ;;  %v2020_v0 = vstv %s6732_s26  ;;  %s6774_s22 = sld [smem:[#allocation2 + $0x1e]]  ;;  %s6778_s23 = sld [smem:[#allocation4 + $0x1d]] }
 0x127   : > { %v1969_v57 = vmax.f32 %v1967_v49, 1e-06  ;;  %v1970_v58 = vmax.f32 %v1968_v50, 1e-06  ;;  %v1999_v59 = vmul.f32 %v1998_v56, %v6121_v25  ;;  %v2000_v60 = vmul.f32 %v1998_v56, %v6130_v29  ;;  %s6784_s26 = sld [smem:[#allocation2 + $0x9e]] }
 0x128   : > { %1938 = vadd.xlane.f32.xlu1 %v1937_v53  ;;  %v1995_v61 = vadd.f32 %v1993_v51, %v1989_v54  ;;  %v1996_v62 = vadd.f32 %v1994_v52, %v1990_v55  ;;  %v2021_v3 = vmul.f32 %v2020_v0, %v6105_v17  ;;  %v2022_v4 = vmul.f32 %v2020_v0, %v6107_v18 }
 0x129   : > { %v1971_v1 = vmul.f32 %v1969_v57, %v1969_v57  ;;  %v1972_v2 = vmul.f32 %v1970_v58, %v1970_v58  ;;  %v2024_v7 = vstv %s6738_s28  ;;  %v2030_v8 = vstv %s6740_s1  ;;  %s6786_s28 = sld [smem:[#allocation2 + $0x11e]] }
 0x12a   : > { %v2001_v5 = vadd.f32 %v1999_v59, %v1995_v61  ;;  %v2002_v6 = vadd.f32 %v2000_v60, %v1996_v62  ;;  %v2025_v11 = vmul.f32 %v2024_v7, %v6109_v19  ;;  %v2026_v12 = vmul.f32 %v2024_v7, %v6113_v21  ;;  %s6794_s1 = sld [smem:[#allocation2 + $0x19e]] }
 0x12b   : > { %v1973_v9 = vmul.f32 %v1971_v1, %v1969_v57  ;;  %v1974_v10 = vmul.f32 %v1972_v2, %v1970_v58  ;;  %v2031_v15 = vmul.f32 %v2030_v8, %v6115_v22  ;;  %v2032_v16 = vmul.f32 %v2030_v8, %v6117_v23 }
 0x12c   : > { %v2005_v13 = vadd.f32 %v2004_v63, %v2001_v5  ;;  %v2006_v14 = vadd.f32 %v2004_v63, %v2002_v6  ;;  %v2027_v24 = vadd.f32 %v2025_v11, %v2021_v3  ;;  %v2028_v26 = vadd.f32 %v2026_v12, %v2022_v4 }
 0x12d   : > { %v1975_v20 = vadd.f32 %v1974_v10, %v1973_v9  ;;  %v2036_v27 = vstv %s6748_s2  ;;  %v2042_v35 = vstv %s6751_s15  ;;  %v2058_v36 = vstv %s6755_s0  ;;  %s6797_s2 = sld [smem:[#allocation2 + $0x1f]]  ;;  %s6801_s15 = sld [smem:[#allocation4 + $0x1e]] }
 0x12e   : > { %v2007_v28 = vmax.f32 %v2005_v13, 1e-06  ;;  %v2008_v30 = vmax.f32 %v2006_v14, 1e-06  ;;  %v2037_v31 = vmul.f32 %v2036_v27, %v6121_v25  ;;  %v2038_v32 = vmul.f32 %v2036_v27, %v6130_v29  ;;  %s6807_s0 = sld [smem:[#allocation2 + $0x9f]] }
 0x12f   : > { %1976 = vadd.xlane.f32.xlu0 %v1975_v20  ;;  %v2033_v33 = vadd.f32 %v2031_v15, %v2027_v24  ;;  %v2034_v34 = vadd.f32 %v2032_v16, %v2028_v26  ;;  %v2059_v39 = vmul.f32 %v2058_v36, %v6105_v17  ;;  %v2060_v40 = vmul.f32 %v2058_v36, %v6107_v18 }
 0x130   : > { %v2009_v37 = vmul.f32 %v2007_v28, %v2007_v28  ;;  %v2010_v38 = vmul.f32 %v2008_v30, %v2008_v30  ;;  %v2062_v43 = vstv %s6761_s11  ;;  %v2068_v44 = vstv %s6763_s16  ;;  %s6809_s11 = sld [smem:[#allocation2 + $0x11f]] }
 0x131   : > { %v2039_v41 = vadd.f32 %v2037_v31, %v2033_v33  ;;  %v2040_v42 = vadd.f32 %v2038_v32, %v2034_v34  ;;  %v2063_v47 = vmul.f32 %v2062_v43, %v6109_v19  ;;  %v2064_v48 = vmul.f32 %v2062_v43, %v6113_v21  ;;  %s6817_s16 = sld [smem:[#allocation2 + $0x19f]] }
 0x132   : > { %v2011_v45 = vmul.f32 %v2009_v37, %v2007_v28  ;;  %v2012_v46 = vmul.f32 %v2010_v38, %v2008_v30  ;;  %v2069_v51 = vmul.f32 %v2068_v44, %v6115_v22  ;;  %v2070_v52 = vmul.f32 %v2068_v44, %v6117_v23 }
 0x133   : > { %v2043_v49 = vadd.f32 %v2042_v35, %v2039_v41  ;;  %v2044_v50 = vadd.f32 %v2042_v35, %v2040_v42  ;;  %v2065_v54 = vadd.f32 %v2063_v47, %v2059_v39  ;;  %v2066_v55 = vadd.f32 %v2064_v48, %v2060_v40 }
 0x134   : > { %v2013_v53 = vadd.f32 %v2012_v46, %v2011_v45  ;;  %v2074_v56 = vstv %s6771_s18  ;;  %v2080_v63 = vstv %s6778_s23  ;;  %v2096_v0 = vstv %s6774_s22  ;;  %s6824_s18 = sld [smem:[#allocation4 + $0x1f]]  ;;  %s5872_s22 = smov 96  }
 0x135   : > { %v2045_v57 = vmax.f32 %v2043_v49, 1e-06  ;;  %v2046_v58 = vmax.f32 %v2044_v50, 1e-06  ;;  %v2075_v59 = vmul.f32 %v2074_v56, %v6121_v25  ;;  %v2076_v60 = vmul.f32 %v2074_v56, %v6130_v29  ;;  %s5873_s23 = smov 88  }
 0x136   : > { %2014 = vadd.xlane.f32.xlu1 %v2013_v53  ;;  %v2071_v61 = vadd.f32 %v2069_v51, %v2065_v54  ;;  %v2072_v62 = vadd.f32 %v2070_v52, %v2066_v55  ;;  %v2097_v3 = vmul.f32 %v2096_v0, %v6105_v17  ;;  %v2098_v4 = vmul.f32 %v2096_v0, %v6107_v18 }
 0x137   : > { %v2047_v1 = vmul.f32 %v2045_v57, %v2045_v57  ;;  %v2048_v2 = vmul.f32 %v2046_v58, %v2046_v58  ;;  %v2100_v7 = vstv %s6784_s26  ;;  %v2106_v8 = vstv %s6786_s28  ;;  %s5874_s26 = smov 64   ;;  %s5875_s28 = smov 120  }
 0x138   : > { %v2077_v5 = vadd.f32 %v2075_v59, %v2071_v61  ;;  %v2078_v6 = vadd.f32 %v2076_v60, %v2072_v62  ;;  %v2101_v11 = vmul.f32 %v2100_v7, %v6109_v19  ;;  %v2102_v12 = vmul.f32 %v2100_v7, %v6113_v21 }
 0x139   : > { %v2049_v9 = vmul.f32 %v2047_v1, %v2045_v57  ;;  %v2050_v10 = vmul.f32 %v2048_v2, %v2046_v58  ;;  %v2107_v15 = vmul.f32 %v2106_v8, %v6115_v22  ;;  %v2108_v16 = vmul.f32 %v2106_v8, %v6117_v23  ;;  %v2176_v8 = vld [vmem:[%s5907_s17] sm:$0xff] }
 0x13a   : > { %v2081_v13 = vadd.f32 %v2080_v63, %v2077_v5  ;;  %v2082_v14 = vadd.f32 %v2080_v63, %v2078_v6  ;;  %v2103_v24 = vadd.f32 %v2101_v11, %v2097_v3  ;;  %v2104_v26 = vadd.f32 %v2102_v12, %v2098_v4 }
 0x13b   : > { %v2051_v20 = vadd.f32 %v2050_v10, %v2049_v9  ;;  %v2112_v27 = vstv %s6794_s1  ;;  %v2118_v35 = vstv %s6801_s15  ;;  %v2134_v36 = vstv %s6797_s2  ;;  %v2177_v9 = vld [vmem:[%s5907_s17 + $0x8] sm:$0xff]  ;;  %s5876_s1 = smov 56   ;;  %s5877_s2 = smov 112  }
 0x13c   : > { %v2083_v28 = vmax.f32 %v2081_v13, 1e-06  ;;  %v2084_v30 = vmax.f32 %v2082_v14, 1e-06  ;;  %v2113_v31 = vmul.f32 %v2112_v27, %v6121_v25  ;;  %v2114_v32 = vmul.f32 %v2112_v27, %v6130_v29  ;;  %v2178_v10 = vld [vmem:[%s5907_s17 + $0x10] sm:$0xff]  ;;  %v2179_v13 = vld [vmem:[%s5907_s17 + $0x18] sm:$0xff] }
 0x13d   : > { %2052 = vadd.xlane.f32.xlu0 %v2051_v20  ;;  %v2109_v33 = vadd.f32 %v2107_v15, %v2103_v24  ;;  %v2110_v34 = vadd.f32 %v2108_v16, %v2104_v26  ;;  %v2135_v39 = vmul.f32 %v2134_v36, %v6105_v17  ;;  %v2136_v40 = vmul.f32 %v2134_v36, %v6107_v18  ;;  %v988_v16 = vpop.xlane.xlu0 %987  ;;  %v1065_v20 = vpop.xlane.xlu1 %1064  ;;  %s5878_s15 = smov 80  }
 0x13e   : > { %v2085_v37 = vmul.f32 %v2083_v28, %v2083_v28  ;;  %v2086_v38 = vmul.f32 %v2084_v30, %v2084_v30  ;;  %v2138_v43 = vstv %s6807_s0  ;;  %v2144_v44 = vstv %s6809_s11  ;;  %s7206_s0 = smov 72   ;;  %s7205_s11 = smov 104  }
 0x13f   : > { %v2115_v41 = vadd.f32 %v2113_v31, %v2109_v33  ;;  %v2116_v42 = vadd.f32 %v2114_v32, %v2110_v34  ;;  %v2139_v47 = vmul.f32 %v2138_v43, %v6109_v19  ;;  %v2140_v48 = vmul.f32 %v2138_v43, %v6113_v21 }
 0x140   : > { %v2087_v45 = vmul.f32 %v2085_v37, %v2083_v28  ;;  %v2088_v46 = vmul.f32 %v2086_v38, %v2084_v30  ;;  %v2145_v51 = vmul.f32 %v2144_v44, %v6115_v22  ;;  %v2146_v17 = vmul.f32 %v2144_v44, %v6117_v23 }
 0x141   : > { %v2119_v49 = vadd.f32 %v2118_v35, %v2115_v41  ;;  %v2120_v50 = vadd.f32 %v2118_v35, %v2116_v42  ;;  %v2141_v18 = vadd.f32 %v2139_v47, %v2135_v39  ;;  %v2142_v53 = vadd.f32 %v2140_v48, %v2136_v40  ;;  %v1027_v24 = vpop.xlane.xlu0 %1026  ;;  %v1103_v26 = vpop.xlane.xlu1 %1102 }
 0x142   : > { %v2089_v52 = vadd.f32 %v2088_v46, %v2087_v45  ;;  %v2150_v54 = vstv %s6817_s16  ;;  %v2156_v61 = vstv %s6824_s18  ;;  %v5869_v11 = vmov 0.0|0.0   ;;  %s5881_s16 = smov 48   ;;  %s7204_s18 = smov 40  }
 0x143   : > { %v2121_v55 = vmax.f32 %v2119_v49, 1e-06  ;;  %v2122_v56 = vmax.f32 %v2120_v50, 1e-06  ;;  %v2151_v57 = vmul.f32 %v2150_v54, %v6121_v25  ;;  %v2152_v58 = vmul.f32 %v2150_v54, %v6130_v29  ;;  %5589 = vmatprep.subr.bf16.mxu0 %v5869_v11 }
 0x144   : > { %2090 = vadd.xlane.f32.xlu1 %v2089_v52  ;;  %v2147_v19 = vadd.f32 %v2145_v51, %v2141_v18  ;;  %v2148_v21 = vadd.f32 %v2146_v17, %v2142_v53  ;;  %v5590_v12 = vpack.c.bf16 %v2177_v9, %v2176_v8  ;;  %v5871_v14 = vmov 0.0  }
 0x145   : > { %v2123_v59 = vmul.f32 %v2121_v55, %v2121_v55  ;;  %v2124_v60 = vmul.f32 %v2122_v56, %v2122_v56  ;;  %5352 = vmatprep.mubr.msk.f32.mxu0 %vm5870_vm0, %v5871_v14  ;;  %5370 = vmatprep.subr.mxu1 %v5871_v14  ;;  %v5593_v15 = vpack.c.bf16 %v2179_v13, %v2178_v10  ;;  %v1141_v27 = vpop.xlane.xlu0 %1140  ;;  %v1179_v28 = vpop.xlane.xlu1 %1178  ;;  %v952_v32 = vlaneseq }
 0x146   : > { %v2153_v62 = vadd.f32 %v2151_v57, %v2147_v19  ;;  %v2154_v22 = vadd.f32 %v2152_v58, %v2148_v21  ;;  %5372 = vmatprep.mubr.msk.f32.mxu1 %vm5870_vm0, %v5871_v14  ;;  %5591 = vmatpush3.bf16.msra.mxu0 %v5590_v12  ;;  %v990_v37 = vmul.f32 0.00390625, %v988_v16  ;;  %v1028_v38 = vmul.f32 0.00390625, %v1027_v24 }
 0x147   : > { %v2125_v23 = vmul.f32 %v2123_v59, %v2121_v55  ;;  %v2126_v63 = vmul.f32 %v2124_v60, %v2122_v56  ;;  %5592 = vmatprep.subr.bf16.mxu0 %v5869_v11  ;;  %v6850_v34 = vand.u32 127, %v952_v32  ;;  %v1066_v43 = vmul.f32 0.00390625, %v1065_v20 }
 0x148   : > { %v2157_v0 = vadd.f32 %v2156_v61, %v2153_v62  ;;  %v2158_v1 = vadd.f32 %v2156_v61, %v2154_v22  ;;  %v1104_v44 = vmul.f32 0.00390625, %v1103_v26  ;;  %v1142_v46 = vmul.f32 0.00390625, %v1141_v27 }
 0x149   : > { %v2127_v2 = vadd.f32 %v2126_v63, %v2125_v23  ;;  %v1217_v30 = vpop.xlane.xlu0 %1216  ;;  %v1255_v31 = vpop.xlane.xlu1 %1254  ;;  %vm991_vm1 = vcmp.eq.s32.totalorder %v6850_v34, 0  ;;  %vm1029_vm2 = vcmp.eq.s32.totalorder %v6850_v34, 1  ;;  %vm1067_vm3 = vcmp.eq.s32.totalorder %v6850_v34, 2 }
 0x14a   : > { %v2159_v25 = vmax.f32 %v2157_v0, 1e-06  ;;  %v2160_v3 = vmax.f32 %v2158_v1, 1e-06  ;;  %5594 = vmatpush3.bf16.msra.mxu0 %v5593_v15  ;;  %v992_v39 = vsel %vm991_vm1, %v990_v37, 0.0  ;;  %vm1105_vm4 = vcmp.eq.s32.totalorder %v6850_v34, 3 }
 0x14b   : > { %2128 = vadd.xlane.f32.xlu0 %v2127_v2  ;;  %5355 = vmatprep.subr.mxu0 %v5871_v14  ;;  %v1030_v41 = vsel %vm1029_vm2, %v1028_v38, %v992_v39  ;;  %vm1143_vm5 = vcmp.eq.s32.totalorder %v6850_v34, 4  ;;  %v1180_v50 = vmul.f32 0.00390625, %v1179_v28  ;;  %vm1181_vm6 = vcmp.eq.s32.totalorder %v6850_v34, 5 }
 0x14c   : > { %v2161_v29 = vmul.f32 %v2159_v25, %v2159_v25  ;;  %v2162_v4 = vmul.f32 %v2160_v3, %v2160_v3  ;;  %v1068_v45 = vsel %vm1067_vm3, %v1066_v43, %v1030_v41  ;;  %v1218_v17 = vmul.f32 0.00390625, %v1217_v30 }
 0x14d   : > { %v1293_v33 = vpop.xlane.xlu0 %1292  ;;  %v1331_v35 = vpop.xlane.xlu1 %1330  ;;  %v1106_v48 = vsel %vm1105_vm4, %v1104_v44, %v1068_v45  ;;  %vm1219_vm7 = vcmp.eq.s32.totalorder %v6850_v34, 6  ;;  %v1256_v53 = vmul.f32 0.00390625, %v1255_v31  ;;  %vm1257_vm8 = vcmp.eq.s32.totalorder %v6850_v34, 7 }
 0x14e   : > { %v2163_v5 = vmul.f32 %v2161_v29, %v2159_v25  ;;  %v2164_v6 = vmul.f32 %v2162_v4, %v2160_v3  ;;  %v1144_v51 = vsel %vm1143_vm5, %v1142_v46, %v1106_v48  ;;  %v1294_v56 = vmul.f32 0.00390625, %v1293_v33 }
 0x14f   : > { %v1182_v18 = vsel %vm1181_vm6, %v1180_v50, %v1144_v51  ;;  %vm1295_vm9 = vcmp.eq.s32.totalorder %v6850_v34, 8  ;;  %v1332_v58 = vmul.f32 0.00390625, %v1331_v35  ;;  %vm1333_vm10 = vcmp.eq.s32.totalorder %v6850_v34, 9 }
 0x150   : > { %v2165_v7 = vadd.f32 %v2164_v6, %v2163_v5  ;;  %v1220_v55 = vsel %vm1219_vm7, %v1218_v17, %v1182_v18  ;;  %vm1371_vm11 = vcmp.eq.s32.totalorder %v6850_v34, 10  ;;  %vm1409_vm12 = vcmp.eq.s32.totalorder %v6850_v34, 11 }
 0x151   : > { %v1369_v36 = vpop.xlane.xlu0 %1368  ;;  %v1258_v57 = vsel %vm1257_vm8, %v1256_v53, %v1220_v55  ;;  %vm1447_vm13 = vcmp.eq.s32.totalorder %v6850_v34, 12  ;;  %vm1485_vm14 = vcmp.eq.s32.totalorder %v6850_v34, 13  ;;  %vm1523_vm15 = vcmp.eq.s32.totalorder %v6850_v34, 14 }
 0x152   : > { %2166 = vadd.xlane.f32.xlu1 %v2165_v7  ;;  %v1296_v19 = vsel %vm1295_vm9, %v1294_v56, %v1258_v57  ;;  %v1370_v21 = vmul.f32 0.00390625, %v1369_v36  ;;  %vm1561_vm1 = vcmp.eq.s32.totalorder %v6850_v34, 15  ;;  %vm1599_vm2 = vcmp.eq.s32.totalorder %v6850_v34, 16 }
 0x153   : > { %v1407_v40 = vpop.xlane.xlu1 %1406  ;;  %v1334_v61 = vsel %vm1333_vm10, %v1332_v58, %v1296_v19  ;;  %vm1637_vm3 = vcmp.eq.s32.totalorder %v6850_v34, 17  ;;  %vm1675_vm4 = vcmp.eq.s32.totalorder %v6850_v34, 18  ;;  %vm1713_vm5 = vcmp.eq.s32.totalorder %v6850_v34, 19 }
 0x154   : > { %v1408_v62 = vmul.f32 0.00390625, %v1407_v40  ;;  %v1372_v22 = vsel %vm1371_vm11, %v1370_v21, %v1334_v61  ;;  %vm1751_vm6 = vcmp.eq.s32.totalorder %v6850_v34, 20  ;;  %vm1789_vm7 = vcmp.eq.s32.totalorder %v6850_v34, 21 }
 0x155   : > { %vm1827_vm8 = vcmp.eq.s32.totalorder %v6850_v34, 22  ;;  %vm1865_vm9 = vcmp.eq.s32.totalorder %v6850_v34, 23  ;;  %vm1903_vm10 = vcmp.eq.s32.totalorder %v6850_v34, 24  ;;  %vm1941_vm11 = vcmp.eq.s32.totalorder %v6850_v34, 25 }
 0x156   : > { %v1410_v0 = vsel %vm1409_vm12, %v1408_v62, %v1372_v22  ;;  %vm1979_vm12 = vcmp.eq.s32.totalorder %v6850_v34, 26  ;;  %v5180_v62 = vld [vmem:[%s5912_s21] ss:$0 sm:$0xff] }
 0x15a   : > { %v1445_v42 = vpop.xlane.xlu0 %1444 }
 0x15b   : > { %v1446_v23 = vmul.f32 0.00390625, %v1445_v42 }
 0x15d   : > { %v1448_v25 = vsel %vm1447_vm13, %v1446_v23, %v1410_v0  ;;  %vm2017_vm13 = vcmp.eq.s32.totalorder %v6850_v34, 27 }
 0x161   : > { %v1483_v47 = vpop.xlane.xlu1 %1482 }
 0x162   : > { %v1484_v1 = vmul.f32 0.00390625, %v1483_v47 }
 0x164   : > { %v1486_v29 = vsel %vm1485_vm14, %v1484_v1, %v1448_v25  ;;  %vm2055_vm14 = vcmp.eq.s32.totalorder %v6850_v34, 28 }
 0x168   : > { %v1521_v49 = vpop.xlane.xlu0 %1520 }
 0x169   : > { %v1522_v3 = vmul.f32 0.00390625, %v1521_v49 }
 0x16b   : > { %v1524_v5 = vsel %vm1523_vm15, %v1522_v3, %v1486_v29  ;;  %vm2093_vm15 = vcmp.eq.s32.totalorder %v6850_v34, 29 }
 0x16f   : > { %v1559_v52 = vpop.xlane.xlu1 %1558 }
 0x170   : > { %v1560_v4 = vmul.f32 0.00390625, %v1559_v52 }
 0x172   : > { %v1562_v9 = vsel %vm1561_vm1, %v1560_v4, %v1524_v5  ;;  %vm2131_vm1 = vcmp.eq.s32.totalorder %v6850_v34, 30 }
 0x176   : > { %v1597_v54 = vpop.xlane.xlu0 %1596 }
 0x177   : > { %v1598_v6 = vmul.f32 0.00390625, %v1597_v54 }
 0x179   : > { %v1600_v12 = vsel %vm1599_vm2, %v1598_v6, %v1562_v9  ;;  %vm2169_vm2 = vcmp.eq.s32.totalorder %v6850_v34, 31 }
 0x17d   : > { %v1635_v59 = vpop.xlane.xlu1 %1634 }
 0x17e   : > { %v1636_v10 = vmul.f32 0.00390625, %v1635_v59 }
 0x180   : > { %v1638_v16 = vsel %vm1637_vm3, %v1636_v10, %v1600_v12  ;;  %vm2187_vm3 = vcmask 261120  }
 0x184   : > { %v1673_v60 = vpop.xlane.xlu0 %1672 }
 0x185   : > { %v1674_v13 = vmul.f32 0.00390625, %v1673_v60 }
 0x187   : > { %v1676_v26 = vsel %vm1675_vm4, %v1674_v13, %v1638_v16  ;;  %vm2268_vm4 = vcmask 64512  }
 0x18b   : > { %v1711_v63 = vpop.xlane.xlu1 %1710 }
 0x18c   : > { %v1712_v20 = vmul.f32 0.00390625, %v1711_v63 }
 0x18e   : > { %v1714_v28 = vsel %vm1713_vm5, %v1712_v20, %v1676_v26 }
 0x192   : > { %v1749_v2 = vpop.xlane.xlu0 %1748 }
 0x193   : > { %v1750_v27 = vmul.f32 0.00390625, %v1749_v2 }
 0x195   : > { %v1752_v31 = vsel %vm1751_vm6, %v1750_v27, %v1714_v28 }
 0x199   : > { %v1787_v7 = vpop.xlane.xlu1 %1786 }
 0x19a   : > { %v1788_v30 = vmul.f32 0.00390625, %v1787_v7 }
 0x19c   : > { %v1790_v36 = vsel %vm1789_vm7, %v1788_v30, %v1752_v31 }
 0x1a0   : > { %v1825_v8 = vpop.xlane.xlu0 %1824 }
 0x1a1   : > { %v1826_v32 = vmul.f32 0.00390625, %v1825_v8 }
 0x1a3   : > { %v1828_v38 = vsel %vm1827_vm8, %v1826_v32, %v1790_v36  ;;  %v2262_v36 = vld [vmem:[%s5917_s25 + $0x8] sm:$0xff] }
 0x1a7   : > { %v1863_v15 = vpop.xlane.xlu1 %1862 }
 0x1a8   : > { %v1864_v37 = vmul.f32 0.00390625, %v1863_v15 }
 0x1aa   : > { %v1866_v41 = vsel %vm1865_vm9, %v1864_v37, %v1828_v38 }
 0x1ae   : > { %v1901_v24 = vpop.xlane.xlu0 %1900 }
 0x1af   : > { %v1902_v39 = vmul.f32 0.00390625, %v1901_v24 }
 0x1b1   : > { %v1904_v44 = vsel %vm1903_vm10, %v1902_v39, %v1866_v41 }
 0x1b5   : > { %v1939_v33 = vpop.xlane.xlu1 %1938 }
 0x1b6   : > { %v1940_v42 = vmul.f32 0.00390625, %v1939_v33 }
 0x1b8   : > { %v1942_v46 = vsel %vm1941_vm11, %v1940_v42, %v1904_v44 }
 0x1bc   : > { %v1977_v35 = vpop.xlane.xlu0 %1976 }
 0x1bd   : > { %v1978_v45 = vmul.f32 0.00390625, %v1977_v35 }
 0x1bf   : > { %v1980_v48 = vsel %vm1979_vm12, %v1978_v45, %v1942_v46 }
 0x1c3   : > { %v2015_v40 = vpop.xlane.xlu1 %2014 }
 0x1c4   : > { %v2016_v47 = vmul.f32 0.00390625, %v2015_v40  ;;  %v2261_v40 = vld [vmem:[%s5917_s25] sm:$0xff] }
 0x1c6   : > { %v2018_v17 = vsel %vm2017_vm13, %v2016_v47, %v1980_v48 }
 0x1ca   : > { %v2053_v43 = vpop.xlane.xlu0 %2052 }
 0x1cb   : > { %v2054_v49 = vmul.f32 0.00390625, %v2053_v43 }
 0x1cd   : > { %v2056_v18 = vsel %vm2055_vm14, %v2054_v49, %v2018_v17 }
 0x1d1   : > { %v2091_v50 = vpop.xlane.xlu1 %2090 }
 0x1d2   : > { %v2092_v52 = vmul.f32 0.00390625, %v2091_v50 }
 0x1d4   : > { %v2094_v54 = vsel %vm2093_vm15, %v2092_v52, %v2056_v18 }
 0x1d8   : > { %v2129_v51 = vpop.xlane.xlu0 %2128 }
 0x1d9   : > { %v2130_v53 = vmul.f32 0.00390625, %v2129_v51 }
 0x1db   : > { %v2132_v55 = vsel %vm2131_vm1, %v2130_v53, %v2094_v54 }
 0x1df   : > { %v2167_v56 = vpop.xlane.xlu1 %2166 }
 0x1e0   : > { %v2168_v57 = vmul.f32 0.00390625, %v2167_v56 }
 0x1e2   : > { %v2170_v58 = vsel %vm2169_vm2, %v2168_v57, %v2132_v55 }
 0x1e3   : > { %5740 = vlog2.f32 %v2170_v58 }
 0x1ed   : > { %v5741_v19 = vpop.eup %5740 }
 0x1ee   : > { %v2172_v21 = vmul.f32 0.6931472, %v5741_v19 }
 0x1f0   : > { %v2173_v59 = vmul.f32 0.33333334, %v2172_v21 }
 0x1f2   : > { %v2174_v60 = vmul.f32 1.442695, %v2173_v59 }
 0x1f4   : > { %5742 = vpow2.f32 %v2174_v60 }
 0x1fe   : > { %v6884_v61 = vpop.eup %5742 }
 0x1ff   : > { %5353 = vmatmul.mubr.msk.f32.vlgmr.msra.gmra.mrb[0].mxu0 %vm2187_vm3, %v6884_v61 }
 0x200   : > { %5357 = vmatprep.mubr.msk.f32.mxu0 %vm5870_vm0, %v5871_v14 }
 0x2d2   : > { %v2257_v34 = vpop.f32.mrb[0].mxu0 }
 0x2d3   : > { %v6891_v22 = vadd.f32 %v5180_v62, %v2257_v34  ;;  %v5354_v23 = vpop.f32.mrb[1].mxu0  ;;  %v2263_v62 = vld [vmem:[%s5917_s25 + $0x10] sm:$0xff] }
 0x2d5   : > { %2266 = vrot.lane.b32.xlu0 %v6891_v22, %s5872_s22 }
 0x2d9   : > { %2433 = vrot.lane.b32.xlu0 %v6891_v22, %s5873_s23 }
 0x347   : > { %v2267_v63 = vpop.permute.xlu0 %2266 }
 0x348   : > { %5356 = vmatpush3.xpose.msk.msra.mxu0 %vm2268_vm4, %v2267_v63 }
 0x349   : > { %5360 = vmatprep.subr.mxu0 %v5871_v14 }
 0x34b   : > { %5358 = vmatmul.mubr.msk.f32.vlgmr.msra.gmra.mrb[2].mxu0 %vm2268_vm4, %v6891_v22  ;;  %v2434_v12 = vpop.permute.xlu0 %2433 }
 0x34c   : > { %5362 = vmatprep.mubr.msk.f32.mxu0 %vm5870_vm0, %v5871_v14 }
 0x41e   : > { %v2339_v0 = vpop.f32.mrb[2].mxu0 }
 0x41f   : > { %v2343_v1 = vmul.f32 0.35355338, %v2339_v0  ;;  %v5359_v2 = vpop.f32.mrb[3].mxu0 }
 0x421   : > { %v2344_v25 = vsel %vm2268_vm4, %v2343_v1, -inf }
 0x422   : > { %2345 = vmax.xlane.f32.xlu1 %v2344_v25 }
 0x433   : > { %2355 = vrot.lane.b32.xlu1 %v6891_v22, %s5874_s26 }
 0x4af   : > { %v2346_v3 = vpop.xlane.xlu1 %2345 }
 0x4b0   : > { %v2347_v29 = vsub.f32 %v2343_v1, %v2346_v3 }
 0x4b2   : > { %v2348_v4 = vmul.f32 1.442695, %v2347_v29 }
 0x4b3   : > { %v2356_v5 = vpop.permute.xlu1 %2355 }
 0x4b4   : > { %5744 = vpow2.f32 %v2348_v4  ;;  %5361 = vmatpush3.msra.mxu0 %v2356_v5 }
 0x4b5   : > { %5365 = vmatprep.subr.mxu0 %v5871_v14 }
 0x4be   : > { %v5745_v6 = vpop.eup %5744 }
 0x4bf   : > { %v2350_v7 = vsel %vm2268_vm4, %v5745_v6, 0.0 }
 0x4c0   : > { %2351 = vadd.xlane.f32.xlu1 %v2350_v7  ;;  %v2264_v7 = vld [vmem:[%s5917_s25 + $0x18] sm:$0xff] }
 0x4d1   : > { %2431 = vrot.lane.b32.xlu1 %v6891_v22, %s5875_s28 }
 0x54d   : > { %v2352_v8 = vpop.xlane.xlu1 %2351 }
 0x54e   : > { %5746 = vrcp.f32 %v2352_v8 }
 0x551   : > { %v2432_v13 = vpop.permute.xlu1 %2431 }
 0x558   : > { %v5747_v9 = vpop.eup %5746 }
 0x559   : > { %v2354_v10 = vmul.f32 %v5747_v9, %v5745_v6 }
 0x55b   : > { %5363 = vmatmul.mubr.msk.f32.vlgmr.msra.gmra.mrb[4].mxu0 %vm2268_vm4, %v2354_v10 }
 0x55c   : > { %5366 = vmatpush3.xpose.msk.msra.mxu0 %vm2268_vm4, %v2434_v12  ;;  %5367 = vmatprep.mubr.msk.f32.mxu0 %vm5870_vm0, %v5871_v14 }
 0x55d   : > { %5375 = vmatprep.subr.mxu0 %v5871_v14 }
 0x55f   : > { %5368 = vmatmul.mubr.msk.f32.vlgmr.msra.gmra.mrb[6].mxu0 %vm2268_vm4, %v2432_v13 }
 0x560   : > { %5377 = vmatprep.mubr.msk.f32.mxu0 %vm5870_vm0, %v5871_v14  ;;  %5376 = vmatpush3.msra.mxu0 %v2262_v36 }
 0x561   : > { %5385 = vmatprep.subr.mxu0 %v5871_v14 }
 0x62e   : > { %v2427_v15 = vpop.f32.mrb[4].mxu0 }
 0x62f   : > { %v5364_v16 = vpop.f32.mrb[5].mxu0 }
 0x632   : > { %v2505_v20 = vpop.f32.mrb[6].mxu0 }
 0x633   : > { %v2509_v24 = vmul.f32 0.35355338, %v2505_v20  ;;  %v5369_v26 = vpop.f32.mrb[7].mxu0 }
 0x635   : > { %v2510_v27 = vsel %vm2268_vm4, %v2509_v24, -inf }
 0x636   : > { %2511 = vmax.xlane.f32.xlu0 %v2510_v27 }
 0x64c   : > { %2521 = vrot.lane.b32.xlu0 %v6891_v22, %s5876_s1 }
 0x650   : > { %2743 = vrot.lane.b32.xlu0 %v6891_v22, %s5877_s2 }
 0x6c3   : > { %v2512_v28 = vpop.xlane.xlu0 %2511 }
 0x6c4   : > { %v2513_v30 = vsub.f32 %v2509_v24, %v2512_v28  ;;  %v5198_v24 = vld [vmem:[%s5922_s29] ss:$0 sm:$0xff] }
 0x6c6   : > { %v2514_v31 = vmul.f32 1.442695, %v2513_v30 }
 0x6c7   : > { %v2522_v32 = vpop.permute.xlu0 %2521 }
 0x6c8   : > { %5748 = vpow2.f32 %v2514_v31  ;;  %5371 = vmatpush3.msra.mxu1 %v2522_v32 }
 0x6c9   : > { %5380 = vmatprep.subr.mxu1 %v5871_v14 }
 0x6cb   : > { %v2744_v44 = vpop.permute.xlu0 %2743 }
 0x6d2   : > { %v5749_v33 = vpop.eup %5748 }
 0x6d3   : > { %v2516_v35 = vsel %vm2268_vm4, %v5749_v33, 0.0 }
 0x6d4   : > { %2517 = vadd.xlane.f32.xlu1 %v2516_v35 }
 0x6e5   : > { %2745 = vrot.lane.b32.xlu1 %v6891_v22, %s5878_s15 }
 0x761   : > { %v2518_v37 = vpop.xlane.xlu1 %2517 }
 0x762   : > { %5750 = vrcp.f32 %v2518_v37 }
 0x765   : > { %v2746_v42 = vpop.permute.xlu1 %2745 }
 0x76c   : > { %v5751_v38 = vpop.eup %5750 }
 0x76d   : > { %v2520_v39 = vmul.f32 %v5751_v38, %v5749_v33  ;;  %v3262_v38 = vld [vmem:[%s5927_s3] sm:$0xff] }
 0x76f   : > { %5373 = vmatmul.mubr.msk.f32.vlgmr.msra.gmra.mrb[0].mxu1 %vm2268_vm4, %v2520_v39  ;;  %v3263_v39 = vld [vmem:[%s5927_s3 + $0x8] sm:$0xff] }
 0x770   : > { %5381 = vmatpush3.msra.mxu1 %v2261_v40  ;;  %5382 = vmatprep.mubr.msk.f32.mxu1 %vm5870_vm0, %v5871_v14  ;;  %v5596_v40 = vpack.c.bf16 %v3263_v39, %v3262_v38  ;;  %v5883_v39 = vmov -1.0  }
 0x771   : > { %5390 = vmatprep.subr.mxu1 %v5871_v14 }
 0x773   : > { %5383 = vmatmul.mubr.msk.f32.vlgmr.msra.gmra.mrb[2].mxu1 %vm2268_vm4, %v2427_v15 }
 0x774   : > { %5392 = vmatprep.mubr.msk.f32.mxu1 %vm5870_vm0, %v5871_v14 }
 0x842   : > { %v2593_v41 = vpop.f32.mrb[0].mxu1 }
 0x843   : > { %v5374_v43 = vpop.f32.mrb[1].mxu1  ;;  %5378 = vmatmul.mubr.msk.f32.vlgmr.msra.gmra.mrb[8].mxu0 %vm2268_vm4, %v2593_v41  ;;  %v3264_v41 = vld [vmem:[%s5927_s3 + $0x10] sm:$0xff] }
 0x844   : > { %5386 = vmatpush3.xpose.msk.msra.mxu0 %vm2268_vm4, %v2746_v42  ;;  %5387 = vmatprep.mubr.msk.f32.mxu0 %vm5870_vm0, %v5871_v14  ;;  %v3265_v42 = vld [vmem:[%s5927_s3 + $0x18] sm:$0xff] }
 0x845   : > { %5395 = vmatprep.subr.mxu0 %v5871_v14 }
 0x846   : > { %v2739_v45 = vpop.f32.mrb[2].mxu1 }
 0x847   : > { %v5384_v46 = vpop.f32.mrb[3].mxu1  ;;  %5388 = vmatmul.mubr.msk.f32.vlgmr.msra.gmra.mrb[10].mxu0 %vm2268_vm4, %v2744_v44 }
 0x848   : > { %5397 = vmatprep.mubr.msk.f32.mxu0 %vm5870_vm0, %v5871_v14  ;;  %5396 = vmatpush3.msra.mxu0 %v2263_v62  ;;  %v3382_v62 = vld [vmem:[%s5937_s14 + $0x48] sm:$0xff] }
 0x849   : > { %5405 = vmatprep.subr.mxu0 %v5871_v14 }
 0x916   : > { %v2666_v47 = vpop.f32.mrb[8].mxu0 }
 0x917   : > { %v6945_v48 = vadd.f32 %v2739_v45, %v2666_v47  ;;  %v5379_v49 = vpop.f32.mrb[9].mxu0  ;;  %v5199_v47 = vld [vmem:[%s5947_s24] ss:$0 sm:$0xff] }
 0x918   : > { %v5200_v49 = vld [vmem:[%s5952_s30] ss:$0 sm:$0xff] }
 0x91a   : > { %v2817_v50 = vpop.f32.mrb[10].mxu0 }
 0x91b   : > { %v2821_v51 = vmul.f32 0.35355338, %v2817_v50  ;;  %v5389_v17 = vpop.f32.mrb[11].mxu0 }
 0x91c   : > { %v3373_v17 = vld [vmem:[%s5937_s14] sm:$0xff] }
 0x91d   : > { %v2822_v52 = vsel %vm2268_vm4, %v2821_v51, -inf }
 0x91e   : > { %2823 = vmax.xlane.f32.xlu1 %v2822_v52  ;;  %v3374_v52 = vld [vmem:[%s5937_s14 + $0x8] sm:$0xff] }
 0x92f   : > { %2985 = vrot.lane.b32.xlu1 %v6891_v22, %s7206_s0  ;;  %s7228_s0 = sld [smem:[#allocation10_spill]] }
 0x933   : > { %2983 = vrot.lane.b32.xlu1 %v6891_v22, %s7205_s11  ;;  %s7227_s11 = sld [smem:[#allocation9_spill]] }
 0x9ab   : > { %v2824_v18 = vpop.xlane.xlu1 %2823 }
 0x9ac   : > { %v2825_v53 = vsub.f32 %v2821_v51, %v2824_v18  ;;  %v5602_v18 = vpack.c.bf16 %v3374_v52, %v3373_v17 }
 0x9ae   : > { %v2826_v54 = vmul.f32 1.442695, %v2825_v53  ;;  %v3375_v53 = vld [vmem:[%s5937_s14 + $0x10] sm:$0xff] }
 0x9af   : > { %v2986_v21 = vpop.permute.xlu1 %2985 }
 0x9b0   : > { %5752 = vpow2.f32 %v2826_v54  ;;  %v3376_v54 = vld [vmem:[%s5937_s14 + $0x18] sm:$0xff] }
 0x9b3   : > { %v2984_v60 = vpop.permute.xlu1 %2983 }
 0x9ba   : > { %v5753_v55 = vpop.eup %5752 }
 0x9bb   : > { %v2828_v56 = vsel %vm2268_vm4, %v5753_v55, 0.0 }
 0x9bc   : > { %2829 = vadd.xlane.f32.xlu0 %v2828_v56  ;;  %v3377_v56 = vld [vmem:[%s5937_s14 + $0x20] sm:$0xff] }
 0x9d2   : > { %2833 = vrot.lane.b32.xlu0 %v6891_v22, %s5881_s16 }
 0xa49   : > { %v2830_v57 = vpop.xlane.xlu0 %2829 }
 0xa4a   : > { %5754 = vrcp.f32 %v2830_v57  ;;  %v3378_v57 = vld [vmem:[%s5937_s14 + $0x28] sm:$0xff] }
 0xa4d   : > { %v2834_v58 = vpop.permute.xlu0 %2833 }
 0xa4e   : > { %5391 = vmatpush3.msra.mxu1 %v2834_v58  ;;  %v5608_v58 = vpack.c.bf16 %v3378_v57, %v3377_v56  ;;  %v3498_v57 = vld [vmem:[%s5967_s20 + $0x10] sm:$0xff] }
 0xa4f   : > { %5400 = vmatprep.subr.mxu1 %v5871_v14 }
 0xa54   : > { %v5755_v19 = vpop.eup %5754 }
 0xa55   : > { %v2832_v59 = vmul.f32 %v5755_v19, %v5753_v55  ;;  %v5605_v55 = vpack.c.bf16 %v3376_v54, %v3375_v53  ;;  %v3379_v19 = vld [vmem:[%s5937_s14 + $0x30] sm:$0xff]  ;;  %v3496_v54 = vld [vmem:[%s5967_s20] sm:$0xff] }
 0xa57   : > { %5393 = vmatmul.mubr.msk.f32.vlgmr.msra.gmra.mrb[4].mxu1 %vm2268_vm4, %v2832_v59 }
 0xa58   : > { %5401 = vmatpush3.xpose.msk.msra.mxu1 %vm2268_vm4, %v2986_v21  ;;  %5402 = vmatprep.mubr.msk.f32.mxu1 %vm5870_vm0, %v5871_v14  ;;  %v3380_v21 = vld [vmem:[%s5937_s14 + $0x38] sm:$0xff] }
 0xa59   : > { %5410 = vmatprep.subr.mxu1 %v5871_v14  ;;  %v5611_v59 = vpack.c.bf16 %v3380_v21, %v3379_v19 }
 0xa5b   : > { %5403 = vmatmul.mubr.msk.f32.vlgmr.msra.gmra.mrb[6].mxu1 %vm2268_vm4, %v2984_v60  ;;  %v3381_v60 = vld [vmem:[%s5937_s14 + $0x40] sm:$0xff] }
 0xa5c   : > { %5412 = vmatprep.mubr.msk.f32.mxu1 %vm5870_vm0, %v5871_v14  ;;  %5411 = vmatpush3.msra.mxu1 %v2264_v7 }
 0xa5d   : > { %5601 = vmatprep.subr.bf16.mxu1 %v5869_v11 }
 0xb2a   : > { %v2905_v34 = vpop.f32.mrb[4].mxu1 }
 0xb2b   : > { %v5394_v23 = vpop.f32.mrb[5].mxu1  ;;  %5398 = vmatmul.mubr.msk.f32.vlgmr.msra.gmra.mrb[12].mxu0 %vm2268_vm4, %v2905_v34  ;;  %v5614_v34 = vpack.c.bf16 %v3382_v62, %v3381_v60 }
 0xb2c   : > { %5407 = vmatprep.mubr.msk.f32.mxu0 %vm5870_vm0, %v5871_v14  ;;  %v3383_v23 = vld [vmem:[%s5937_s14 + $0x50] sm:$0xff] }
 0xb2e   : > { %v3057_v63 = vpop.f32.mrb[6].mxu1 }
 0xb2f   : > { %v3061_v0 = vmul.f32 0.35355338, %v3057_v63  ;;  %v5404_v1 = vpop.f32.mrb[7].mxu1  ;;  %v3384_v63 = vld [vmem:[%s5937_s14 + $0x58] sm:$0xff] }
 0xb30   : > { %v3385_v1 = vld [vmem:[%s5937_s14 + $0x60] sm:$0xff] }
 0xb31   : > { %v3062_v2 = vsel %vm2268_vm4, %v3061_v0, -inf }
 0xb32   : > { %3063 = vmax.xlane.f32.xlu0 %v3062_v2  ;;  %v3386_v2 = vld [vmem:[%s5937_s14 + $0x68] sm:$0xff] }
 0xb48   : > { %3073 = vrot.lane.b32.xlu0 %v6891_v22, %s7204_s18  ;;  %s7226_s18 = sld [smem:[#allocation8_spill]] }
 0xb4e   : > { %v5204_v62 = vld [vmem:[%s7226_s18] ss:$0 sm:$0xff]  ;;  %s7239_s18 = sld [smem:[#allocation16_spill]] }
 0xbbf   : > { %v3064_v25 = vpop.xlane.xlu0 %3063 }
 0xbc0   : > { %v3065_v3 = vsub.f32 %v3061_v0, %v3064_v25  ;;  %v5617_v0 = vpack.c.bf16 %v3384_v63, %v3383_v23  ;;  %v5620_v25 = vpack.c.bf16 %v3386_v2, %v3385_v1  ;;  %v5205_v23 = vld [vmem:[%s7227_s11] ss:$0 sm:$0xff]  ;;  %s7237_s11 = sld [smem:[#allocation15_spill]] }
 0xbc1   : > { %v5206_v1 = vld [vmem:[%s7228_s0] ss:$0 sm:$0xff]  ;;  %s7236_s0 = sld [smem:[#allocation18_spill]] }
 0xbc2   : > { %v3066_v29 = vmul.f32 1.442695, %v3065_v3  ;;  %v3387_v3 = vld [vmem:[%s5937_s14 + $0x70] sm:$0xff] }
 0xbc3   : > { %v3074_v4 = vpop.permute.xlu0 %3073 }
 0xbc4   : > { %5756 = vpow2.f32 %v3066_v29  ;;  %5406 = vmatpush3.msra.mxu0 %v3074_v4  ;;  %v3388_v29 = vld [vmem:[%s5937_s14 + $0x78] sm:$0xff] }
 0xbc5   : > { %5595 = vmatprep.subr.bf16.mxu0 %v5869_v11  ;;  %v5623_v4 = vpack.c.bf16 %v3388_v29, %v3387_v3 }
 0xbce   : > { %v5757_v5 = vpop.eup %5756 }
 0xbcf   : > { %v3068_v6 = vsel %vm2268_vm4, %v5757_v5, 0.0 }
 0xbd0   : > { %3069 = vadd.xlane.f32.xlu1 %v3068_v6 }
 0xbfe   : > { %v2978_v8 = vpop.f32.mrb[12].mxu0 }
 0xbff   : > { %v2982_v22 = vadd.f32 %v2978_v8, %v6945_v48  ;;  %v5399_v9 = vpop.f32.mrb[13].mxu0 }
 0xc5d   : > { %v3070_v10 = vpop.xlane.xlu1 %3069 }
 0xc5e   : > { %5758 = vrcp.f32 %v3070_v10 }
 0xc68   : > { %v5759_v12 = vpop.eup %5758 }
 0xc69   : > { %v3072_v13 = vmul.f32 %v5759_v12, %v5757_v5  ;;  %v5201_v5 = vld [vmem:[%s5932_s8] ss:$0 sm:$0xff] }
 0xc6b   : > { %5408 = vmatmul.mubr.msk.f32.vlgmr.msra.gmra.mrb[14].mxu0 %vm2268_vm4, %v3072_v13 }
 0xc6c   : > { %5423 = vmatprep.mubr.msk.f32.mxu0 %vm5870_vm0, %v5871_v14  ;;  %5597 = vmatpush3.bf16.msra.mxu0 %v5596_v40 }
 0xc6d   : > { %5598 = vmatprep.subr.bf16.mxu0 %v5869_v11 }
 0xd3e   : > { %v3145_v15 = vpop.f32.mrb[14].mxu0 }
 0xd3f   : > { %v5409_v16 = vpop.f32.mrb[15].mxu0  ;;  %5413 = vmatmul.mubr.msk.f32.vlgmr.msra.gmra.mrb[8].mxu1 %vm2268_vm4, %v3145_v15 }
 0xd40   : > { %5458 = vmatprep.mubr.msk.f32.mxu1 %vm5870_vm0, %v5871_v14  ;;  %5603 = vmatpush3.bf16.msra.mxu1 %v5602_v18 }
 0xd41   : > { %5604 = vmatprep.subr.bf16.mxu1 %v5869_v11 }
 0xd44   : > { %5606 = vmatpush3.bf16.msra.mxu1 %v5605_v55  ;;  %v3497_v55 = vld [vmem:[%s5967_s20 + $0x8] sm:$0xff] }
 0xd45   : > { %5607 = vmatprep.subr.bf16.mxu1 %v5869_v11  ;;  %v5626_v56 = vpack.c.bf16 %v3497_v55, %v3496_v54 }
 0xd48   : > { %5609 = vmatpush3.bf16.msra.mxu1 %v5608_v58  ;;  %v3499_v58 = vld [vmem:[%s5967_s20 + $0x18] sm:$0xff] }
 0xd49   : > { %5610 = vmatprep.subr.bf16.mxu1 %v5869_v11 }
 0xd4c   : > { %5612 = vmatpush3.bf16.msra.mxu1 %v5611_v59 }
 0xd4d   : > { %5613 = vmatprep.subr.bf16.mxu1 %v5869_v11 }
 0xd50   : > { %5615 = vmatpush3.bf16.msra.mxu1 %v5614_v34 }
 0xd51   : > { %5616 = vmatprep.subr.bf16.mxu1 %v5869_v11 }
 0xd54   : > { %5618 = vmatpush3.bf16.msra.mxu1 %v5617_v0 }
 0xd55   : > { %5619 = vmatprep.subr.bf16.mxu1 %v5869_v11 }
 0xd58   : > { %5621 = vmatpush3.bf16.msra.mxu1 %v5620_v25 }
 0xd59   : > { %5622 = vmatprep.subr.bf16.mxu1 %v5869_v11 }
 0xd5c   : > { %5624 = vmatpush3.bf16.msra.mxu1 %v5623_v4 }
 0xd5d   : > { %5497 = vmatprep.subr.mxu1 %v5871_v14 }
 0xe12   : > { %v3218_v20 = vpop.f32.mrb[8].mxu1 }
 0xe13   : > { %v3222_v26 = vadd.f32 %v3218_v20, %v2982_v22  ;;  %v5414_v27 = vpop.f32.mrb[9].mxu1 }
 0xe15   : > { %v3230_v28 = vadd.f32 %v5198_v24, %v3222_v26 }
 0xe17   : > { %v3233_v30 = vadd.f32 %v6884_v61, %v3230_v28  ;;  %v5599_v61 = vpack.c.bf16 %v3265_v42, %v3264_v41 }
 0xe19   : > { %v3234_v31 = vsel %vm2187_vm3, %v3233_v30, 0.0  ;;  %5600 = vmatpush3.bf16.msra.mxu0 %v5599_v61 }
 0xe1a   : > { %3235 = vadd.xlane.f32.xlu1 %v3234_v31  ;;  %5625 = vmatprep.subr.bf16.mxu0 %v5869_v11 }
 0xea7   : > { %v3236_v32 = vpop.xlane.xlu1 %3235 }
 0xea8   : > { %v3238_v33 = vmul.f32 0.03125, %v3236_v32 }
 0xeaa   : > { %v3239_v35 = vsub.f32 %v3233_v30, %v3238_v33 }
 0xeac   : > { %v3240_v36 = vmul.f32 %v3239_v35, %v3239_v35 }
 0xeae   : > { %v3241_v37 = vsel %vm2187_vm3, %v3240_v36, 0.0 }
 0xeaf   : > { %3242 = vadd.xlane.f32.xlu1 %v3241_v37 }
 0xf3c   : > { %v3243_v43 = vpop.xlane.xlu1 %3242 }
 0xf3d   : > { %v3244_v44 = vmul.f32 0.03125, %v3243_v43 }
 0xf3f   : > { %v3245_v45 = vadd.f32 1e-05, %v3244_v44  ;;  %v5203_v44 = vld [vmem:[%s5942_s19] ss:$0 sm:$0xff] }
 0xf41   : > { %5760 = vrsqrt.f32 %v3245_v45 }
 0xf4b   : > { %v5761_v46 = vpop.eup %5760 }
 0xf4c   : > { %v3247_v48 = vmul.f32 %v5761_v46, %v3239_v35 }
 0xf4e   : > { %v3254_v50 = vmul.f32 %v5199_v47, %v3247_v48 }
 0xf50   : > { %v6995_v51 = vadd.f32 %v5200_v49, %v3254_v50 }
 0xf52   : > { %5424 = vmatmul.mubr.msk.f32.vlgmr.msra.gmra.mrb[16].mxu0 %vm2187_vm3, %v6995_v51 }
 0xf53   : > { %5469 = vmatprep.mubr.msk.f32.mxu0 %vm5870_vm0, %v5871_v14  ;;  %5627 = vmatpush3.bf16.msra.mxu0 %v5626_v56 }
 0xf54   : > { %5628 = vmatprep.subr.bf16.mxu0 %v5869_v11 }
0x1025   : > { %v3342_v6 = vpop.f32.mrb[16].mxu0 }
0x1026   : > { %v3343_v7 = vadd.f32 %v5201_v5, %v3342_v6  ;;  %v5425_v8 = vpop.f32.mrb[17].mxu0 }
0x1028   : > { %v3347_v22 = vmul.f32 0.70710677, %v3343_v7  ;;  %v3346_v42 = vmul.f32 0.5, %v3343_v7 }
0x102a   : > { %v3350_v9 = vand.u32 2147483647, %v3347_v22  ;;  %vm3348_vm5 = vcmp.ge.f32.partialorder %v3347_v22, 0.0 }
0x102b   : > { %v3349_v40 = vsel %vm3348_vm5, 1.0, %v5883_v39 }
0x102c   : > { %v3351_v10 = vmul.f32 0.3275911, %v3350_v9  ;;  %v3364_v13 = vsub.f32 0.0, %v3350_v9 }
0x102e   : > { %v3352_v12 = vadd.f32 1.0, %v3351_v10  ;;  %v3365_v16 = vmul.f32 %v3364_v13, %v3350_v9 }
0x1030   : > { %5762 = vrcp.f32 %v3352_v12  ;;  %v3366_v26 = vmul.f32 1.442695, %v3365_v16 }
0x1032   : > { %5764 = vpow2.f32 %v3366_v26 }
0x103a   : > { %v5763_v15 = vpop.eup %5762 }
0x103b   : > { %v3355_v20 = vmul.f32 1.0614054, %v5763_v15 }
0x103c   : > { %v5765_v36 = vpop.eup %5764 }
0x103d   : > { %v3356_v24 = vadd.f32 -1.4531521, %v3355_v20 }
0x103f   : > { %v3357_v27 = vmul.f32 %v5763_v15, %v3356_v24 }
0x1041   : > { %v3358_v28 = vadd.f32 1.4214138, %v3357_v27 }
0x1043   : > { %v3359_v30 = vmul.f32 %v5763_v15, %v3358_v28 }
0x1045   : > { %v3360_v31 = vadd.f32 -0.28449672, %v3359_v30 }
0x1047   : > { %v3361_v32 = vmul.f32 %v5763_v15, %v3360_v31 }
0x1049   : > { %v3362_v33 = vadd.f32 0.2548296, %v3361_v32 }
0x104b   : > { %v3363_v35 = vmul.f32 %v5763_v15, %v3362_v33 }
0x104d   : > { %v3368_v37 = vmul.f32 %v5765_v36, %v3363_v35 }
0x104f   : > { %v3369_v38 = vsub.f32 1.0, %v3368_v37 }
0x1051   : > { %v3370_v41 = vmul.f32 %v3369_v38, %v3349_v40 }
0x1053   : > { %v3371_v61 = vadd.f32 1.0, %v3370_v41 }
0x1055   : > { %v3372_v43 = vmul.f32 %v3371_v61, %v3346_v42 }
0x1057   : > { %5459 = vmatmul.mubr.f32.vlgmr.msra.gmra.mrb[10].mxu1 %v3372_v43 }
0x1058   : > { %5499 = vmatprep.mubr.msk.f32.mxu1 %vm5870_vm0, %v5871_v14 }
0x112a   : > { %v3462_v45 = vpop.f32.mrb[10].mxu1 }
0x112b   : > { %v3463_v46 = vadd.f32 %v5203_v44, %v3462_v45  ;;  %v5460_v47 = vpop.f32.mrb[11].mxu1 }
0x112d   : > { %v3468_v48 = vadd.f32 %v3463_v46, %v6995_v51  ;;  %v5629_v51 = vpack.c.bf16 %v3499_v58, %v3498_v57 }
0x112f   : > { %v3469_v49 = vsel %vm2187_vm3, %v3468_v48, 0.0  ;;  %5630 = vmatpush3.bf16.msra.mxu0 %v5629_v51 }
0x1130   : > { %3470 = vadd.xlane.f32.xlu1 %v3469_v49  ;;  %5472 = vmatprep.subr.mxu0 %v5871_v14 }
0x11bd   : > { %v3471_v50 = vpop.xlane.xlu1 %3470 }
0x11be   : > { %v3472_v17 = vmul.f32 0.03125, %v3471_v50 }
0x11c0   : > { %v3473_v52 = vsub.f32 %v3468_v48, %v3472_v17 }
0x11c2   : > { %v3474_v18 = vmul.f32 %v3473_v52, %v3473_v52 }
0x11c4   : > { %v3475_v53 = vsel %vm2187_vm3, %v3474_v18, 0.0 }
0x11c5   : > { %3476 = vadd.xlane.f32.xlu1 %v3475_v53 }
0x1252   : > { %v3477_v19 = vpop.xlane.xlu1 %3476 }
0x1253   : > { %v3478_v21 = vmul.f32 0.03125, %v3477_v19 }
0x1255   : > { %v3479_v59 = vadd.f32 1e-05, %v3478_v21 }
0x1257   : > { %5766 = vrsqrt.f32 %v3479_v59 }
0x1261   : > { %v5767_v60 = vpop.eup %5766 }
0x1262   : > { %v3481_v34 = vmul.f32 %v5767_v60, %v3473_v52 }
0x1264   : > { %v3488_v63 = vmul.f32 %v5204_v62, %v3481_v34 }
0x1266   : > { %v7041_v0 = vadd.f32 %v5205_v23, %v3488_v63 }
0x1268   : > { %5470 = vmatmul.mubr.msk.f32.vlgmr.msra.gmra.mrb[18].mxu0 %vm2187_vm3, %v7041_v0 }
0x1269   : > { %5474 = vmatprep.mubr.msk.f32.mxu0 %vm5870_vm0, %v5871_v14 }
0x133b   : > { %v3576_v2 = vpop.f32.mrb[18].mxu0 }
0x133c   : > { %v7048_v25 = vadd.f32 %v5206_v1, %v3576_v2  ;;  %v5471_v3 = vpop.f32.mrb[19].mxu0 }
0x133e   : > { %3585 = vrot.lane.b32.xlu0 %v7048_v25, %s5872_s22  ;;  %s7229_s22 = sld [smem:[#allocation11_spill]] }
0x1344   : > { %v3580_v27 = vld [vmem:[%s7229_s22] sm:$0xff]  ;;  %v3581_v47 = vld [vmem:[%s7229_s22 + $0x8] sm:$0xff]  ;;  %v3582_v2 = vld [vmem:[%s7229_s22 + $0x10] sm:$0xff] }
0x1345   : > { %5498 = vmatpush3.msra.mxu1 %v3580_v27 }
0x1346   : > { %5507 = vmatprep.subr.mxu1 %v5871_v14 }
0x13b0   : > { %v3586_v29 = vpop.permute.xlu0 %3585 }
0x13b1   : > { %5473 = vmatpush3.xpose.msk.msra.mxu0 %vm2268_vm4, %v3586_v29 }
0x13b2   : > { %5477 = vmatprep.subr.mxu0 %v5871_v14 }
0x13b4   : > { %5475 = vmatmul.mubr.msk.f32.vlgmr.msra.gmra.mrb[20].mxu0 %vm2268_vm4, %v7048_v25 }
0x13b5   : > { %5479 = vmatprep.mubr.msk.f32.mxu0 %vm5870_vm0, %v5871_v14 }
0x1487   : > { %v3657_v4 = vpop.f32.mrb[20].mxu0 }
0x1488   : > { %v3661_v5 = vmul.f32 0.35355338, %v3657_v4  ;;  %v5476_v6 = vpop.f32.mrb[21].mxu0 }
0x148a   : > { %v3662_v7 = vsel %vm2268_vm4, %v3661_v5, -inf }
0x148b   : > { %3663 = vmax.xlane.f32.xlu1 %v3662_v7 }
0x149c   : > { %3673 = vrot.lane.b32.xlu1 %v7048_v25, %s5874_s26  ;;  %s7231_s26 = smov 104  }
0x14a0   : > { %3751 = vrot.lane.b32.xlu1 %v7048_v25, %s5873_s23  ;;  %s7230_s23 = smov 72  }
0x14a4   : > { %3749 = vrot.lane.b32.xlu1 %v7048_v25, %s5875_s28  ;;  %s7232_s28 = smov 40  }
0x1518   : > { %v3664_v8 = vpop.xlane.xlu1 %3663 }
0x1519   : > { %v3665_v22 = vsub.f32 %v3661_v5, %v3664_v8 }
0x151b   : > { %v3666_v9 = vmul.f32 1.442695, %v3665_v22 }
0x151c   : > { %v3674_v10 = vpop.permute.xlu1 %3673 }
0x151d   : > { %5768 = vpow2.f32 %v3666_v9  ;;  %5478 = vmatpush3.msra.mxu0 %v3674_v10 }
0x151e   : > { %5482 = vmatprep.subr.mxu0 %v5871_v14 }
0x1520   : > { %v3752_v20 = vpop.permute.xlu1 %3751 }
0x1524   : > { %v3750_v26 = vpop.permute.xlu1 %3749 }
0x1527   : > { %v5769_v12 = vpop.eup %5768 }
0x1528   : > { %v3668_v13 = vsel %vm2268_vm4, %v5769_v12, 0.0 }
0x1529   : > { %3669 = vadd.xlane.f32.xlu0 %v3668_v13  ;;  %v3583_v13 = vld [vmem:[%s7229_s22 + $0x18] sm:$0xff] }
0x15b6   : > { %v3670_v15 = vpop.xlane.xlu0 %3669 }
0x15b7   : > { %5770 = vrcp.f32 %v3670_v15 }
0x15c1   : > { %v5771_v16 = vpop.eup %5770 }
0x15c2   : > { %v3672_v24 = vmul.f32 %v5771_v16, %v5769_v12 }
0x15c4   : > { %5480 = vmatmul.mubr.msk.f32.vlgmr.msra.gmra.mrb[22].mxu0 %vm2268_vm4, %v3672_v24 }
0x15c5   : > { %5483 = vmatpush3.xpose.msk.msra.mxu0 %vm2268_vm4, %v3752_v20  ;;  %5484 = vmatprep.mubr.msk.f32.mxu0 %vm5870_vm0, %v5871_v14 }
0x15c6   : > { %5487 = vmatprep.subr.mxu0 %v5871_v14 }
0x15c8   : > { %5485 = vmatmul.mubr.msk.f32.vlgmr.msra.gmra.mrb[24].mxu0 %vm2268_vm4, %v3750_v26 }
0x15c9   : > { %5489 = vmatprep.mubr.msk.f32.mxu0 %vm5870_vm0, %v5871_v14 }
0x1697   : > { %v3745_v28 = vpop.f32.mrb[22].mxu0 }
0x1698   : > { %v5481_v30 = vpop.f32.mrb[23].mxu0  ;;  %5500 = vmatmul.mubr.msk.f32.vlgmr.msra.gmra.mrb[12].mxu1 %vm2268_vm4, %v3745_v28 }
0x1699   : > { %5509 = vmatprep.mubr.msk.f32.mxu1 %vm5870_vm0, %v5871_v14 }
0x169b   : > { %v3823_v31 = vpop.f32.mrb[24].mxu0 }
0x169c   : > { %v3827_v32 = vmul.f32 0.35355338, %v3823_v31  ;;  %v5486_v33 = vpop.f32.mrb[25].mxu0 }
0x169e   : > { %v3828_v35 = vsel %vm2268_vm4, %v3827_v32, -inf }
0x169f   : > { %3829 = vmax.xlane.f32.xlu1 %v3828_v35 }
0x172c   : > { %v3830_v36 = vpop.xlane.xlu1 %3829 }
0x172d   : > { %v3831_v37 = vsub.f32 %v3827_v32, %v3830_v36 }
0x172f   : > { %v3832_v38 = vmul.f32 1.442695, %v3831_v37 }
0x1731   : > { %5772 = vpow2.f32 %v3832_v38 }
0x173b   : > { %v5773_v40 = vpop.eup %5772 }
0x173c   : > { %v3834_v41 = vsel %vm2268_vm4, %v5773_v40, 0.0 }
0x173d   : > { %3835 = vadd.xlane.f32.xlu0 %v3834_v41 }
0x1753   : > { %3839 = vrot.lane.b32.xlu0 %v7048_v25, %s5876_s1  ;;  %s7233_s1 = sld [smem:[#allocation12_spill]] }
0x1757   : > { %4063 = vrot.lane.b32.xlu0 %v7048_v25, %s5878_s15  ;;  %s7235_s15 = sld [smem:[#allocation17_spill]] }
0x1759   : > { %v5224_v32 = vld [vmem:[%s7233_s1] ss:$0 sm:$0xff] }
0x175b   : > { %4061 = vrot.lane.b32.xlu0 %v7048_v25, %s5877_s2  ;;  %s7234_s2 = sld [smem:[#allocation13_spill]] }
0x176b   : > { %v4057_v42 = vpop.f32.mrb[12].mxu1 }
0x176c   : > { %v5501_v61 = vpop.f32.mrb[13].mxu1 }
0x17ca   : > { %v3836_v43 = vpop.xlane.xlu0 %3835 }
0x17cb   : > { %5774 = vrcp.f32 %v3836_v43 }
0x17ce   : > { %v3840_v44 = vpop.permute.xlu0 %3839 }
0x17cf   : > { %5488 = vmatpush3.msra.mxu0 %v3840_v44  ;;  %v4579_v44 = vld [vmem:[%s7234_s2] sm:$0xff] }
0x17d0   : > { %5492 = vmatprep.subr.mxu0 %v5871_v14 }
0x17d2   : > { %v4064_v48 = vpop.permute.xlu0 %4063 }
0x17d5   : > { %v5775_v45 = vpop.eup %5774 }
0x17d6   : > { %v3838_v46 = vmul.f32 %v5775_v45, %v5773_v40  ;;  %v4062_v17 = vpop.permute.xlu0 %4061  ;;  %v4580_v45 = vld [vmem:[%s7234_s2 + $0x8] sm:$0xff] }
0x17d8   : > { %5490 = vmatmul.mubr.msk.f32.vlgmr.msra.gmra.mrb[26].mxu0 %vm2268_vm4, %v3838_v46  ;;  %v5632_v46 = vpack.c.bf16 %v4580_v45, %v4579_v44 }
0x17d9   : > { %5493 = vmatpush3.msra.mxu0 %v3581_v47  ;;  %5494 = vmatprep.mubr.msk.f32.mxu0 %vm5870_vm0, %v5871_v14  ;;  %v4581_v47 = vld [vmem:[%s7234_s2 + $0x10] sm:$0xff] }
0x17da   : > { %5502 = vmatprep.subr.mxu0 %v5871_v14 }
0x18ab   : > { %v3911_v49 = vpop.f32.mrb[26].mxu0 }
0x18ac   : > { %v5491_v50 = vpop.f32.mrb[27].mxu0  ;;  %5495 = vmatmul.mubr.msk.f32.vlgmr.msra.gmra.mrb[28].mxu0 %vm2268_vm4, %v3911_v49 }
0x18ad   : > { %5503 = vmatpush3.xpose.msk.msra.mxu0 %vm2268_vm4, %v4064_v48  ;;  %5504 = vmatprep.mubr.msk.f32.mxu0 %vm5870_vm0, %v5871_v14  ;;  %v4582_v48 = vld [vmem:[%s7234_s2 + $0x18] sm:$0xff] }
0x18ae   : > { %5512 = vmatprep.subr.mxu0 %v5871_v14 }
0x18b0   : > { %5505 = vmatmul.mubr.msk.f32.vlgmr.msra.gmra.mrb[30].mxu0 %vm2268_vm4, %v4062_v17 }
0x18b1   : > { %5514 = vmatprep.mubr.msk.f32.mxu0 %vm5870_vm0, %v5871_v14  ;;  %5513 = vmatpush3.msra.mxu0 %v3582_v2  ;;  %v4699_v2 = vld [vmem:[%s7237_s11 + $0x48] sm:$0xff] }
0x18b2   : > { %5522 = vmatprep.subr.mxu0 %v5871_v14 }
0x197f   : > { %v3984_v52 = vpop.f32.mrb[28].mxu0 }
0x1980   : > { %v4058_v18 = vadd.f32 %v4057_v42, %v3984_v52  ;;  %v5496_v53 = vpop.f32.mrb[29].mxu0 }
0x1983   : > { %v4135_v54 = vpop.f32.mrb[30].mxu0 }
0x1984   : > { %v4139_v55 = vmul.f32 0.35355338, %v4135_v54  ;;  %v5506_v56 = vpop.f32.mrb[31].mxu0  ;;  %v5226_v54 = vld [vmem:[%s7236_s0] ss:$0 sm:$0xff] }
0x1986   : > { %v4140_v57 = vsel %vm2268_vm4, %v4139_v55, -inf }
0x1987   : > { %4141 = vmax.xlane.f32.xlu1 %v4140_v57  ;;  %v4690_v57 = vld [vmem:[%s7237_s11] sm:$0xff] }
0x1998   : > { %4151 = vrot.lane.b32.xlu1 %v7048_v25, %s5881_s16  ;;  %s7238_s16 = sld [smem:[#allocation14_spill]] }
0x199c   : > { %4303 = vrot.lane.b32.xlu1 %v7048_v25, %s7230_s23  ;;  %s7240_s23 = sld [smem:[#allocation19_spill]] }
0x19a0   : > { %4301 = vrot.lane.b32.xlu1 %v7048_v25, %s7231_s26  ;;  %s5013_s26 = sshll.u32 %s7242_s10, 3 }
0x1a14   : > { %v4142_v58 = vpop.xlane.xlu1 %4141 }
0x1a15   : > { %v4143_v51 = vsub.f32 %v4139_v55, %v4142_v58  ;;  %v4691_v58 = vld [vmem:[%s7237_s11 + $0x8] sm:$0xff] }
0x1a17   : > { %v4144_v19 = vmul.f32 1.442695, %v4143_v51  ;;  %v5638_v51 = vpack.c.bf16 %v4691_v58, %v4690_v57 }
0x1a18   : > { %v4152_v21 = vpop.permute.xlu1 %4151 }
0x1a19   : > { %5776 = vpow2.f32 %v4144_v19  ;;  %5508 = vmatpush3.msra.mxu1 %v4152_v21  ;;  %v4692_v19 = vld [vmem:[%s7237_s11 + $0x10] sm:$0xff]  ;;  %v4693_v21 = vld [vmem:[%s7237_s11 + $0x18] sm:$0xff] }
0x1a1a   : > { %5517 = vmatprep.subr.mxu1 %v5871_v14 }
0x1a1c   : > { %v4304_v23 = vpop.permute.xlu1 %4303 }
0x1a20   : > { %v4302_v1 = vpop.permute.xlu1 %4301 }
0x1a23   : > { %v5777_v59 = vpop.eup %5776 }
0x1a24   : > { %v4146_v60 = vsel %vm2268_vm4, %v5777_v59, 0.0 }
0x1a25   : > { %4147 = vadd.xlane.f32.xlu0 %v4146_v60  ;;  %v4694_v60 = vld [vmem:[%s7237_s11 + $0x20] sm:$0xff] }
0x1ab2   : > { %v4148_v62 = vpop.xlane.xlu0 %4147 }
0x1ab3   : > { %5778 = vrcp.f32 %v4148_v62 }
0x1abd   : > { %v5779_v34 = vpop.eup %5778 }
0x1abe   : > { %v4150_v63 = vmul.f32 %v5779_v34, %v5777_v59  ;;  %v5641_v59 = vpack.c.bf16 %v4693_v21, %v4692_v19  ;;  %v4696_v34 = vld [vmem:[%s7237_s11 + $0x30] sm:$0xff]  ;;  %v4814_v19 = vld [vmem:[%s6027_s6 + $0x8] sm:$0xff] }
0x1ac0   : > { %5510 = vmatmul.mubr.msk.f32.vlgmr.msra.gmra.mrb[14].mxu1 %vm2268_vm4, %v4150_v63 }
0x1ac1   : > { %5518 = vmatpush3.xpose.msk.msra.mxu1 %vm2268_vm4, %v4304_v23  ;;  %5519 = vmatprep.mubr.msk.f32.mxu1 %vm5870_vm0, %v5871_v14  ;;  %v4697_v23 = vld [vmem:[%s7237_s11 + $0x38] sm:$0xff] }
0x1ac2   : > { %5527 = vmatprep.subr.mxu1 %v5871_v14  ;;  %v5647_v63 = vpack.c.bf16 %v4697_v23, %v4696_v34 }
0x1ac4   : > { %5520 = vmatmul.mubr.msk.f32.vlgmr.msra.gmra.mrb[16].mxu1 %vm2268_vm4, %v4302_v1  ;;  %v4698_v1 = vld [vmem:[%s7237_s11 + $0x40] sm:$0xff] }
0x1ac5   : > { %5529 = vmatprep.mubr.msk.f32.mxu1 %vm5870_vm0, %v5871_v14  ;;  %5528 = vmatpush3.msra.mxu1 %v3583_v13 }
0x1ac6   : > { %5637 = vmatprep.subr.bf16.mxu1 %v5869_v11 }
0x1b93   : > { %v4223_v3 = vpop.f32.mrb[14].mxu1 }
0x1b94   : > { %v5511_v29 = vpop.f32.mrb[15].mxu1  ;;  %5515 = vmatmul.mubr.msk.f32.vlgmr.msra.gmra.mrb[32].mxu0 %vm2268_vm4, %v4223_v3  ;;  %v5650_v3 = vpack.c.bf16 %v4699_v2, %v4698_v1  ;;  %v5231_v2 = vld [vmem:[%s6022_s12] ss:$0 sm:$0xff] }
0x1b95   : > { %5524 = vmatprep.mubr.msk.f32.mxu0 %vm5870_vm0, %v5871_v14  ;;  %v4700_v29 = vld [vmem:[%s7237_s11 + $0x50] sm:$0xff] }
0x1b97   : > { %v4375_v4 = vpop.f32.mrb[16].mxu1 }
0x1b98   : > { %v4379_v5 = vmul.f32 0.35355338, %v4375_v4  ;;  %v5521_v6 = vpop.f32.mrb[17].mxu1  ;;  %v4701_v4 = vld [vmem:[%s7237_s11 + $0x58] sm:$0xff] }
0x1b99   : > { %v4702_v6 = vld [vmem:[%s7237_s11 + $0x60] sm:$0xff] }
0x1b9a   : > { %v4380_v7 = vsel %vm2268_vm4, %v4379_v5, -inf }
0x1b9b   : > { %4381 = vmax.xlane.f32.xlu1 %v4380_v7  ;;  %v4703_v7 = vld [vmem:[%s7237_s11 + $0x68] sm:$0xff] }
0x1c28   : > { %v4382_v8 = vpop.xlane.xlu1 %4381 }
0x1c29   : > { %v4383_v22 = vsub.f32 %v4379_v5, %v4382_v8  ;;  %v5653_v5 = vpack.c.bf16 %v4701_v4, %v4700_v29  ;;  %v5656_v8 = vpack.c.bf16 %v4703_v7, %v4702_v6 }
0x1c2b   : > { %v4384_v9 = vmul.f32 1.442695, %v4383_v22  ;;  %v4704_v22 = vld [vmem:[%s7237_s11 + $0x70] sm:$0xff] }
0x1c2d   : > { %5780 = vpow2.f32 %v4384_v9  ;;  %v4705_v9 = vld [vmem:[%s7237_s11 + $0x78] sm:$0xff] }
0x1c37   : > { %v5781_v10 = vpop.eup %5780 }
0x1c38   : > { %v4386_v12 = vsel %vm2268_vm4, %v5781_v10, 0.0 }
0x1c39   : > { %4387 = vadd.xlane.f32.xlu0 %v4386_v12  ;;  %v5227_v12 = vld [vmem:[%s7238_s16] ss:$0 sm:$0xff] }
0x1c4f   : > { %4391 = vrot.lane.b32.xlu0 %v7048_v25, %s7232_s28  ;;  %s927_s28 = scalar_lea.vmem %s6037_s4, %s5013_s26 }
0x1c67   : > { %v4296_v15 = vpop.f32.mrb[32].mxu0 }
0x1c68   : > { %v4300_v16 = vadd.f32 %v4296_v15, %v4058_v18  ;;  %v5516_v20 = vpop.f32.mrb[33].mxu0  ;;  %v5225_v18 = vld [vmem:[%s7235_s15] ss:$0 sm:$0xff] }
0x1cc6   : > { %v4388_v24 = vpop.xlane.xlu0 %4387 }
0x1cc7   : > { %5782 = vrcp.f32 %v4388_v24 }
0x1cca   : > { %v4392_v26 = vpop.permute.xlu0 %4391 }
0x1ccb   : > { %5523 = vmatpush3.msra.mxu0 %v4392_v26 }
0x1ccc   : > { %5631 = vmatprep.subr.bf16.mxu0 %v5869_v11 }
0x1cd1   : > { %v5783_v27 = vpop.eup %5782 }
0x1cd2   : > { %v4390_v28 = vmul.f32 %v5783_v27, %v5781_v10  ;;  %v5659_v10 = vpack.c.bf16 %v4705_v9, %v4704_v22 }
0x1cd4   : > { %5525 = vmatmul.mubr.msk.f32.vlgmr.msra.gmra.mrb[34].mxu0 %vm2268_vm4, %v4390_v28 }
0x1cd5   : > { %5540 = vmatprep.mubr.msk.f32.mxu0 %vm5870_vm0, %v5871_v14  ;;  %5633 = vmatpush3.bf16.msra.mxu0 %v5632_v46 }
0x1cd6   : > { %5634 = vmatprep.subr.bf16.mxu0 %v5869_v11 }
0x1da7   : > { %v4463_v25 = vpop.f32.mrb[34].mxu0 }
0x1da8   : > { %v5526_v30 = vpop.f32.mrb[35].mxu0  ;;  %5530 = vmatmul.mubr.msk.f32.vlgmr.msra.gmra.mrb[18].mxu1 %vm2268_vm4, %v4463_v25 }
0x1da9   : > { %5575 = vmatprep.mubr.msk.f32.mxu1 %vm5870_vm0, %v5871_v14  ;;  %5639 = vmatpush3.bf16.msra.mxu1 %v5638_v51  ;;  %v4813_v51 = vld [vmem:[%s6027_s6] sm:$0xff] }
0x1daa   : > { %5640 = vmatprep.subr.bf16.mxu1 %v5869_v11  ;;  %v5662_v21 = vpack.c.bf16 %v4814_v19, %v4813_v51 }
0x1dad   : > { %5642 = vmatpush3.bf16.msra.mxu1 %v5641_v59  ;;  %v4816_v59 = vld [vmem:[%s6027_s6 + $0x18] sm:$0xff] }
0x1dae   : > { %5643 = vmatprep.subr.bf16.mxu1 %v5869_v11 }
0x1e7b   : > { %v4536_v31 = vpop.f32.mrb[18].mxu1 }
0x1e7c   : > { %v4540_v33 = vadd.f32 %v4536_v31, %v4300_v16  ;;  %v5531_v35 = vpop.f32.mrb[19].mxu1 }
0x1e7e   : > { %v4548_v36 = vadd.f32 %v5224_v32, %v4540_v33 }
0x1e80   : > { %v4551_v37 = vadd.f32 %v4548_v36, %v7041_v0  ;;  %v5635_v0 = vpack.c.bf16 %v4582_v48, %v4581_v47 }
0x1e82   : > { %v4552_v38 = vsel %vm2187_vm3, %v4551_v37, 0.0  ;;  %5636 = vmatpush3.bf16.msra.mxu0 %v5635_v0 }
0x1e83   : > { %4553 = vadd.xlane.f32.xlu0 %v4552_v38  ;;  %5661 = vmatprep.subr.bf16.mxu0 %v5869_v11 }
0x1f10   : > { %v4554_v40 = vpop.xlane.xlu0 %4553 }
0x1f11   : > { %v4555_v41 = vmul.f32 0.03125, %v4554_v40 }
0x1f13   : > { %v4556_v42 = vsub.f32 %v4551_v37, %v4555_v41 }
0x1f15   : > { %v4557_v61 = vmul.f32 %v4556_v42, %v4556_v42 }
0x1f17   : > { %v4558_v43 = vsel %vm2187_vm3, %v4557_v61, 0.0 }
0x1f18   : > { %4559 = vadd.xlane.f32.xlu1 %v4558_v43 }
0x1fa5   : > { %v4560_v49 = vpop.xlane.xlu1 %4559 }
0x1fa6   : > { %v4561_v50 = vmul.f32 0.03125, %v4560_v49  ;;  %v5229_v49 = vld [vmem:[%s7239_s18] ss:$0 sm:$0xff] }
0x1fa8   : > { %v4562_v17 = vadd.f32 1e-05, %v4561_v50 }
0x1faa   : > { %5784 = vrsqrt.f32 %v4562_v17 }
0x1fb4   : > { %v5785_v52 = vpop.eup %5784 }
0x1fb5   : > { %v4564_v53 = vmul.f32 %v5785_v52, %v4556_v42 }
0x1fb7   : > { %v4571_v55 = vmul.f32 %v5225_v18, %v4564_v53 }
0x1fb9   : > { %v7149_v56 = vadd.f32 %v5226_v54, %v4571_v55 }
0x1fbb   : > { %5541 = vmatmul.mubr.msk.f32.vlgmr.msra.gmra.mrb[36].mxu0 %vm2187_vm3, %v7149_v56 }
0x1fbc   : > { %5586 = vmatprep.mubr.msk.f32.mxu0 %vm5870_vm0, %v5871_v14  ;;  %v4695_v14 = vld [vmem:[%s7237_s11 + $0x28] sm:$0xff]  ;;  %5663 = vmatpush3.bf16.msra.mxu0 %v5662_v21 }
0x1fbd   : > { %v5644_v62 = vpack.c.bf16 %v4695_v14, %v4694_v60  ;;  %5664 = vmatprep.subr.bf16.mxu0 %v5869_v11 }
0x1fbf   : > { %5645 = vmatpush3.bf16.msra.mxu1 %v5644_v62 }
0x1fc0   : > { %5646 = vmatprep.subr.bf16.mxu1 %v5869_v11 }
0x1fc3   : > { %5648 = vmatpush3.bf16.msra.mxu1 %v5647_v63  ;;  %v5230_v63 = vld [vmem:[%s7240_s23] ss:$0 sm:$0xff] }
0x1fc4   : > { %5649 = vmatprep.subr.bf16.mxu1 %v5869_v11 }
0x1fc7   : > { %5651 = vmatpush3.bf16.msra.mxu1 %v5650_v3 }
0x1fc8   : > { %5652 = vmatprep.subr.bf16.mxu1 %v5869_v11 }
0x1fcb   : > { %5654 = vmatpush3.bf16.msra.mxu1 %v5653_v5 }
0x1fcc   : > { %5655 = vmatprep.subr.bf16.mxu1 %v5869_v11 }
0x1fcf   : > { %5657 = vmatpush3.bf16.msra.mxu1 %v5656_v8 }
0x1fd0   : > { %5658 = vmatprep.subr.bf16.mxu1 %v5869_v11  ;;  %v5232_v11 = vld [vmem:[%s6032_s27] ss:$0 sm:$0xff] }
0x1fd3   : > { %5660 = vmatpush3.bf16.msra.mxu1 %v5659_v10 }
0x208e   : > { %v4659_v13 = vpop.f32.mrb[36].mxu0 }
0x208f   : > { %v4660_v15 = vadd.f32 %v5227_v12, %v4659_v13  ;;  %v5542_v16 = vpop.f32.mrb[37].mxu0 }
0x2091   : > { %v4664_v20 = vmul.f32 0.70710677, %v4660_v15  ;;  %v4663_v47 = vmul.f32 0.5, %v4660_v15 }
0x2093   : > { %v4667_v24 = vand.u32 2147483647, %v4664_v20  ;;  %vm4665_vm0 = vcmp.ge.f32.partialorder %v4664_v20, 0.0 }
0x2094   : > { %v4666_v45 = vsel %vm4665_vm0, 1.0, %v5883_v39 }
0x2095   : > { %v4668_v26 = vmul.f32 0.3275911, %v4667_v24  ;;  %v4681_v28 = vsub.f32 0.0, %v4667_v24 }
0x2097   : > { %v4669_v27 = vadd.f32 1.0, %v4668_v26  ;;  %v4682_v30 = vmul.f32 %v4681_v28, %v4667_v24 }
0x2099   : > { %5786 = vrcp.f32 %v4669_v27  ;;  %v4683_v33 = vmul.f32 1.442695, %v4682_v30 }
0x209b   : > { %5788 = vpow2.f32 %v4683_v33 }
0x20a3   : > { %v5787_v25 = vpop.eup %5786 }
0x20a4   : > { %v4672_v31 = vmul.f32 1.0614054, %v5787_v25 }
0x20a5   : > { %v5789_v61 = vpop.eup %5788 }
0x20a6   : > { %v4673_v32 = vadd.f32 -1.4531521, %v4672_v31 }
0x20a8   : > { %v4674_v35 = vmul.f32 %v5787_v25, %v4673_v32 }
0x20aa   : > { %v4675_v36 = vadd.f32 1.4214138, %v4674_v35 }
0x20ac   : > { %v4676_v37 = vmul.f32 %v5787_v25, %v4675_v36 }
0x20ae   : > { %v4677_v38 = vadd.f32 -0.28449672, %v4676_v37 }
0x20b0   : > { %v4678_v40 = vmul.f32 %v5787_v25, %v4677_v38 }
0x20b2   : > { %v4679_v41 = vadd.f32 0.2548296, %v4678_v40 }
0x20b4   : > { %v4680_v42 = vmul.f32 %v5787_v25, %v4679_v41 }
0x20b6   : > { %v4685_v43 = vmul.f32 %v5789_v61, %v4680_v42 }
0x20b8   : > { %v4686_v44 = vsub.f32 1.0, %v4685_v43 }
0x20ba   : > { %v4687_v46 = vmul.f32 %v4686_v44, %v4666_v45 }
0x20bc   : > { %v4688_v48 = vadd.f32 1.0, %v4687_v46 }
0x20be   : > { %v4689_v0 = vmul.f32 %v4688_v48, %v4663_v47 }
0x20c0   : > { %5576 = vmatmul.mubr.f32.vlgmr.msra.gmra.mrb[20].mxu1 %v4689_v0 }
0x2193   : > { %v4779_v50 = vpop.f32.mrb[20].mxu1 }
0x2194   : > { %v4780_v17 = vadd.f32 %v5229_v49, %v4779_v50  ;;  %v5577_v52 = vpop.f32.mrb[21].mxu1 }
0x2196   : > { %v4785_v18 = vadd.f32 %v4780_v17, %v7149_v56  ;;  %v4815_v56 = vld [vmem:[%s6027_s6 + $0x10] sm:$0xff] }
0x2197   : > { %v5665_v60 = vpack.c.bf16 %v4816_v59, %v4815_v56 }
0x2198   : > { %v4786_v53 = vsel %vm2187_vm3, %v4785_v18, 0.0 }
0x2199   : > { %4787 = vadd.xlane.f32.xlu1 %v4786_v53  ;;  %5666 = vmatpush3.bf16.msra.mxu0 %v5665_v60 }
0x2226   : > { %v4788_v54 = vpop.xlane.xlu1 %4787 }
0x2227   : > { %v4789_v39 = vmul.f32 0.03125, %v4788_v54 }
0x2229   : > { %v4790_v55 = vsub.f32 %v4785_v18, %v4789_v39 }
0x222b   : > { %v4791_v57 = vmul.f32 %v4790_v55, %v4790_v55 }
0x222d   : > { %v4792_v58 = vsel %vm2187_vm3, %v4791_v57, 0.0 }
0x222e   : > { %4793 = vadd.xlane.f32.xlu1 %v4792_v58 }
0x22bb   : > { %v4794_v14 = vpop.xlane.xlu1 %4793 }
0x22bc   : > { %v4795_v62 = vmul.f32 0.03125, %v4794_v14 }
0x22be   : > { %v4796_v34 = vadd.f32 1e-05, %v4795_v62 }
0x22c0   : > { %5790 = vrsqrt.f32 %v4796_v34 }
0x22ca   : > { %v5791_v23 = vpop.eup %5790 }
0x22cb   : > { %v4798_v1 = vmul.f32 %v5791_v23, %v4790_v55 }
0x22cd   : > { %v4805_v3 = vmul.f32 %v5230_v63, %v4798_v1 }
0x22cf   : > { %v4812_v29 = vadd.f32 %v5231_v2, %v4805_v3 }
0x22d1   : > { %5587 = vmatmul.mubr.msk.f32.vlgmr.msra.gmra.mrb[38].mxu0 %vm2187_vm3, %v4812_v29 }
0x23a4   : > { %v4893_v4 = vpop.f32.mrb[38].mxu0 }
0x23a5   : > { %v4894_v5 = vadd.f32 %v5232_v11, %v4893_v4  ;;  %v5588_v6 = vpop.f32.mrb[39].mxu0 }
0x23a7   : > { %4897 = vst [vmem:[%s927_s28] sm:$0xff] %v4894_v5 }
0x23a8 PF: > { %s71_s7 = sadd.s32 1, %s5836_s7  }
0x23a9   : > { %p68_p5 = scmp.ge.s32.totalorder %s71_s7, 4  }
0x23ab   :  { %70 = sbr.rel (!%p68_p5) target bundleno = 48 (0x30), region = 204 }
0x23b2   :  { %4917 = vsyncpa [#allocation3], 1 }
0x23b3   :  { %4919 = vsyncpa [#allocation3 + $0x1], 1 }
0x23b4   :  { %4920 = vsyncpa [#allocation5], 1 }

</bundles_post_ra>
